<compile_context>
chip_gen: v7x
topology: tpu7x:2x2x1
jax: 0.10.0
libtpu: 0.0.40
codegen_flags: <defaults>
</compile_context>

<pallas_src>
import functools

import jax
import jax.numpy as jnp
from jax import lax
from jax.experimental import pallas as pl
from jax.experimental.pallas import tpu as pltpu


# --------------------------------------------------------------------------
# Kernel body
# --------------------------------------------------------------------------
def _qwen2_mlp_kernel(x_ref, wgu_ref, wd_ref, o_ref, acc_ref, *, ti,
                      compute_dtype):
    """One (token-tile, intermediate-tile) step of the fused MLP.

    Grid = (M//tm, I//ti); axis 1 (last) is the reduction over I.
      x_ref:   (tm, H)      token tile, compute_dtype (same block for every k)
      wgu_ref: (2*ti, H)    fused [gate_k ; up_k] weight slice, compute_dtype
      wd_ref:  (H, ti)      down_proj weight slice, compute_dtype
      o_ref:   (tm, H)      output tile (written at last k)
      acc_ref: (tm, H)      f32 accumulator scratch
    """
    k = pl.program_id(1)

    @pl.when(k == 0)
    def _init():
        acc_ref[...] = jnp.zeros_like(acc_ref)

    x = x_ref[...]          # (tm, H)   already compute_dtype
    wgu = wgu_ref[...]      # (2*ti, H) already compute_dtype
    wd = wd_ref[...]        # (H, ti)   already compute_dtype

    # Contract x's H against the weights' last dim (x @ W^T): no transposes.
    dn = (((1,), (1,)), ((), ()))

    # One MXU pass produces gate and up partials for this I-slice.
    gu = lax.dot_general(x, wgu, dn, preferred_element_type=jnp.float32)
    g = gu[:, :ti]          # (tm, ti)  static, lane-aligned slice
    u = gu[:, ti:]          # (tm, ti)

    # SiLU(gate) * up in f32 (sigmoid goes to the EUP).
    h = (g * jax.nn.sigmoid(g)) * u

    # Partial down-projection for this I-slice; f32 accumulation across k.
    acc_ref[...] += lax.dot_general(
        h.astype(compute_dtype), wd, dn, preferred_element_type=jnp.float32)

    @pl.when(k == pl.num_programs(1) - 1)
    def _finalize():
        o_ref[...] = acc_ref[...].astype(o_ref.dtype)


# --------------------------------------------------------------------------
# Tile / VMEM-budget helpers
# --------------------------------------------------------------------------
def _vmem_capacity_bytes():
    """Per-core VMEM capacity; conservative 64 MiB (v7x) fallback."""
    try:
        info = pltpu.get_tpu_info()
        for attr in ("vmem_capacity_bytes", "vmem_size_bytes", "vmem_bytes"):
            v = getattr(info, attr, None)
            if v:
                return int(v)
    except Exception:
        pass
    return 64 * 1024 * 1024


def _pick_divisor(total, preferred):
    """Largest entry of `preferred` dividing `total`; else `total`."""
    for t in preferred:
        if t <= total and total % t == 0:
            return t
    return total


def _pick_tm(m, preferred, fits):
    """Largest preferred tile dividing m that fits VMEM; prefer >=2 tiles
    (keeps both v7x TensorCores busy on the 'parallel' token axis)."""
    cands = [t for t in preferred if t <= m and m % t == 0 and fits(t)]
    for t in cands:
        if t < m:
            return t
    if cands:
        return cands[0]
    # TODO(synk): ragged B*S (no small divisor) falls back to a single token
    # tile; add a padded/masked tail path if arbitrary shapes are required.
    return m


# --------------------------------------------------------------------------
# Public wrapper
# --------------------------------------------------------------------------
def qwen2_mlp(x, w_gate, w_up, w_down, *, tm=None, ti=None,
              compute_dtype=jnp.bfloat16, weight_buffer_count=2,
              vmem_limit_bytes=None):
    """Qwen2 MLP forward.

    x:       (B, S, H)
    w_gate:  (I, H)   PyTorch nn.Linear layout (out_features, in_features)
    w_up:    (I, H)
    w_down:  (H, I)
    """
    B, S, H = x.shape
    I = w_gate.shape[0]
    assert w_gate.shape == (I, H) and w_up.shape == (I, H) and w_down.shape == (H, I)

    M = B * S
    cb = jnp.dtype(compute_dtype).itemsize
    ob = jnp.dtype(x.dtype).itemsize

    # I = 18944 = 2^9 * 37 for Qwen2-7B -> 512 is the largest aligned divisor.
    if ti is None:
        ti = _pick_divisor(I, (512, 256, 128))
    assert I % ti == 0, (I, ti)

    cap = _vmem_capacity_bytes()
    budget = cap - 8 * 1024 * 1024  # headroom for Mosaic internal scratch

    def ws_bytes(t):
        return (2 * t * H * cb                              # x (double-buffered)
                + weight_buffer_count * (2 * ti) * H * cb   # fused gate/up stream
                + weight_buffer_count * H * ti * cb         # down stream
                + t * H * 4                                 # f32 accumulator
                + 2 * t * H * ob)                           # output (double-buffered)

    if tm is None:
        tm = _pick_tm(M, (512, 256, 128, 64, 32, 16, 8),
                      fits=lambda t: ws_bytes(t) <= budget)
    assert M % tm == 0, (M, tm)

    if vmem_limit_bytes is None:
        vmem_limit_bytes = int(min(cap - 2 * 1024 * 1024,
                                   max(32 * 1024 * 1024,
                                       int(ws_bytes(tm) * 1.25) + 8 * 1024 * 1024)))

    # ---- HBM-side prep: cast once, fuse gate/up into one DMA stream. ------
    x2d = x.reshape(M, H).astype(compute_dtype)

    nk = I // ti
    # Block-interleave so row block k = [gate rows k*ti:(k+1)*ti ;
    #                                    up   rows k*ti:(k+1)*ti].
    w_gu = jnp.concatenate(
        [w_gate.reshape(nk, ti, H).astype(compute_dtype),
         w_up.reshape(nk, ti, H).astype(compute_dtype)],
        axis=1,
    ).reshape(2 * I, H)
    w_dn = w_down.astype(compute_dtype)

    def _weight_spec(shape, index_map):
        if weight_buffer_count == 2:
            return pl.BlockSpec(shape, index_map)
        return pl.BlockSpec(shape, index_map,
                            pipeline_mode=pl.Buffered(weight_buffer_count))

    kernel = functools.partial(_qwen2_mlp_kernel, ti=ti,
                               compute_dtype=compute_dtype)

    out2d = pl.pallas_call(
        kernel,
        out_shape=jax.ShapeDtypeStruct((M, H), x.dtype),
        grid_spec=pltpu.PrefetchScalarGridSpec(
            num_scalar_prefetch=0,
            grid=(M // tm, I // ti),
            in_specs=[
                pl.BlockSpec((tm, H), lambda i, k: (i, 0)),       # x tile
                _weight_spec((2 * ti, H), lambda i, k: (k, 0)),   # fused gate/up
                _weight_spec((H, ti), lambda i, k: (0, k)),       # down slice
            ],
            out_specs=pl.BlockSpec((tm, H), lambda i, k: (i, 0)),
            scratch_shapes=[pltpu.VMEM((tm, H), jnp.float32)],
        ),
        compiler_params=pltpu.CompilerParams(
            dimension_semantics=("parallel", "arbitrary"),
            vmem_limit_bytes=vmem_limit_bytes,
        ),
    )(x2d, w_gu, w_dn)

    return out2d.reshape(B, S, H)


# --------------------------------------------------------------------------
# Pure-JAX reference (matches the PyTorch module semantics, f32)
# --------------------------------------------------------------------------
def qwen2_mlp_ref(x, w_gate, w_up, w_down):
    hp = jax.lax.Precision.HIGHEST
    g = jnp.einsum("bsh,ih->bsi", x, w_gate, precision=hp)
    u = jnp.einsum("bsh,ih->bsi", x, w_up, precision=hp)
    h = jax.nn.silu(g) * u
    return jnp.einsum("bsi,hi->bsh", h, w_down, precision=hp)


if __name__ == "__main__":
    # Small shapes that still exercise the real tiling path:
    #   M = B*S = 512 -> 2 token tiles; I = 1024 -> 2 reduction steps (ti=512).
    B, S, H, I = 2, 256, 256, 1024

    key = jax.random.PRNGKey(0)
    kx, kg, ku, kd = jax.random.split(key, 4)

    x = jax.random.normal(kx, (B, S, H), dtype=jnp.float32)
    # Deterministic synthetic weights in PyTorch nn.Linear layout (out, in).
    w_gate = jax.random.normal(kg, (I, H), dtype=jnp.float32) * 0.05
    w_up   = jax.random.normal(ku, (I, H), dtype=jnp.float32) * 0.05
    w_down = jax.random.normal(kd, (H, I), dtype=jnp.float32) * 0.05

    ref = qwen2_mlp_ref(x, w_gate, w_up, w_down)
    scale = float(jnp.max(jnp.abs(ref)))

    # f32-compute path: exercises the tiled accumulation without bf16 noise.
    out_f32 = jax.block_until_ready(
        qwen2_mlp(x, w_gate, w_up, w_down, compute_dtype=jnp.float32))
    assert out_f32.shape == (B, S, H)
    err_f32 = float(jnp.max(jnp.abs(out_f32 - ref)))
    assert err_f32 <= 0.05 * scale + 1e-3, (err_f32, scale)

    # Default production path: bf16 weights/activations, f32 accumulation.
    out = jax.block_until_ready(qwen2_mlp(x, w_gate, w_up, w_down))
    assert out.shape == (B, S, H)
    err_bf16 = float(jnp.max(jnp.abs(out - ref)))
    assert err_bf16 <= 0.05 * scale + 1e-3, (err_bf16, scale)

    print("KERNEL_OK")
</pallas_src>

<mosaic_0001>
module attributes {stable_mosaic.version = 11 : i64} {
  func.func @_qwen2_mlp_kernel(%arg0: i32, %arg1: i32, %arg2: memref<256x256xf32, #tpu.memory_space<vmem>>, %arg3: memref<1024x256xf32, #tpu.memory_space<vmem>>, %arg4: memref<256x512xf32, #tpu.memory_space<vmem>>, %arg5: memref<256x256xf32, #tpu.memory_space<vmem>>, %arg6: memref<256x256xf32, #tpu.memory_space<vmem>>) attributes {dimension_semantics = [#tpu.dimension_semantics<parallel>, #tpu.dimension_semantics<arbitrary>], iteration_bounds = array<i64: 2, 2>, scalar_prefetch = 0 : i64, scratch_operands = 1 : i64, tpu.core_type = #tpu.core_type<tc>, window_params = [{transform_indices = @transform_0, window_bounds = array<i64: 256, 256>}, {transform_indices = @transform_1, window_bounds = array<i64: 1024, 256>}, {transform_indices = @transform_2, window_bounds = array<i64: 256, 512>}, {transform_indices = @transform_3, window_bounds = array<i64: 256, 256>}]} {
    %c0_i32 = arith.constant 0 : i32
    %0 = arith.cmpi eq, %arg1, %c0_i32 : i32
    %1 = arith.extui %0 : i1 to i32
    %c0_i32_0 = arith.constant 0 : i32
    %2 = arith.cmpi ne, %1, %c0_i32_0 : i32
    scf.if %2 {
      %cst_13 = arith.constant 0.000000e+00 : f32
      %23 = vector.broadcast %cst_13 : f32 to vector<256x256xf32>
      %c0_14 = arith.constant 0 : index
      %c0_15 = arith.constant 0 : index
      %24 = vector.load %arg6[%c0_14, %c0_15] : memref<256x256xf32, #tpu.memory_space<vmem>>, vector<256x256xf32>
      tpu.vector_store %arg6[%c0_14, %c0_15], %23 {strides = array<i32>} : memref<256x256xf32, #tpu.memory_space<vmem>>, vector<256x256xf32>,
    } else {
    }
    %c0 = arith.constant 0 : index
    %c0_1 = arith.constant 0 : index
    %3 = vector.load %arg2[%c0, %c0_1] : memref<256x256xf32, #tpu.memory_space<vmem>>, vector<256x256xf32>
    %c0_2 = arith.constant 0 : index
    %c0_3 = arith.constant 0 : index
    %4 = vector.load %arg3[%c0_2, %c0_3] : memref<1024x256xf32, #tpu.memory_space<vmem>>, vector<1024x256xf32>
    %c0_4 = arith.constant 0 : index
    %c0_5 = arith.constant 0 : index
    %5 = vector.load %arg4[%c0_4, %c0_5] : memref<256x512xf32, #tpu.memory_space<vmem>>, vector<256x512xf32>
    %cst = arith.constant dense<0.000000e+00> : vector<256x1024xf32>
    %6 = tpu.matmul %3, %4, %cst {dimension_numbers = #tpu.dot_dimension_numbers<[1], [1], [0], [0], [0, 0, 1, 0], [], []>} : vector<256x256xf32>, vector<1024x256xf32>, vector<256x1024xf32> -> vector<256x1024xf32>
    %7 = vector.extract_strided_slice %6 {offsets = [0, 0], sizes = [256, 512], strides = [1, 1]} : vector<256x1024xf32> to vector<256x512xf32>
    %8 = vector.extract_strided_slice %6 {offsets = [0, 512], sizes = [256, 512], strides = [1, 1]} : vector<256x1024xf32> to vector<256x512xf32>
    %9 = arith.negf %7 : vector<256x512xf32>
    %10 = math.exp %9 : vector<256x512xf32>
    %cst_6 = arith.constant 1.000000e+00 : f32
    %11 = vector.broadcast %cst_6 : f32 to vector<256x512xf32>
    %12 = arith.addf %11, %10 : vector<256x512xf32>
    %13 = arith.divf %11, %12 : vector<256x512xf32>
    %14 = arith.mulf %7, %13 : vector<256x512xf32>
    %15 = arith.mulf %14, %8 : vector<256x512xf32>
    %c0_7 = arith.constant 0 : index
    %c0_8 = arith.constant 0 : index
    %16 = vector.load %arg6[%c0_7, %c0_8] : memref<256x256xf32, #tpu.memory_space<vmem>>, vector<256x256xf32>
    %cst_9 = arith.constant dense<0.000000e+00> : vector<256x256xf32>
    %17 = tpu.matmul %15, %5, %cst_9 {dimension_numbers = #tpu.dot_dimension_numbers<[1], [1], [0], [0], [0, 0, 1, 0], [], []>} : vector<256x512xf32>, vector<256x512xf32>, vector<256x256xf32> -> vector<256x256xf32>
    %18 = arith.addf %16, %17 : vector<256x256xf32>
    %c0_10 = arith.constant 0 : index
    %c0_11 = arith.constant 0 : index
    %19 = vector.load %arg6[%c0_10, %c0_11] : memref<256x256xf32, #tpu.memory_space<vmem>>, vector<256x256xf32>
    tpu.vector_store %arg6[%c0_10, %c0_11], %18 {strides = array<i32>} : memref<256x256xf32, #tpu.memory_space<vmem>>, vector<256x256xf32>,
    %c1_i32 = arith.constant 1 : i32
    %20 = arith.cmpi eq, %arg1, %c1_i32 : i32
    %21 = arith.extui %20 : i1 to i32
    %c0_i32_12 = arith.constant 0 : i32
    %22 = arith.cmpi ne, %21, %c0_i32_12 : i32
    scf.if %22 {
      %c0_13 = arith.constant 0 : index
      %c0_14 = arith.constant 0 : index
      %23 = vector.load %arg6[%c0_13, %c0_14] : memref<256x256xf32, #tpu.memory_space<vmem>>, vector<256x256xf32>
      %c0_15 = arith.constant 0 : index
      %c0_16 = arith.constant 0 : index
      %24 = vector.load %arg5[%c0_15, %c0_16] : memref<256x256xf32, #tpu.memory_space<vmem>>, vector<256x256xf32>
      tpu.vector_store %arg5[%c0_15, %c0_16], %23 {strides = array<i32>} : memref<256x256xf32, #tpu.memory_space<vmem>>, vector<256x256xf32>,
    } else {
    }
    return
  }
  func.func @transform_0(%arg0: i32, %arg1: i32) -> (i32, i32) {
    %c0_i32 = arith.constant 0 : i32
    %c0_i32_0 = arith.constant 0 : i32
    return %arg0, %c0_i32 : i32, i32
  }
  func.func @transform_1(%arg0: i32, %arg1: i32) -> (i32, i32) {
    %c0_i32 = arith.constant 0 : i32
    %c0_i32_0 = arith.constant 0 : i32
    return %arg1, %c0_i32 : i32, i32
  }
  func.func @transform_2(%arg0: i32, %arg1: i32) -> (i32, i32) {
    %c0_i32 = arith.constant 0 : i32
    %c0_i32_0 = arith.constant 0 : i32
    return %c0_i32, %arg1 : i32, i32
  }
  func.func @transform_3(%arg0: i32, %arg1: i32) -> (i32, i32) {
    %c0_i32 = arith.constant 0 : i32
    %c0_i32_0 = arith.constant 0 : i32
    return %arg0, %c0_i32 : i32, i32
  }
}

</mosaic_0001>

<bundles_post_ra>
// kernel: tpu_custom_call.1
= control target key start
LH: loop header
LB: loop body
LE: loop exit
PB: predicated region body
PF: predicated region fallthrough
CT: control target
= control target key end

     0   :  { %s7416_s0 = inlined_call_operand.hbm [shape: f32[512,256], index: 0, kind: input, shape index: {}]   ;;  %s7417_s1 = inlined_call_operand.hbm [shape: f32[2048,256], index: 1, kind: input, shape index: {}]   ;;  %s7418_s2 = inlined_call_operand.hbm [shape: f32[256,1024], index: 2, kind: input, shape index: {}]   ;;  %s7419_s3 = inlined_call_operand.hbm [shape: f32[512,256], index: 3, kind: output, shape index: {}]  }
   0x1   :  { %7469 = sst [smem:[#allocation44_spill]] %s7417_s1 }
   0x2   :  { %7470 = sst [smem:[#allocation45_spill]] %s7419_s3 }
   0x3   :  { %8 = vsyncpa [#allocation4], 0 }
   0x4   :  { %10 = vsyncpa [#allocation4 + $0x1], 0 }
   0x5   :  { %11 = vsyncpa [#allocation7], 0 }
   0x6   :  { %13 = vsyncpa [#allocation7 + $0x1], 0 }
   0x7   :  { %14 = vsyncpa [#allocation5], 0 }
   0x8   :  { %16 = vsyncpa [#allocation5 + $0x1], 0  ;;  %s5389_s12 = smov 0   ;;  %s5391_s13 = smov 0  }
   0x9   :  { %s5393_s14 = smov 0   ;;  %s5395_s15 = smov 0  }
   0xa   :  { %s5397_s16 = smov 0   ;;  %s5399_s17 = smov 0  }
   0xb   :  { %s5401_s18 = smov 0   ;;  %s5403_s19 = smov 0  }
   0xc   :  { %s5405_s20 = smov 0   ;;  %s5407_s21 = smov 0  }
   0xd   :  { %s5409_s22 = smov 0  }
   0xe LB: > { %7471 = sst [smem:[#allocation13_spill]] %s5323_s14  ;;  %s5443_s23 = sadd.s32 4294967295, %s5355_s22   ;;  %s5355_s22 = sphi %s5409_s22, %s22_s22   ;;  %s5351_s21 = sphi %s5407_s21, %s7576_s21   ;;  %s5347_s20 = sphi %s5405_s20, %s7575_s20   ;;  %s5343_s19 = sphi %s5403_s19, %s7574_s19   ;;  %s5339_s18 = sphi %s5401_s18, %s7573_s18   ;;  %s5335_s17 = sphi %s5399_s17, %s7572_s17   ;;  %s5331_s16 = sphi %s5397_s16, %s7580_s16   ;;  %s5327_s15 = sphi %s5395_s15, %s7579_s15   ;;  %s5323_s14 = sphi %s5393_s14, %s7570_s14   ;;  %s5319_s13 = sphi %s5391_s13, %s7578_s13   ;;  %s5315_s12 = sphi %s5389_s12, %s7577_s12  }
   0xf   : > { %7472 = sst [smem:[#allocation14_spill]] %s5327_s15  ;;  %s31_s24 = sadd.s32 1, %s5347_s20 }
  0x10   : > { %7473 = sst [smem:[#allocation15_spill]] %s5335_s17  ;;  %p5446_p0 = scmp.ge.s32.totalorder %s31_s24, 2 }
  0x11   : > { %7474 = sst [smem:[#allocation16_spill]] %s5347_s20  ;;  %p7423_p1 = scmp.eq.s32.totalorder %s5355_s22, 0 }
  0x12   : > { %7475 = sst [smem:[#allocation17_spill]] %s5351_s21  ;;  %p7422_p2 = scmp.eq.s32.totalorder %s5443_s23, 0 }
  0x13   : > { %s67_s26 = sadd.s32 1, %s5323_s14  ;;  %s7582_s24 = smov (%p5446_p0, %s31_s24), 0 }
  0x14   : > { %7477 = sst [smem:[#allocation18_spill]] %s7582_s24  ;;  %p74_p3 = scmp.ne.s32.totalorder %s5323_s14, %s5319_s13 }
  0x15   : > { %p80_p4 = scmp.ne.s32.totalorder %s5319_s13, %s5315_s12  ;;  %s64_s27 = ssub.s32 %s5347_s20, %s7582_s24 }
  0x16   : > { %p65_p5 = scmp.eq.s32.totalorder %s64_s27, 0  ;;  %p76_p6 = por %p74_p3, %p7423_p1 }
  0x17   : > { %p5466_p7 = por %p80_p4, %p7422_p2  ;;  %p7421_p8 = scmp.lt.s32.totalorder %s5355_s22, 4 }
  0x18   : > { %s5472_s29 = scalar_select %p65_p5, %s5323_s14, %s67_s26  }
  0x19   : > { %s7478_s28 = scalar_select %p5466_p7, 1, 0 }
  0x1a   : > { %7479 = sst [smem:[#allocation19_spill]] %s5472_s29  ;;  %s178_s30 = sand.u32 1, %s5355_s22  }
  0x1b   : > { %s180_s4 = sand.u32 1, %s5323_s14   ;;  %s3991_s6 = sshll.u32 %s5347_s20, 15 }
  0x1c   : > { %s3840_s5 = sshll.u32 %s180_s4, 11  ;;  %s7480_s1 = sld [smem:[#allocation44_spill]] }
  0x1d   : > { %s182_s10 = scalar_lea.vmem [#allocation6], %s3840_s5  ;;  %p5486_p9 = pnand %p7421_p8, %p76_p6 }
  0x1e   : > { %s190_s11 = sshll.u32 %s182_s10, 4  ;;  %s5490_s26 = sshll.u32 %s180_s4, 10  ;;  %s5482_s11 = int_to_ptr.vmem [resolvable:$true] %s190_s11 }
  0x1f   : > { %s5493_s27 = scalar_lea.sflag [#allocation7], %s178_s30  ;;  %p7434_p12 = pneg %p5486_p9 }
  0x22   : > { %s5480_s9 = scalar_lea.hbm %s7480_s1, %s3991_s6  ;;  %s5144_s8 = scalar_lea.hbm %s7480_s1, 65536 }
  0x23   : > { %s5139_s6 = scalar_lea.hbm %s5480_s9, 32768  ;;  %p5145_p4 = scmp.lt.u32.totalorder %s5480_s9, %s7480_s1 }
  0x24   : > { %p5140_p11 = scmp.ne.s32.totalorder %s5480_s9, %s5139_s6  ;;  %p5146_p5 = scmp.lt.u32.totalorder %s5144_s8, %s5139_s6 }
  0x25   : > { %p5148_p8 = scmp.lt.u32.totalorder %s5139_s6, %s5480_s9 }
  0x26   : > { %p5142_p13 = pnand %p7434_p12, %p5140_p11  ;;  %p5147_p6 = por %p5146_p5, %p5145_p4 }
  0x28   : > { %p5143_p3 = pneg %p5142_p13  ;;  %p5149_p2 = por %p5148_p8, %p5147_p6 }
  0x2a   : > { %p5150_p1 = pnand %p5149_p2, %p5143_p3 }
  0x2c   : > { %5153 = shalt.err (!%p5150_p1)
}
  0x2d   : > { %s5154_s30 = scalar_lea.vmem %s5482_s11, 32768  ;;  %s5357_s4 = smov [#allocation6]  }
  0x2e   : > { %p5155_p11 = scmp.ne.s32.totalorder %s5482_s11, %s5154_s30  ;;  %s5159_s5 = sshll.u32 %s5357_s4, 4  ;;  %s5160_s5 = int_to_ptr.vmem [resolvable:$false] %s5159_s5 }
  0x2f   : > { %s5161_s24 = scalar_lea.vmem %s5160_s5, 65536  ;;  %p5162_p7 = scmp.lt.s32.totalorder %s5482_s11, %s5160_s5 }
  0x30   : > { %p5157_p13 = pnand %p5155_p11, %p7434_p12  ;;  %p5163_p4 = scmp.lt.s32.totalorder %s5161_s24, %s5154_s30 }
  0x32   : > { %p5158_p10 = pneg %p5157_p13  ;;  %p5164_p5 = por %p5163_p4, %p5162_p7 }
  0x34   : > { %p5165_p8 = pnand %p5164_p5, %p5158_p10 }
  0x36   : > { %5168 = shalt.err (!%p5165_p8)
}
  0x37   : > { %s7425_s6 = smov 256   ;;  %s7426_s7 = smov 16  }
  0x38   : > { %4457 = dma.hbm_to_vmem [thread:$0]  (!%p5486_p9), %s5480_s9, 32768, %s5482_s11, %s5493_s27, %s7425_s6, %s7425_s6, %s7426_s7  }
  0x39   : > { %s204_s8 = scalar_lea.vmem [#allocation8], %s5490_s26  ;;  %p219_p1 = scmp.lt.s32.totalorder %s5355_s22, 5 }
  0x3a   : > { %s211_s10 = sshll.u32 %s204_s8, 4  ;;  %p7482_p2 = scmp.ge.s32.totalorder %s5355_s22, 1  ;;  %s5526_s10 = int_to_ptr.vmem [resolvable:$true] %s211_s10 }
  0x3b   : > { %s3833_s4 = sadd.s32 4294967294, %s5355_s22   ;;  %s34_s5 = sadd.s32 1, %s5351_s21 }
  0x3c   : > { %p5530_p7 = pnand %p7482_p2, %p219_p1  ;;  %s7584_s5 = smov (!%p5446_p0, %s34_s5), %s5351_s21 }
  0x3d   : > { %s41_s24 = sadd.s32 1, %s5335_s17  ;;  %p48_p10 = scmp.ne.s32.totalorder %s5335_s17, %s5331_s16 }
  0x3e   : > { %s7483_s30 = scalar_select %p5530_p7, 1, 0 }
  0x3f   : > { %p36_p3 = scmp.ge.s32.totalorder %s7584_s5, 2  ;;  %p54_p6 = scmp.ne.s32.totalorder %s5331_s16, %s5327_s15 }
  0x40   : > { %p7484_p11 = scmp.eq.s32.totalorder %s5355_s22, 0  ;;  %p130_p4 = scmp.eq.s32.totalorder %s5443_s23, 3 }
  0x41   : > { %s7586_s5 = smov (%p36_p3, %s7584_s5), 0  ;;  %p7487_p5 = scmp.eq.s32.totalorder %s5443_s23, 0 }
  0x42   : > { %p5546_p13 = por %p7484_p11, %p48_p10  ;;  %7486 = sst [smem:[#allocation20_spill]] %s7586_s5 }
  0x43   : > { %p5555_p8 = por %p7487_p5, %p54_p6  ;;  %p5559_p0 = por %p130_p4, %p48_p10 }
  0x44   : > { %s38_s26 = ssub.s32 %s5351_s21, %s7586_s5  ;;  %p136_p1 = scmp.eq.s32.totalorder %s3833_s4, 3 }
  0x45   : > { %s7488_s25 = scalar_select %p5555_p8, 1, 0 }
  0x46   : > { %s7489_s11 = scalar_select %p5559_p0, 1, 0 }
  0x47   : > { %p39_p2 = scmp.eq.s32.totalorder %s38_s26, 0  ;;  %s156_s8 = sand.u32 1, %s5335_s17  }
  0x48   : > { %p5566_p11 = por %p136_p1, %p54_p6  ;;  %s3836_s1 = sshll.u32 %s156_s8, 9 }
  0x49   : > { %s5571_s7 = scalar_select %p39_p2, %s5335_s17, %s41_s24  }
  0x4a   : > { %s7490_s6 = scalar_select %p5566_p11, 1, 0 }
  0x4b   : > { %7491 = sst [smem:[#allocation21_spill]] %s5571_s7  ;;  %s3989_s29 = sshll.u32 %s5351_s21, 13 }
  0x4c   : > { %s5577_s3 = scalar_lea.hbm %s7416_s0, %s3989_s29  ;;  %s160_s5 = scalar_lea.vmem [#allocation3], %s3836_s1 }
  0x4d   : > { %s168_s4 = sshll.u32 %s160_s5, 4  ;;  %p7492_p10 = scmp.lt.s32.totalorder %s5355_s22, 4  ;;  %s5587_s4 = int_to_ptr.vmem [resolvable:$true] %s168_s4 }
  0x4e   : > { %s3992_s24 = sshll.u32 %s5347_s20, 9  ;;  %s5595_s21 = scalar_lea.sflag [#allocation4], %s156_s8 }
  0x4f   : > { %p5583_p3 = pnand %p7492_p10, %p5546_p13  ;;  %s5593_s29 = scalar_lea.hbm %s7418_s2, %s3992_s24 }
  0x50   : > { %s5169_s1 = scalar_lea.hbm %s5577_s3, 8192  ;;  %s5174_s7 = scalar_lea.hbm %s7416_s0, 16384 }
  0x51   : > { %p5170_p6 = scmp.ne.s32.totalorder %s5577_s3, %s5169_s1  ;;  %p5171_p4 = pneg %p5583_p3 }
  0x52   : > { %p5175_p1 = scmp.lt.u32.totalorder %s5577_s3, %s7416_s0  ;;  %p5176_p2 = scmp.lt.u32.totalorder %s5174_s7, %s5169_s1 }
  0x53   : > { %p5172_p13 = pnand %p5171_p4, %p5170_p6  ;;  %p5178_p12 = scmp.lt.u32.totalorder %s5169_s1, %s5577_s3 }
  0x54   : > { %p5177_p10 = por %p5176_p2, %p5175_p1 }
  0x55   : > { %p5173_p5 = pneg %p5172_p13 }
  0x56   : > { %p5179_p11 = por %p5178_p12, %p5177_p10 }
  0x58   : > { %p5180_p0 = pnand %p5179_p11, %p5173_p5 }
  0x5a   : > { %5183 = shalt.err (!%p5180_p0)
}
  0x5b   : > { %s5184_s8 = scalar_lea.vmem %s5587_s4, 8192  ;;  %s5360_s24 = smov [#allocation3]  }
  0x5c   : > { %p5185_p6 = scmp.ne.s32.totalorder %s5587_s4, %s5184_s8  ;;  %s5189_s14 = sshll.u32 %s5360_s24, 4  ;;  %s5190_s14 = int_to_ptr.vmem [resolvable:$false] %s5189_s14 }
  0x5d   : > { %s5191_s17 = scalar_lea.vmem %s5190_s14, 16384  ;;  %p5192_p7 = scmp.lt.s32.totalorder %s5587_s4, %s5190_s14 }
  0x5e   : > { %p5187_p13 = pnand %p5185_p6, %p5171_p4  ;;  %p5193_p1 = scmp.lt.s32.totalorder %s5191_s17, %s5184_s8 }
  0x60   : > { %p5188_p8 = pneg %p5187_p13  ;;  %p5194_p2 = por %p5193_p1, %p5192_p7 }
  0x62   : > { %p5195_p12 = pnand %p5194_p2, %p5188_p8 }
  0x64   : > { %5198 = shalt.err (!%p5195_p12)
}
  0x65   : > { %s7494_s20 = smov 16   ;;  %s7495_s7 = smov 256  }
  0x66   : > { %4454 = dma.hbm_to_vmem [thread:$0]  (!%p5583_p3), %s5577_s3, 8192, %s5587_s4, %s5595_s21, %s7495_s7, %s7495_s7, %s7494_s20  }
  0x67   : > { %s5199_s15 = scalar_lea.hbm %s5593_s29, 16384  ;;  %p7496_p7 = pneg %p5486_p9 }
  0x68   : > { %p5200_p0 = scmp.ne.s32.totalorder %s5593_s29, %s5199_s15  ;;  %s5204_s5 = scalar_lea.hbm %s7418_s2, 32768 }
  0x69   : > { %p5205_p4 = scmp.lt.u32.totalorder %s5593_s29, %s7418_s2  ;;  %p5206_p5 = scmp.lt.u32.totalorder %s5204_s5, %s5199_s15 }
  0x6a   : > { %p5202_p8 = pnand %p5200_p0, %p7496_p7  ;;  %p5208_p6 = scmp.lt.u32.totalorder %s5199_s15, %s5593_s29 }
  0x6b   : > { %p5207_p10 = por %p5206_p5, %p5205_p4 }
  0x6c   : > { %p5203_p11 = pneg %p5202_p8 }
  0x6d   : > { %p5209_p13 = por %p5208_p6, %p5207_p10 }
  0x6f   : > { %p5210_p1 = pnand %p5209_p13, %p5203_p11 }
  0x71   : > { %5213 = shalt.err (!%p5210_p1)
}
  0x72   : > { %s5214_s3 = scalar_lea.vmem %s5526_s10, 16384  ;;  %p7497_p2 = pmov %p7496_p7 }
  0x73   : > { %p5215_p3 = scmp.ne.s32.totalorder %s5526_s10, %s5214_s3  ;;  %s5361_s21 = smov [#allocation8]  }
  0x74   : > { %s5219_s4 = sshll.u32 %s5361_s21, 4  ;;  %s5220_s4 = int_to_ptr.vmem [resolvable:$false] %s5219_s4 }
  0x75   : > { %p5217_p12 = pnand %p5215_p3, %p7497_p2  ;;  %s5221_s24 = scalar_lea.vmem %s5220_s4, 32768 }
  0x76   : > { %p5222_p7 = scmp.lt.s32.totalorder %s5526_s10, %s5220_s4  ;;  %p5223_p8 = scmp.lt.s32.totalorder %s5221_s24, %s5214_s3 }
  0x77   : > { %p5218_p0 = pneg %p5217_p12 }
  0x78   : > { %p5224_p4 = por %p5223_p8, %p5222_p7 }
  0x7a   : > { %p5225_p5 = pnand %p5224_p4, %p5218_p0 }
  0x7c   : > { %5228 = shalt.err (!%p5225_p5)
}
  0x7d   : > { %s5362_s14 = smov 1024   ;;  %s5363_s17 = smov 512  }
  0x7e   : > { %s5364_s20 = smov 32   ;;  %p7498_p11 = scmp.ne.s32.totalorder %s7483_s30, 0 }
  0x7f   : > { %4460 = dma.hbm_to_vmem [thread:$0]  (!%p5486_p9), %s5593_s29, 16384, %s5526_s10, %s5493_s27, %s5362_s14, %s5363_s17, %s5364_s20  }
  0x80   : > { %223 = sbr.rel (%p7498_p11) target bundleno = 1157 (0x485), region = 32 }
  0x87   : > { %s5653_s7 = sand.u32 1, %s5331_s16   ;;  %p7499_p10 = scmp.ne.s32.totalorder %s7488_s25, 0 }
  0x88   : > { %s3848_s15 = sshll.u32 %s5653_s7, 9  ;;  %s226_s1 = scalar_lea.sflag [#allocation4], %s5653_s7 }
  0x89   : > { %s5657_s26 = scalar_lea.vmem [#allocation3], %s3848_s15 }
  0x8a   : > { %5302 = dma.done.wait (%p7499_p10), %s226_s1, 8192  }
  0x8b   : > { %5304 = vsyncadd (%p7499_p10), %s226_s1, 4294959104  ;;  %s234_s12 = sand.u32 1, %s5443_s23   ;;  %s236_s27 = sand.u32 1, %s5319_s13  }
  0x8c   : > { %s3849_s10 = sshll.u32 %s236_s27, 11  ;;  %s235_s30 = scalar_lea.sflag [#allocation7], %s234_s12 }
  0x8d   : > { %s5665_s29 = scalar_lea.vmem [#allocation6], %s3849_s10  ;;  %p7500_p9 = scmp.ne.s32.totalorder %s7478_s28, 0 }
  0x8f   : > { %5306 = dma.done.wait (%p7500_p9), %s235_s30, 49152  }
  0x90   : > { %5308 = vsyncadd (%p7500_p9), %s235_s30, 4294918144  ;;  %s3850_s5 = sshll.u32 %s236_s27, 10  ;;  %s5673_s8 = scalar_lea.vmem [#allocation9], %s3848_s15 }
  0x91   : > { %s5671_s9 = scalar_lea.vmem [#allocation8], %s3850_s5  ;;  %p3852_p6 = scmp.ne.s32.totalorder %s5339_s18, 0 }
  0x92   : > { %v5365_v0 = vmov (!%p3852_p6), 0.0  }
  0x93   : > { %287 = sbr.rel (%p3852_p6) target bundleno = 179 (0xb3), region = 48  ;;  %288 = vst [vmem:[#allocation2] sm:$0xff] (!%p3852_p6), %v5365_v0  ;;  %289 = vst [vmem:[#allocation2 + $0x8] sm:$0xff] (!%p3852_p6), %v5365_v0 }
  0x94   : > { %290 = vst [vmem:[#allocation2 + $0x10] sm:$0xff] (!%p3852_p6), %v5365_v0  ;;  %291 = vst [vmem:[#allocation2 + $0x18] sm:$0xff] (!%p3852_p6), %v5365_v0 }
  0x95   : > { %292 = vst [vmem:[#allocation2 + $0x20] sm:$0xff] (!%p3852_p6), %v5365_v0  ;;  %293 = vst [vmem:[#allocation2 + $0x28] sm:$0xff] (!%p3852_p6), %v5365_v0 }
  0x96   : > { %294 = vst [vmem:[#allocation2 + $0x30] sm:$0xff] (!%p3852_p6), %v5365_v0  ;;  %295 = vst [vmem:[#allocation2 + $0x38] sm:$0xff] (!%p3852_p6), %v5365_v0 }
  0x97   : > { %296 = vst [vmem:[#allocation2 + $0x40] sm:$0xff] (!%p3852_p6), %v5365_v0  ;;  %297 = vst [vmem:[#allocation2 + $0x48] sm:$0xff] (!%p3852_p6), %v5365_v0 }
  0x98   : > { %298 = vst [vmem:[#allocation2 + $0x50] sm:$0xff] (!%p3852_p6), %v5365_v0  ;;  %299 = vst [vmem:[#allocation2 + $0x58] sm:$0xff] (!%p3852_p6), %v5365_v0 }
  0x99   : > { %300 = vst [vmem:[#allocation2 + $0x60] sm:$0xff] (!%p3852_p6), %v5365_v0  ;;  %301 = vst [vmem:[#allocation2 + $0x68] sm:$0xff] (!%p3852_p6), %v5365_v0 }
  0x9a   : > { %302 = vst [vmem:[#allocation2 + $0x70] sm:$0xff] %v5365_v0  ;;  %303 = vst [vmem:[#allocation2 + $0x78] sm:$0xff] %v5365_v0 }
  0x9b   : > { %304 = vst [vmem:[#allocation2 + $0x80] sm:$0xff] %v5365_v0  ;;  %305 = vst [vmem:[#allocation2 + $0x88] sm:$0xff] %v5365_v0 }
  0x9c   : > { %306 = vst [vmem:[#allocation2 + $0x90] sm:$0xff] %v5365_v0  ;;  %307 = vst [vmem:[#allocation2 + $0x98] sm:$0xff] %v5365_v0 }
  0x9d   : > { %308 = vst [vmem:[#allocation2 + $0xa0] sm:$0xff] %v5365_v0  ;;  %309 = vst [vmem:[#allocation2 + $0xa8] sm:$0xff] %v5365_v0 }
  0x9e   : > { %310 = vst [vmem:[#allocation2 + $0xb0] sm:$0xff] %v5365_v0  ;;  %311 = vst [vmem:[#allocation2 + $0xb8] sm:$0xff] %v5365_v0 }
  0x9f   : > { %312 = vst [vmem:[#allocation2 + $0xc0] sm:$0xff] %v5365_v0  ;;  %313 = vst [vmem:[#allocation2 + $0xc8] sm:$0xff] %v5365_v0 }
  0xa0   : > { %314 = vst [vmem:[#allocation2 + $0xd0] sm:$0xff] %v5365_v0  ;;  %315 = vst [vmem:[#allocation2 + $0xd8] sm:$0xff] %v5365_v0 }
  0xa1   : > { %316 = vst [vmem:[#allocation2 + $0xe0] sm:$0xff] %v5365_v0  ;;  %317 = vst [vmem:[#allocation2 + $0xe8] sm:$0xff] %v5365_v0 }
  0xa2   : > { %318 = vst [vmem:[#allocation2 + $0xf0] sm:$0xff] %v5365_v0  ;;  %319 = vst [vmem:[#allocation2 + $0xf8] sm:$0xff] %v5365_v0 }
  0xa3   : > { %320 = vst [vmem:[#allocation2 + $0x100] sm:$0xff] %v5365_v0  ;;  %321 = vst [vmem:[#allocation2 + $0x108] sm:$0xff] %v5365_v0 }
  0xa4   : > { %322 = vst [vmem:[#allocation2 + $0x110] sm:$0xff] %v5365_v0  ;;  %323 = vst [vmem:[#allocation2 + $0x118] sm:$0xff] %v5365_v0 }
  0xa5   : > { %324 = vst [vmem:[#allocation2 + $0x120] sm:$0xff] %v5365_v0  ;;  %325 = vst [vmem:[#allocation2 + $0x128] sm:$0xff] %v5365_v0 }
  0xa6   : > { %326 = vst [vmem:[#allocation2 + $0x130] sm:$0xff] %v5365_v0  ;;  %327 = vst [vmem:[#allocation2 + $0x138] sm:$0xff] %v5365_v0 }
  0xa7   : > { %328 = vst [vmem:[#allocation2 + $0x140] sm:$0xff] %v5365_v0  ;;  %329 = vst [vmem:[#allocation2 + $0x148] sm:$0xff] %v5365_v0 }
  0xa8   : > { %330 = vst [vmem:[#allocation2 + $0x150] sm:$0xff] %v5365_v0  ;;  %331 = vst [vmem:[#allocation2 + $0x158] sm:$0xff] %v5365_v0 }
  0xa9   : > { %332 = vst [vmem:[#allocation2 + $0x160] sm:$0xff] %v5365_v0  ;;  %333 = vst [vmem:[#allocation2 + $0x168] sm:$0xff] %v5365_v0 }
  0xaa   : > { %334 = vst [vmem:[#allocation2 + $0x170] sm:$0xff] %v5365_v0  ;;  %335 = vst [vmem:[#allocation2 + $0x178] sm:$0xff] %v5365_v0 }
  0xab   : > { %336 = vst [vmem:[#allocation2 + $0x180] sm:$0xff] %v5365_v0  ;;  %337 = vst [vmem:[#allocation2 + $0x188] sm:$0xff] %v5365_v0 }
  0xac   : > { %338 = vst [vmem:[#allocation2 + $0x190] sm:$0xff] %v5365_v0  ;;  %339 = vst [vmem:[#allocation2 + $0x198] sm:$0xff] %v5365_v0 }
  0xad   : > { %340 = vst [vmem:[#allocation2 + $0x1a0] sm:$0xff] %v5365_v0  ;;  %341 = vst [vmem:[#allocation2 + $0x1a8] sm:$0xff] %v5365_v0 }
  0xae   : > { %342 = vst [vmem:[#allocation2 + $0x1b0] sm:$0xff] %v5365_v0  ;;  %343 = vst [vmem:[#allocation2 + $0x1b8] sm:$0xff] %v5365_v0 }
  0xaf   : > { %344 = vst [vmem:[#allocation2 + $0x1c0] sm:$0xff] %v5365_v0  ;;  %345 = vst [vmem:[#allocation2 + $0x1c8] sm:$0xff] %v5365_v0 }
  0xb0   : > { %346 = vst [vmem:[#allocation2 + $0x1d0] sm:$0xff] %v5365_v0  ;;  %347 = vst [vmem:[#allocation2 + $0x1d8] sm:$0xff] %v5365_v0 }
  0xb1   : > { %348 = vst [vmem:[#allocation2 + $0x1e0] sm:$0xff] %v5365_v0  ;;  %349 = vst [vmem:[#allocation2 + $0x1e8] sm:$0xff] %v5365_v0 }
  0xb2   : > { %350 = vst [vmem:[#allocation2 + $0x1f0] sm:$0xff] %v5365_v0  ;;  %351 = vst [vmem:[#allocation2 + $0x1f8] sm:$0xff] %v5365_v0 }
  0xb3 PF: > { %v417_v1 = vld [vmem:[%s5665_s29 + $0x8] sm:$0xff]  ;;  %v419_v2 = vld [vmem:[%s5665_s29 + $0x18] sm:$0xff]  ;;  %v416_v3 = vld [vmem:[%s5665_s29] sm:$0xff]  ;;  %p3981_p13 = scmp.ne.s32.totalorder %s5339_s18, 1 }
  0xb4   : > { %v3995_v4 = vpack.c.bf16 %v419_v2, %v417_v1  ;;  %v418_v5 = vld [vmem:[%s5665_s29 + $0x10] sm:$0xff]  ;;  %v421_v6 = vld [vmem:[%s5665_s29 + $0x28] sm:$0xff]  ;;  %v423_v7 = vld [vmem:[%s5665_s29 + $0x38] sm:$0xff] }
  0xb5   : > { %v3997_v8 = vpack.c.bf16 %v418_v5, %v416_v3  ;;  %v3999_v9 = vpack.c.bf16 %v423_v7, %v421_v6  ;;  %v420_v10 = vld [vmem:[%s5665_s29 + $0x20] sm:$0xff]  ;;  %v422_v11 = vld [vmem:[%s5665_s29 + $0x30] sm:$0xff]  ;;  %v425_v12 = vld [vmem:[%s5665_s29 + $0x48] sm:$0xff] }
  0xb6   : > { %3996 = vmatprep.subr.bf16.mxu1 %v3995_v4  ;;  %v545_v13 = vld [vmem:[%s5665_s29 + $0x408] sm:$0xff]  ;;  %v547_v14 = vld [vmem:[%s5665_s29 + $0x418] sm:$0xff]  ;;  %v544_v17 = vld [vmem:[%s5665_s29 + $0x400] sm:$0xff]  ;;  %v4001_v20 = vpack.c.bf16 %v422_v11, %v420_v10 }
  0xb7   : > { %3998 = vmatpush1.bf16.xpose.msra.mxu1 %v3997_v8  ;;  %v427_v15 = vld [vmem:[%s5665_s29 + $0x58] sm:$0xff]  ;;  %v4123_v16 = vpack.c.bf16 %v547_v14, %v545_v13  ;;  %v546_v18 = vld [vmem:[%s5665_s29 + $0x410] sm:$0xff]  ;;  %v549_v21 = vld [vmem:[%s5665_s29 + $0x428] sm:$0xff] }
  0xb8   : > { %4000 = vmatprep.subr.bf16.mxu1 %v3999_v9  ;;  %v4125_v19 = vpack.c.bf16 %v546_v18, %v544_v17  ;;  %v551_v22 = vld [vmem:[%s5665_s29 + $0x438] sm:$0xff]  ;;  %v4003_v23 = vpack.c.bf16 %v427_v15, %v425_v12  ;;  %v548_v25 = vld [vmem:[%s5665_s29 + $0x420] sm:$0xff]  ;;  %v550_v26 = vld [vmem:[%s5665_s29 + $0x430] sm:$0xff] }
  0xb9   : > { %4124 = vmatprep.subr.bf16.mxu0 %v4123_v16  ;;  %v4127_v24 = vpack.c.bf16 %v551_v22, %v549_v21  ;;  %v553_v27 = vld [vmem:[%s5665_s29 + $0x448] sm:$0xff]  ;;  %v555_v28 = vld [vmem:[%s5665_s29 + $0x458] sm:$0xff]  ;;  %v424_v29 = vld [vmem:[%s5665_s29 + $0x40] sm:$0xff]  ;;  %v4129_v31 = vpack.c.bf16 %v550_v26, %v548_v25 }
  0xba   : > { %4126 = vmatpush1.bf16.xpose.msra.mxu0 %v4125_v19  ;;  %v426_v30 = vld [vmem:[%s5665_s29 + $0x50] sm:$0xff]  ;;  %v429_v32 = vld [vmem:[%s5665_s29 + $0x68] sm:$0xff]  ;;  %v431_v33 = vld [vmem:[%s5665_s29 + $0x78] sm:$0xff]  ;;  %v4131_v34 = vpack.c.bf16 %v555_v28, %v553_v27 }
  0xbb   : > { %4128 = vmatprep.subr.bf16.mxu0 %v4127_v24  ;;  %v4005_v35 = vpack.c.bf16 %v426_v30, %v424_v29  ;;  %v4007_v36 = vpack.c.bf16 %v431_v33, %v429_v32  ;;  %v552_v37 = vld [vmem:[%s5665_s29 + $0x440] sm:$0xff]  ;;  %v554_v38 = vld [vmem:[%s5665_s29 + $0x450] sm:$0xff]  ;;  %v557_v39 = vld [vmem:[%s5665_s29 + $0x468] sm:$0xff] }
  0xbc   : > { %v559_v40 = vld [vmem:[%s5665_s29 + $0x478] sm:$0xff]  ;;  %v428_v41 = vld [vmem:[%s5665_s29 + $0x60] sm:$0xff]  ;;  %v430_v42 = vld [vmem:[%s5665_s29 + $0x70] sm:$0xff]  ;;  %v4133_v43 = vpack.c.bf16 %v554_v38, %v552_v37 }
  0xbd   : > { %v433_v44 = vld [vmem:[%s5665_s29 + $0x88] sm:$0xff]  ;;  %v435_v45 = vld [vmem:[%s5665_s29 + $0x98] sm:$0xff]  ;;  %v4135_v46 = vpack.c.bf16 %v559_v40, %v557_v39  ;;  %v4009_v47 = vpack.c.bf16 %v430_v42, %v428_v41  ;;  %v556_v49 = vld [vmem:[%s5665_s29 + $0x460] sm:$0xff] }
  0xbe   : > { %v4011_v48 = vpack.c.bf16 %v435_v45, %v433_v44  ;;  %v558_v50 = vld [vmem:[%s5665_s29 + $0x470] sm:$0xff]  ;;  %v561_v51 = vld [vmem:[%s5665_s29 + $0x488] sm:$0xff]  ;;  %v563_v52 = vld [vmem:[%s5665_s29 + $0x498] sm:$0xff] }
  0xbf   : > { %4002 = vmatpush1.bf16.xpose.msra.mxu1 %v4001_v20  ;;  %v432_v53 = vld [vmem:[%s5665_s29 + $0x80] sm:$0xff]  ;;  %v434_v54 = vld [vmem:[%s5665_s29 + $0x90] sm:$0xff]  ;;  %v4137_v55 = vpack.c.bf16 %v558_v50, %v556_v49  ;;  %v437_v56 = vld [vmem:[%s5665_s29 + $0xa8] sm:$0xff]  ;;  %v4139_v58 = vpack.c.bf16 %v563_v52, %v561_v51 }
  0xc0   : > { %4004 = vmatprep.subr.bf16.mxu1 %v4003_v23  ;;  %v439_v57 = vld [vmem:[%s5665_s29 + $0xb8] sm:$0xff]  ;;  %v4013_v59 = vpack.c.bf16 %v434_v54, %v432_v53  ;;  %v560_v61 = vld [vmem:[%s5665_s29 + $0x480] sm:$0xff]  ;;  %v562_v62 = vld [vmem:[%s5665_s29 + $0x490] sm:$0xff] }
  0xc1   : > { %v4015_v60 = vpack.c.bf16 %v439_v57, %v437_v56  ;;  %v565_v63 = vld [vmem:[%s5665_s29 + $0x4a8] sm:$0xff]  ;;  %v567_v0 = vld [vmem:[%s5665_s29 + $0x4b8] sm:$0xff]  ;;  %v436_v1 = vld [vmem:[%s5665_s29 + $0xa0] sm:$0xff]  ;;  %v4141_v3 = vpack.c.bf16 %v562_v62, %v560_v61 }
  0xc2   : > { %4130 = vmatpush1.bf16.xpose.msra.mxu0 %v4129_v31  ;;  %v438_v2 = vld [vmem:[%s5665_s29 + $0xb0] sm:$0xff]  ;;  %v441_v4 = vld [vmem:[%s5665_s29 + $0xc8] sm:$0xff]  ;;  %v443_v5 = vld [vmem:[%s5665_s29 + $0xd8] sm:$0xff]  ;;  %v4143_v6 = vpack.c.bf16 %v567_v0, %v565_v63 }
  0xc3   : > { %4132 = vmatprep.subr.bf16.mxu0 %v4131_v34  ;;  %v353_v7 = vld [vmem:[%s5657_s26 + $0x8] sm:$0xff]  ;;  %v4017_v8 = vpack.c.bf16 %v438_v2, %v436_v1  ;;  %v4019_v9 = vpack.c.bf16 %v443_v5, %v441_v4  ;;  %v564_v10 = vld [vmem:[%s5665_s29 + $0x4a0] sm:$0xff]  ;;  %v566_v11 = vld [vmem:[%s5665_s29 + $0x4b0] sm:$0xff] }
  0xc4   : > { %864 = vmatprep.mubr.f32.mxu1 %v353_v7  ;;  %1378 = vmatprep.mubr.f32.mxu0 %v353_v7  ;;  %v569_v12 = vld [vmem:[%s5665_s29 + $0x4c8] sm:$0xff]  ;;  %v571_v13 = vld [vmem:[%s5665_s29 + $0x4d8] sm:$0xff]  ;;  %v440_v14 = vld [vmem:[%s5665_s29 + $0xc0] sm:$0xff]  ;;  %v4145_v16 = vpack.c.bf16 %v566_v11, %v564_v10 }
  0xc5   : > { %v442_v15 = vld [vmem:[%s5665_s29 + $0xd0] sm:$0xff]  ;;  %v445_v17 = vld [vmem:[%s5665_s29 + $0xe8] sm:$0xff]  ;;  %v447_v18 = vld [vmem:[%s5665_s29 + $0xf8] sm:$0xff]  ;;  %v4147_v19 = vpack.c.bf16 %v571_v13, %v569_v12 }
  0xc6   : > { %v4021_v20 = vpack.c.bf16 %v442_v15, %v440_v14  ;;  %v4023_v21 = vpack.c.bf16 %v447_v18, %v445_v17  ;;  %v568_v22 = vld [vmem:[%s5665_s29 + $0x4c0] sm:$0xff]  ;;  %v570_v23 = vld [vmem:[%s5665_s29 + $0x4d0] sm:$0xff]  ;;  %v573_v24 = vld [vmem:[%s5665_s29 + $0x4e8] sm:$0xff] }
  0xc7   : > { %4006 = vmatpush1.bf16.xpose.msra.mxu1 %v4005_v35  ;;  %v575_v25 = vld [vmem:[%s5665_s29 + $0x4f8] sm:$0xff]  ;;  %v444_v26 = vld [vmem:[%s5665_s29 + $0xe0] sm:$0xff]  ;;  %v446_v27 = vld [vmem:[%s5665_s29 + $0xf0] sm:$0xff]  ;;  %v4149_v28 = vpack.c.bf16 %v570_v23, %v568_v22 }
  0xc8   : > { %4008 = vmatprep.subr.bf16.mxu1 %v4007_v36  ;;  %v449_v29 = vld [vmem:[%s5665_s29 + $0x108] sm:$0xff]  ;;  %v451_v30 = vld [vmem:[%s5665_s29 + $0x118] sm:$0xff]  ;;  %v4151_v31 = vpack.c.bf16 %v575_v25, %v573_v24  ;;  %v4025_v32 = vpack.c.bf16 %v446_v27, %v444_v26  ;;  %v572_v34 = vld [vmem:[%s5665_s29 + $0x4e0] sm:$0xff] }
  0xc9   : > { %v4027_v33 = vpack.c.bf16 %v451_v30, %v449_v29  ;;  %v574_v35 = vld [vmem:[%s5665_s29 + $0x4f0] sm:$0xff]  ;;  %v577_v36 = vld [vmem:[%s5665_s29 + $0x508] sm:$0xff]  ;;  %v579_v37 = vld [vmem:[%s5665_s29 + $0x518] sm:$0xff] }
  0xca   : > { %4134 = vmatpush1.bf16.xpose.msra.mxu0 %v4133_v43  ;;  %v448_v38 = vld [vmem:[%s5665_s29 + $0x100] sm:$0xff]  ;;  %v450_v39 = vld [vmem:[%s5665_s29 + $0x110] sm:$0xff]  ;;  %v4153_v40 = vpack.c.bf16 %v574_v35, %v572_v34  ;;  %v453_v41 = vld [vmem:[%s5665_s29 + $0x128] sm:$0xff]  ;;  %v4155_v43 = vpack.c.bf16 %v579_v37, %v577_v36 }
  0xcb   : > { %4136 = vmatprep.subr.bf16.mxu0 %v4135_v46  ;;  %v455_v42 = vld [vmem:[%s5665_s29 + $0x138] sm:$0xff]  ;;  %v4029_v44 = vpack.c.bf16 %v450_v39, %v448_v38  ;;  %v576_v46 = vld [vmem:[%s5665_s29 + $0x500] sm:$0xff]  ;;  %v454_v51 = vld [vmem:[%s5665_s29 + $0x130] sm:$0xff] }
  0xcc   : > { %v4031_v45 = vpack.c.bf16 %v455_v42, %v453_v41  ;;  %v583_v49 = vld [vmem:[%s5665_s29 + $0x538] sm:$0xff]  ;;  %v452_v50 = vld [vmem:[%s5665_s29 + $0x120] sm:$0xff]  ;;  %v457_v53 = vld [vmem:[%s5665_s29 + $0x148] sm:$0xff] }
  0xcd   : > { %v459_v54 = vld [vmem:[%s5665_s29 + $0x158] sm:$0xff]  ;;  %v4033_v56 = vpack.c.bf16 %v454_v51, %v452_v50  ;;  %v456_v62 = vld [vmem:[%s5665_s29 + $0x140] sm:$0xff]  ;;  %v458_v63 = vld [vmem:[%s5665_s29 + $0x150] sm:$0xff] }
  0xce   : > { %v4035_v57 = vpack.c.bf16 %v459_v54, %v457_v53  ;;  %v587_v61 = vld [vmem:[%s5665_s29 + $0x558] sm:$0xff]  ;;  %v461_v1 = vld [vmem:[%s5665_s29 + $0x168] sm:$0xff]  ;;  %v4037_v4 = vpack.c.bf16 %v458_v63, %v456_v62  ;;  %v586_v7 = vld [vmem:[%s5665_s29 + $0x550] sm:$0xff] }
  0xcf   : > { %4010 = vmatpush1.bf16.xpose.msra.mxu1 %v4009_v47  ;;  %v578_v47 = vld [vmem:[%s5665_s29 + $0x510] sm:$0xff]  ;;  %v463_v2 = vld [vmem:[%s5665_s29 + $0x178] sm:$0xff]  ;;  %v460_v10 = vld [vmem:[%s5665_s29 + $0x160] sm:$0xff] }
  0xd0   : > { %4012 = vmatprep.subr.bf16.mxu1 %v4011_v48  ;;  %v581_v48 = vld [vmem:[%s5665_s29 + $0x528] sm:$0xff]  ;;  %v4157_v52 = vpack.c.bf16 %v578_v47, %v576_v46  ;;  %v4039_v5 = vpack.c.bf16 %v463_v2, %v461_v1  ;;  %v462_v11 = vld [vmem:[%s5665_s29 + $0x170] sm:$0xff]  ;;  %v467_v14 = vld [vmem:[%s5665_s29 + $0x198] sm:$0xff] }
  0xd1   : > { %v465_v13 = vld [vmem:[%s5665_s29 + $0x188] sm:$0xff]  ;;  %v588_v18 = vld [vmem:[%s5665_s29 + $0x560] sm:$0xff]  ;;  %v466_v23 = vld [vmem:[%s5665_s29 + $0x190] sm:$0xff] }
  0xd2   : > { %4138 = vmatpush1.bf16.xpose.msra.mxu0 %v4137_v55  ;;  %v4159_v55 = vpack.c.bf16 %v583_v49, %v581_v48  ;;  %v4043_v17 = vpack.c.bf16 %v467_v14, %v465_v13  ;;  %v464_v22 = vld [vmem:[%s5665_s29 + $0x180] sm:$0xff]  ;;  %v469_v25 = vld [vmem:[%s5665_s29 + $0x1a8] sm:$0xff]  ;;  %v471_v26 = vld [vmem:[%s5665_s29 + $0x1b8] sm:$0xff] }
  0xd3   : > { %4140 = vmatprep.subr.bf16.mxu0 %v4139_v58  ;;  %v580_v58 = vld [vmem:[%s5665_s29 + $0x520] sm:$0xff]  ;;  %v4047_v29 = vpack.c.bf16 %v471_v26, %v469_v25  ;;  %v470_v35 = vld [vmem:[%s5665_s29 + $0x1b0] sm:$0xff]  ;;  %v473_v37 = vld [vmem:[%s5665_s29 + $0x1c8] sm:$0xff] }
  0xd4   : > { %v592_v30 = vld [vmem:[%s5665_s29 + $0x580] sm:$0xff]  ;;  %v475_v38 = vld [vmem:[%s5665_s29 + $0x1d8] sm:$0xff]  ;;  %v474_v47 = vld [vmem:[%s5665_s29 + $0x1d0] sm:$0xff] }
  0xd5   : > { %v468_v34 = vld [vmem:[%s5665_s29 + $0x1a0] sm:$0xff]  ;;  %v4051_v41 = vpack.c.bf16 %v475_v38, %v473_v37  ;;  %v477_v49 = vld [vmem:[%s5665_s29 + $0x1e8] sm:$0xff]  ;;  %v479_v50 = vld [vmem:[%s5665_s29 + $0x1f8] sm:$0xff] }
  0xd6   : > { %v596_v42 = vld [vmem:[%s5665_s29 + $0x5a0] sm:$0xff]  ;;  %v4055_v53 = vpack.c.bf16 %v479_v50, %v477_v49  ;;  %v483_v62 = vld [vmem:[%s5665_s29 + $0x218] sm:$0xff]  ;;  %v489_v25 = vld [vmem:[%s5665_s29 + $0x248] sm:$0xff] }
  0xd7   : > { %4014 = vmatpush1.bf16.xpose.msra.mxu1 %v4013_v59  ;;  %v582_v59 = vld [vmem:[%s5665_s29 + $0x530] sm:$0xff]  ;;  %v472_v46 = vld [vmem:[%s5665_s29 + $0x1c0] sm:$0xff]  ;;  %v5881_v14 = vld [vmem:[%s5657_s26 + $0x18] sm:$0xff] }
  0xd8   : > { %4016 = vmatprep.subr.bf16.mxu1 %v4015_v60  ;;  %v585_v60 = vld [vmem:[%s5665_s29 + $0x548] sm:$0xff]  ;;  %v4161_v0 = vpack.c.bf16 %v582_v59, %v580_v58  ;;  %v600_v54 = vld [vmem:[%s5665_s29 + $0x5c0] sm:$0xff]  ;;  %v478_v59 = vld [vmem:[%s5665_s29 + $0x1f0] sm:$0xff] }
  0xd9   : > { %v476_v58 = vld [vmem:[%s5665_s29 + $0x1e0] sm:$0xff]  ;;  %v491_v26 = vld [vmem:[%s5665_s29 + $0x258] sm:$0xff]  ;;  %v5919_v37 = vld [vmem:[%s5657_s26 + $0x48] sm:$0xff] }
  0xda   : > { %4142 = vmatpush1.bf16.xpose.msra.mxu0 %v4141_v3  ;;  %v4163_v3 = vpack.c.bf16 %v587_v61, %v585_v60  ;;  %v481_v61 = vld [vmem:[%s5665_s29 + $0x208] sm:$0xff]  ;;  %v604_v2 = vld [vmem:[%s5665_s29 + $0x5e0] sm:$0xff]  ;;  %v5942_v50 = vld [vmem:[%s5657_s26 + $0x50] sm:$0xff] }
  0xdb   : > { %4144 = vmatprep.subr.bf16.mxu0 %v4143_v6  ;;  %v584_v6 = vld [vmem:[%s5665_s29 + $0x540] sm:$0xff]  ;;  %v4059_v1 = vpack.c.bf16 %v483_v62, %v481_v61  ;;  %v5961_v62 = vld [vmem:[%s5657_s26 + $0x78] sm:$0xff] }
  0xdc   : > { %v4165_v12 = vpack.c.bf16 %v586_v7, %v584_v6  ;;  %v480_v6 = vld [vmem:[%s5665_s29 + $0x200] sm:$0xff]  ;;  %v482_v7 = vld [vmem:[%s5665_s29 + $0x210] sm:$0xff] }
  0xdd   : > { %v4061_v13 = vpack.c.bf16 %v482_v7, %v480_v6  ;;  %v488_v38 = vld [vmem:[%s5665_s29 + $0x240] sm:$0xff]  ;;  %v498_v7 = vld [vmem:[%s5665_s29 + $0x290] sm:$0xff] }
  0xde   : > { %v692_v49 = vld [vmem:[%s5671_s9 + $0xa0] sm:$0xff] }
  0xdf   : > { %4018 = vmatpush1.bf16.xpose.msra.mxu1 %v4017_v8  ;;  %v589_v8 = vld [vmem:[%s5665_s29 + $0x568] sm:$0xff]  ;;  %v496_v6 = vld [vmem:[%s5665_s29 + $0x280] sm:$0xff] }
  0xe0   : > { %4020 = vmatprep.subr.bf16.mxu1 %v4019_v9  ;;  %v591_v9 = vld [vmem:[%s5665_s29 + $0x578] sm:$0xff] }
  0xe1   : > { %v4167_v15 = vpack.c.bf16 %v591_v9, %v589_v8  ;;  %v485_v9 = vld [vmem:[%s5665_s29 + $0x228] sm:$0xff] }
  0xe2   : > { %4146 = vmatpush1.bf16.xpose.msra.mxu0 %v4145_v16  ;;  %v4041_v16 = vpack.c.bf16 %v462_v11, %v460_v10  ;;  %v487_v10 = vld [vmem:[%s5665_s29 + $0x238] sm:$0xff] }
  0xe3   : > { %4148 = vmatprep.subr.bf16.mxu0 %v4147_v19  ;;  %v590_v19 = vld [vmem:[%s5665_s29 + $0x570] sm:$0xff] }
  0xe4   : > { %v4169_v24 = vpack.c.bf16 %v590_v19, %v588_v18  ;;  %v681_v18 = vld [vmem:[%s5671_s9 + $0x48] sm:$0xff] }
  0xe5   : > { %v685_v19 = vld [vmem:[%s5671_s9 + $0x68] sm:$0xff] }
  0xe7   : > { %4022 = vmatpush1.bf16.xpose.msra.mxu1 %v4021_v20  ;;  %v593_v20 = vld [vmem:[%s5665_s29 + $0x588] sm:$0xff] }
  0xe8   : > { %4024 = vmatprep.subr.bf16.mxu1 %v4023_v21  ;;  %v595_v21 = vld [vmem:[%s5665_s29 + $0x598] sm:$0xff] }
  0xe9   : > { %v4171_v27 = vpack.c.bf16 %v595_v21, %v593_v20  ;;  %v5890_v20 = vld [vmem:[%s5657_s26 + $0x10] sm:$0xff]  ;;  %v5893_v21 = vld [vmem:[%s5657_s26 + $0x28] sm:$0xff] }
  0xea   : > { %4150 = vmatpush1.bf16.xpose.msra.mxu0 %v4149_v28  ;;  %v4045_v28 = vpack.c.bf16 %v466_v23, %v464_v22  ;;  %v484_v22 = vld [vmem:[%s5665_s29 + $0x220] sm:$0xff]  ;;  %v486_v23 = vld [vmem:[%s5665_s29 + $0x230] sm:$0xff] }
  0xeb   : > { %4152 = vmatprep.subr.bf16.mxu0 %v4151_v31  ;;  %v594_v31 = vld [vmem:[%s5665_s29 + $0x590] sm:$0xff] }
  0xec   : > { %v4173_v36 = vpack.c.bf16 %v594_v31, %v592_v30  ;;  %v5906_v30 = vld [vmem:[%s5657_s26 + $0x38] sm:$0xff]  ;;  %v4067_v31 = vpack.c.bf16 %v491_v26, %v489_v25  ;;  %v6003_v25 = vld [vmem:[%s5657_s26 + $0xa8] sm:$0xff]  ;;  %v500_v26 = vld [vmem:[%s5665_s29 + $0x2a0] sm:$0xff] }
  0xef   : > { %4026 = vmatpush1.bf16.xpose.msra.mxu1 %v4025_v32  ;;  %v597_v32 = vld [vmem:[%s5665_s29 + $0x5a8] sm:$0xff] }
  0xf0   : > { %4028 = vmatprep.subr.bf16.mxu1 %v4027_v33  ;;  %v599_v33 = vld [vmem:[%s5665_s29 + $0x5b8] sm:$0xff] }
  0xf1   : > { %v4175_v39 = vpack.c.bf16 %v599_v33, %v597_v32  ;;  %v680_v32 = vld [vmem:[%s5671_s9 + $0x40] sm:$0xff] }
  0xf2   : > { %4154 = vmatpush1.bf16.xpose.msra.mxu0 %v4153_v40  ;;  %v4049_v40 = vpack.c.bf16 %v470_v35, %v468_v34  ;;  %v684_v33 = vld [vmem:[%s5671_s9 + $0x60] sm:$0xff]  ;;  %v5914_v34 = vld [vmem:[%s5657_s26 + $0x30] sm:$0xff]  ;;  %v689_v35 = vld [vmem:[%s5671_s9 + $0x88] sm:$0xff] }
  0xf3   : > { %4156 = vmatprep.subr.bf16.mxu0 %v4155_v43  ;;  %v598_v43 = vld [vmem:[%s5665_s29 + $0x5b0] sm:$0xff] }
  0xf4   : > { %v4177_v48 = vpack.c.bf16 %v598_v43, %v596_v42  ;;  %v4257_v42 = vpack.c.bf16 %v684_v33, %v680_v32 }
  0xf7   : > { %4030 = vmatpush1.bf16.xpose.msra.mxu1 %v4029_v44  ;;  %v601_v44 = vld [vmem:[%s5665_s29 + $0x5c8] sm:$0xff] }
  0xf8   : > { %4032 = vmatprep.subr.bf16.mxu1 %v4031_v45  ;;  %v603_v45 = vld [vmem:[%s5665_s29 + $0x5d8] sm:$0xff] }
  0xf9   : > { %v4179_v51 = vpack.c.bf16 %v603_v45, %v601_v44  ;;  %v5930_v44 = vld [vmem:[%s5657_s26 + $0x40] sm:$0xff] }
  0xfa   : > { %4158 = vmatpush1.bf16.xpose.msra.mxu0 %v4157_v52  ;;  %v4053_v52 = vpack.c.bf16 %v474_v47, %v472_v46  ;;  %v5933_v46 = vld [vmem:[%s5657_s26 + $0x58] sm:$0xff] }
  0xfb   : > { %4160 = vmatprep.subr.bf16.mxu0 %v4159_v55  ;;  %v602_v55 = vld [vmem:[%s5665_s29 + $0x5d0] sm:$0xff] }
  0xfc   : > { %v4181_v60 = vpack.c.bf16 %v602_v55, %v600_v54  ;;  %v492_v54 = vld [vmem:[%s5665_s29 + $0x260] sm:$0xff]  ;;  %v494_v55 = vld [vmem:[%s5665_s29 + $0x270] sm:$0xff] }
  0xfd   : > { %v4073_v61 = vpack.c.bf16 %v494_v55, %v492_v54 }
  0xff   : > { %4034 = vmatpush1.bf16.xpose.msra.mxu1 %v4033_v56  ;;  %v605_v56 = vld [vmem:[%s5665_s29 + $0x5e8] sm:$0xff] }
 0x100   : > { %4036 = vmatprep.subr.bf16.mxu1 %v4035_v57  ;;  %v607_v57 = vld [vmem:[%s5665_s29 + $0x5f8] sm:$0xff] }
 0x101   : > { %v4183_v63 = vpack.c.bf16 %v607_v57, %v605_v56  ;;  %v497_v56 = vld [vmem:[%s5665_s29 + $0x288] sm:$0xff]  ;;  %v499_v57 = vld [vmem:[%s5665_s29 + $0x298] sm:$0xff] }
 0x102   : > { %4162 = vmatpush1.bf16.xpose.msra.mxu0 %v4161_v0  ;;  %v4057_v0 = vpack.c.bf16 %v478_v59, %v476_v58 }
 0x103   : > { %4164 = vmatprep.subr.bf16.mxu0 %v4163_v3  ;;  %v606_v3 = vld [vmem:[%s5665_s29 + $0x5f0] sm:$0xff] }
 0x104   : > { %v4185_v8 = vpack.c.bf16 %v606_v3, %v604_v2  ;;  %v5970_v2 = vld [vmem:[%s5657_s26 + $0x70] sm:$0xff]  ;;  %v705_v3 = vld [vmem:[%s5671_s9 + $0x108] sm:$0xff] }
 0x107   : > { %4038 = vmatpush1.bf16.xpose.msra.mxu1 %v4037_v4  ;;  %v673_v4 = vld [vmem:[%s5671_s9 + $0x8] sm:$0xff] }
 0x108   : > { %4040 = vmatprep.subr.bf16.mxu1 %v4039_v5  ;;  %v677_v5 = vld [vmem:[%s5671_s9 + $0x28] sm:$0xff] }
 0x109   : > { %v4251_v11 = vpack.c.bf16 %v677_v5, %v673_v4  ;;  %v709_v4 = vld [vmem:[%s5671_s9 + $0x128] sm:$0xff] }
 0x10a   : > { %4166 = vmatpush1.bf16.xpose.msra.mxu0 %v4165_v12  ;;  %v5878_v12 = vld [vmem:[%s5657_s26] sm:$0xff]  ;;  %v5975_v5 = vld [vmem:[%s5657_s26 + $0x88] sm:$0xff] }
 0x10b   : > { %4168 = vmatprep.subr.bf16.mxu0 %v4167_v15  ;;  %v4063_v15 = vpack.c.bf16 %v487_v10, %v485_v9  ;;  %v503_v9 = vld [vmem:[%s5665_s29 + $0x2b8] sm:$0xff] }
 0x10f   : > { %4042 = vmatpush1.bf16.xpose.msra.mxu1 %v4041_v16  ;;  %v672_v16 = vld [vmem:[%s5671_s9] sm:$0xff] }
 0x110   : > { %4044 = vmatprep.subr.bf16.mxu1 %v4043_v17  ;;  %v676_v17 = vld [vmem:[%s5671_s9 + $0x20] sm:$0xff] }
 0x112   : > { %4170 = vmatpush1.bf16.xpose.msra.mxu0 %v4169_v24  ;;  %v4253_v24 = vpack.c.bf16 %v676_v17, %v672_v16  ;;  %v5989_v16 = vld [vmem:[%s5657_s26 + $0x98] sm:$0xff] }
 0x113   : > { %4172 = vmatprep.subr.bf16.mxu0 %v4171_v27  ;;  %v4255_v27 = vpack.c.bf16 %v685_v19, %v681_v18  ;;  %v704_v18 = vld [vmem:[%s5671_s9 + $0x100] sm:$0xff] }
 0x114   : > { %v708_v19 = vld [vmem:[%s5671_s9 + $0x120] sm:$0xff] }
 0x115   : > { %v4269_v32 = vpack.c.bf16 %v708_v19, %v704_v18  ;;  %v6073_v18 = vld [vmem:[%s5657_s26 + $0xf8] sm:$0xff] }
 0x117   : > { %4046 = vmatpush1.bf16.xpose.msra.mxu1 %v4045_v28  ;;  %v5902_v28 = vld [vmem:[%s5657_s26 + $0x20] sm:$0xff] }
 0x118   : > { %4048 = vmatprep.subr.bf16.mxu1 %v4047_v29  ;;  %v4065_v29 = vpack.c.bf16 %v486_v23, %v484_v22  ;;  %v5998_v22 = vld [vmem:[%s5657_s26 + $0x90] sm:$0xff]  ;;  %v713_v23 = vld [vmem:[%s5671_s9 + $0x148] sm:$0xff] }
 0x11a   : > { %4174 = vmatpush1.bf16.xpose.msra.mxu0 %v4173_v36  ;;  %v693_v36 = vld [vmem:[%s5671_s9 + $0xa8] sm:$0xff] }
 0x11b   : > { %4176 = vmatprep.subr.bf16.mxu0 %v4175_v39  ;;  %v490_v39 = vld [vmem:[%s5665_s29 + $0x250] sm:$0xff]  ;;  %v4259_v43 = vpack.c.bf16 %v693_v36, %v689_v35  ;;  %v6014_v35 = vld [vmem:[%s5657_s26 + $0xa0] sm:$0xff] }
 0x11c   : > { %v4069_v45 = vpack.c.bf16 %v490_v39, %v488_v38  ;;  %v6017_v38 = vld [vmem:[%s5657_s26 + $0xb8] sm:$0xff] }
 0x11f   : > { %4050 = vmatpush1.bf16.xpose.msra.mxu1 %v4049_v40  ;;  %v493_v40 = vld [vmem:[%s5665_s29 + $0x268] sm:$0xff] }
 0x120   : > { %4052 = vmatprep.subr.bf16.mxu1 %v4051_v41  ;;  %v495_v41 = vld [vmem:[%s5665_s29 + $0x278] sm:$0xff] }
 0x121   : > { %v4071_v47 = vpack.c.bf16 %v495_v41, %v493_v40  ;;  %v712_v40 = vld [vmem:[%s5671_s9 + $0x140] sm:$0xff] }
 0x122   : > { %4178 = vmatpush1.bf16.xpose.msra.mxu0 %v4177_v48  ;;  %v688_v48 = vld [vmem:[%s5671_s9 + $0x80] sm:$0xff] }
 0x123   : > { %4180 = vmatprep.subr.bf16.mxu0 %v4179_v51  ;;  %v697_v51 = vld [vmem:[%s5671_s9 + $0xc8] sm:$0xff]  ;;  %v4261_v58 = vpack.c.bf16 %v692_v49, %v688_v48  ;;  %v716_v41 = vld [vmem:[%s5671_s9 + $0x160] sm:$0xff]  ;;  %v506_v49 = vld [vmem:[%s5665_s29 + $0x2d0] sm:$0xff] }
 0x124   : > { %v504_v48 = vld [vmem:[%s5665_s29 + $0x2c0] sm:$0xff]  ;;  %v4273_v54 = vpack.c.bf16 %v716_v41, %v712_v40 }
 0x127   : > { %4054 = vmatpush1.bf16.xpose.msra.mxu1 %v4053_v52  ;;  %v701_v52 = vld [vmem:[%s5671_s9 + $0xe8] sm:$0xff] }
 0x128   : > { %4056 = vmatprep.subr.bf16.mxu1 %v4055_v53  ;;  %v5947_v53 = vld [vmem:[%s5657_s26 + $0x68] sm:$0xff]  ;;  %v4263_v59 = vpack.c.bf16 %v701_v52, %v697_v51  ;;  %v511_v52 = vld [vmem:[%s5665_s29 + $0x2f8] sm:$0xff] }
 0x129   : > { %v509_v51 = vld [vmem:[%s5665_s29 + $0x2e8] sm:$0xff] }
 0x12a   : > { %4182 = vmatpush1.bf16.xpose.msra.mxu0 %v4181_v60  ;;  %v5958_v60 = vld [vmem:[%s5657_s26 + $0x60] sm:$0xff] }
 0x12b   : > { %4184 = vmatprep.subr.bf16.mxu0 %v4183_v63  ;;  %v4075_v63 = vpack.c.bf16 %v499_v57, %v497_v56  ;;  %v6042_v56 = vld [vmem:[%s5657_s26 + $0xc0] sm:$0xff]  ;;  %v4085_v57 = vpack.c.bf16 %v506_v49, %v504_v48  ;;  %v6101_v48 = vld [vmem:[%s5657_s26 + $0x118] sm:$0xff] }
 0x12f   : > { %4058 = vmatpush1.bf16.xpose.msra.mxu1 %v4057_v0  ;;  %v696_v0 = vld [vmem:[%s5671_s9 + $0xc0] sm:$0xff] }
 0x130   : > { %4060 = vmatprep.subr.bf16.mxu1 %v4059_v1  ;;  %v700_v1 = vld [vmem:[%s5671_s9 + $0xe0] sm:$0xff] }
 0x131   : > { %v4265_v10 = vpack.c.bf16 %v700_v1, %v696_v0  ;;  %v6054_v0 = vld [vmem:[%s5657_s26 + $0xd0] sm:$0xff]  ;;  %v729_v1 = vld [vmem:[%s5671_s9 + $0x1c8] sm:$0xff] }
 0x132   : > { %4186 = vmatpush1.bf16.xpose.msra.mxu0 %v4185_v8  ;;  %v501_v8 = vld [vmem:[%s5665_s29 + $0x2a8] sm:$0xff] }
 0x133   : > { %4252 = vmatprep.subr.bf16.mxu0 %v4251_v11  ;;  %v4267_v11 = vpack.c.bf16 %v709_v4, %v705_v3  ;;  %v4079_v17 = vpack.c.bf16 %v503_v9, %v501_v8  ;;  %v733_v3 = vld [vmem:[%s5671_s9 + $0x1e8] sm:$0xff]  ;;  %v515_v9 = vld [vmem:[%s5665_s29 + $0x318] sm:$0xff] }
 0x134   : > { %v6059_v4 = vld [vmem:[%s5657_s26 + $0xe8] sm:$0xff] }
 0x135   : > { %v513_v8 = vld [vmem:[%s5665_s29 + $0x308] sm:$0xff] }
 0x136   : > { %865 = vmatmul.mubr.f32.vlgmr.msra.gmra.mrb[0].mxu1 %v5878_v12  ;;  %v4091_v19 = vpack.c.bf16 %v515_v9, %v513_v8  ;;  %v6126_v8 = vld [vmem:[%s5657_s26 + $0x120] sm:$0xff] }
 0x137   : > { %4062 = vmatpush1.bf16.xpose.msra.mxu1 %v4061_v13  ;;  %870 = vmatprep.mubr.f32.mxu1 %v5881_v14  ;;  %v5986_v13 = vld [vmem:[%s5657_s26 + $0x80] sm:$0xff] }
 0x138   : > { %4064 = vmatprep.subr.bf16.mxu1 %v4063_v15  ;;  %v4077_v15 = vpack.c.bf16 %v498_v7, %v496_v6  ;;  %v508_v6 = vld [vmem:[%s5665_s29 + $0x2e0] sm:$0xff]  ;;  %v510_v7 = vld [vmem:[%s5665_s29 + $0x2f0] sm:$0xff] }
 0x139   : > { %1379 = vmatmul.mubr.f32.vlgmr.msra.gmra.mrb[0].mxu0 %v5878_v12 }
 0x13a   : > { %871 = vmatmul.mubr.f32.gmra.mrb[2].mxu1 %v5890_v20  ;;  %1384 = vmatprep.mubr.f32.mxu0 %v5881_v14 }
 0x13b   : > { %876 = vmatprep.mubr.f32.mxu1 %v5893_v21  ;;  %4254 = vmatpush1.bf16.xpose.msra.mxu0 %v4253_v24  ;;  %v717_v24 = vld [vmem:[%s5671_s9 + $0x168] sm:$0xff] }
 0x13c   : > { %4256 = vmatprep.subr.bf16.mxu0 %v4255_v27  ;;  %v502_v27 = vld [vmem:[%s5665_s29 + $0x2b0] sm:$0xff]  ;;  %v4271_v33 = vpack.c.bf16 %v717_v24, %v713_v23  ;;  %v728_v23 = vld [vmem:[%s5671_s9 + $0x1c0] sm:$0xff] }
 0x13d   : > { %1385 = vmatmul.mubr.f32.gmra.mrb[2].mxu0 %v5890_v20  ;;  %v4081_v36 = vpack.c.bf16 %v502_v27, %v500_v26  ;;  %v732_v24 = vld [vmem:[%s5671_s9 + $0x1e0] sm:$0xff]  ;;  %v6082_v26 = vld [vmem:[%s5657_s26 + $0xf0] sm:$0xff]  ;;  %v737_v27 = vld [vmem:[%s5671_s9 + $0x208] sm:$0xff] }
 0x13e   : > { %877 = vmatmul.mubr.f32.gmra.mrb[4].mxu1 %v5902_v28  ;;  %1390 = vmatprep.mubr.f32.mxu0 %v5893_v21  ;;  %v4281_v40 = vpack.c.bf16 %v732_v24, %v728_v23  ;;  %v6138_v23 = vld [vmem:[%s5657_s26 + $0x130] sm:$0xff]  ;;  %v753_v24 = vld [vmem:[%s5671_s9 + $0x288] sm:$0xff] }
 0x13f   : > { %4066 = vmatpush1.bf16.xpose.msra.mxu1 %v4065_v29  ;;  %882 = vmatprep.mubr.f32.mxu1 %v5906_v30  ;;  %v505_v29 = vld [vmem:[%s5665_s29 + $0x2c8] sm:$0xff] }
 0x140   : > { %4068 = vmatprep.subr.bf16.mxu1 %v4067_v31  ;;  %v507_v31 = vld [vmem:[%s5665_s29 + $0x2d8] sm:$0xff] }
 0x141   : > { %1391 = vmatmul.mubr.f32.gmra.mrb[4].mxu0 %v5902_v28  ;;  %v4083_v39 = vpack.c.bf16 %v507_v31, %v505_v29  ;;  %v741_v29 = vld [vmem:[%s5671_s9 + $0x228] sm:$0xff] }
 0x142   : > { %883 = vmatmul.mubr.f32.gmra.mrb[6].mxu1 %v5914_v34  ;;  %1396 = vmatprep.mubr.f32.mxu0 %v5906_v30  ;;  %v6087_v31 = vld [vmem:[%s5657_s26 + $0x108] sm:$0xff]  ;;  %v4283_v41 = vpack.c.bf16 %v741_v29, %v737_v27 }
 0x143   : > { %888 = vmatprep.mubr.f32.mxu1 %v5919_v37  ;;  %4258 = vmatpush1.bf16.xpose.msra.mxu0 %v4257_v42  ;;  %v6026_v42 = vld [vmem:[%s5657_s26 + $0xb0] sm:$0xff]  ;;  %v757_v27 = vld [vmem:[%s5671_s9 + $0x2a8] sm:$0xff] }
 0x144   : > { %4260 = vmatprep.subr.bf16.mxu0 %v4259_v43  ;;  %v721_v43 = vld [vmem:[%s5671_s9 + $0x188] sm:$0xff] }
 0x145   : > { %1397 = vmatmul.mubr.f32.gmra.mrb[6].mxu0 %v5914_v34  ;;  %v6143_v29 = vld [vmem:[%s5657_s26 + $0x148] sm:$0xff] }
 0x146   : > { %889 = vmatmul.mubr.f32.gmra.mrb[8].mxu1 %v5930_v44  ;;  %1402 = vmatprep.mubr.f32.mxu0 %v5919_v37 }
 0x147   : > { %4070 = vmatpush1.bf16.xpose.msra.mxu1 %v4069_v45  ;;  %894 = vmatprep.mubr.f32.mxu1 %v5933_v46  ;;  %v725_v45 = vld [vmem:[%s5671_s9 + $0x1a8] sm:$0xff] }
 0x148   : > { %4072 = vmatprep.subr.bf16.mxu1 %v4071_v47  ;;  %v6031_v47 = vld [vmem:[%s5657_s26 + $0xc8] sm:$0xff]  ;;  %v4275_v55 = vpack.c.bf16 %v725_v45, %v721_v43  ;;  %v6098_v43 = vld [vmem:[%s5657_s26 + $0x100] sm:$0xff] }
 0x149   : > { %1403 = vmatmul.mubr.f32.gmra.mrb[8].mxu0 %v5930_v44 }
 0x14a   : > { %895 = vmatmul.mubr.f32.gmra.mrb[10].mxu1 %v5942_v50  ;;  %1408 = vmatprep.mubr.f32.mxu0 %v5933_v46 }
 0x14b   : > { %900 = vmatprep.mubr.f32.mxu1 %v5947_v53  ;;  %4262 = vmatpush1.bf16.xpose.msra.mxu0 %v4261_v58  ;;  %v6045_v58 = vld [vmem:[%s5657_s26 + $0xd8] sm:$0xff] }
 0x14c   : > { %4264 = vmatprep.subr.bf16.mxu0 %v4263_v59  ;;  %v4087_v59 = vpack.c.bf16 %v511_v52, %v509_v51  ;;  %v736_v51 = vld [vmem:[%s5671_s9 + $0x200] sm:$0xff] }
 0x14d   : > { %1409 = vmatmul.mubr.f32.gmra.mrb[10].mxu0 %v5942_v50  ;;  %v740_v52 = vld [vmem:[%s5671_s9 + $0x220] sm:$0xff] }
 0x14e   : > { %901 = vmatmul.mubr.f32.gmra.mrb[12].mxu1 %v5958_v60  ;;  %1414 = vmatprep.mubr.f32.mxu0 %v5947_v53 }
 0x14f   : > { %4074 = vmatpush1.bf16.xpose.msra.mxu1 %v4073_v61  ;;  %906 = vmatprep.mubr.f32.mxu1 %v5961_v62  ;;  %v720_v61 = vld [vmem:[%s5671_s9 + $0x180] sm:$0xff] }
 0x150   : > { %4076 = vmatprep.subr.bf16.mxu1 %v4075_v63  ;;  %v724_v63 = vld [vmem:[%s5671_s9 + $0x1a0] sm:$0xff] }
 0x151   : > { %1415 = vmatmul.mubr.f32.gmra.mrb[12].mxu0 %v5958_v60 }
 0x152   : > { %907 = vmatmul.mubr.f32.gmra.mrb[14].mxu1 %v5970_v2  ;;  %1420 = vmatprep.mubr.f32.mxu0 %v5961_v62 }
 0x153   : > { %912 = vmatprep.mubr.f32.mxu1 %v5975_v5  ;;  %4266 = vmatpush1.bf16.xpose.msra.mxu0 %v4265_v10  ;;  %v4277_v10 = vpack.c.bf16 %v724_v63, %v720_v61  ;;  %v516_v61 = vld [vmem:[%s5665_s29 + $0x320] sm:$0xff]  ;;  %v518_v63 = vld [vmem:[%s5665_s29 + $0x330] sm:$0xff] }
 0x154   : > { %4268 = vmatprep.subr.bf16.mxu0 %v4267_v11  ;;  %v4279_v11 = vpack.c.bf16 %v733_v3, %v729_v1  ;;  %v521_v1 = vld [vmem:[%s5665_s29 + $0x348] sm:$0xff]  ;;  %v523_v3 = vld [vmem:[%s5665_s29 + $0x358] sm:$0xff]  ;;  %v4097_v9 = vpack.c.bf16 %v518_v63, %v516_v61  ;;  %v6166_v61 = vld [vmem:[%s5657_s26 + $0x150] sm:$0xff] }
 0x155   : > { %1421 = vmatmul.mubr.f32.gmra.mrb[14].mxu0 %v5970_v2  ;;  %v761_v63 = vld [vmem:[%s5671_s9 + $0x2c8] sm:$0xff] }
 0x156   : > { %913 = vmatmul.mubr.f32.gmra.mrb[16].mxu1 %v5986_v13  ;;  %1426 = vmatprep.mubr.f32.mxu0 %v5975_v5 }
 0x157   : > { %4078 = vmatpush1.bf16.xpose.msra.mxu1 %v4077_v15  ;;  %918 = vmatprep.mubr.f32.mxu1 %v5989_v16  ;;  %v6070_v15 = vld [vmem:[%s5657_s26 + $0xe0] sm:$0xff] }
 0x158   : > { %4080 = vmatprep.subr.bf16.mxu1 %v4079_v17  ;;  %v4089_v17 = vpack.c.bf16 %v510_v7, %v508_v6  ;;  %v4285_v6 = vpack.c.bf16 %v740_v52, %v736_v51  ;;  %v6157_v51 = vld [vmem:[%s5657_s26 + $0x158] sm:$0xff] }
 0x159   : > { %1427 = vmatmul.mubr.f32.gmra.mrb[16].mxu0 %v5986_v13 }
 0x15a   : > { %919 = vmatmul.mubr.f32.gmra.mrb[18].mxu1 %v5998_v22  ;;  %1432 = vmatprep.mubr.f32.mxu0 %v5989_v16 }
 0x15b   : > { %924 = vmatprep.mubr.f32.mxu1 %v6003_v25  ;;  %4270 = vmatpush1.bf16.xpose.msra.mxu0 %v4269_v32  ;;  %v512_v32 = vld [vmem:[%s5665_s29 + $0x300] sm:$0xff] }
 0x15c   : > { %4272 = vmatprep.subr.bf16.mxu0 %v4271_v33  ;;  %v514_v33 = vld [vmem:[%s5665_s29 + $0x310] sm:$0xff] }
 0x15d   : > { %1433 = vmatmul.mubr.f32.gmra.mrb[18].mxu0 %v5998_v22  ;;  %v4093_v45 = vpack.c.bf16 %v514_v33, %v512_v32  ;;  %v520_v32 = vld [vmem:[%s5665_s29 + $0x340] sm:$0xff]  ;;  %v522_v33 = vld [vmem:[%s5665_s29 + $0x350] sm:$0xff] }
 0x15e   : > { %925 = vmatmul.mubr.f32.gmra.mrb[20].mxu1 %v6014_v35  ;;  %1438 = vmatprep.mubr.f32.mxu0 %v6003_v25 }
 0x15f   : > { %4082 = vmatpush1.bf16.xpose.msra.mxu1 %v4081_v36  ;;  %930 = vmatprep.mubr.f32.mxu1 %v6017_v38  ;;  %v517_v36 = vld [vmem:[%s5665_s29 + $0x328] sm:$0xff] }
 0x160   : > { %4084 = vmatprep.subr.bf16.mxu1 %v4083_v39  ;;  %v519_v39 = vld [vmem:[%s5665_s29 + $0x338] sm:$0xff] }
 0x161   : > { %1439 = vmatmul.mubr.f32.gmra.mrb[20].mxu0 %v6014_v35  ;;  %v4095_v49 = vpack.c.bf16 %v519_v39, %v517_v36  ;;  %v525_v36 = vld [vmem:[%s5665_s29 + $0x368] sm:$0xff]  ;;  %v527_v39 = vld [vmem:[%s5665_s29 + $0x378] sm:$0xff] }
 0x162   : > { %931 = vmatmul.mubr.f32.gmra.mrb[22].mxu1 %v6026_v42  ;;  %1444 = vmatprep.mubr.f32.mxu0 %v6017_v38  ;;  %v4103_v52 = vpack.c.bf16 %v527_v39, %v525_v36  ;;  %v760_v36 = vld [vmem:[%s5671_s9 + $0x2c0] sm:$0xff] }
 0x163   : > { %936 = vmatprep.mubr.f32.mxu1 %v6031_v47  ;;  %4274 = vmatpush1.bf16.xpose.msra.mxu0 %v4273_v54  ;;  %v6110_v54 = vld [vmem:[%s5657_s26 + $0x110] sm:$0xff]  ;;  %v764_v39 = vld [vmem:[%s5671_s9 + $0x2e0] sm:$0xff] }
 0x164   : > { %4276 = vmatprep.subr.bf16.mxu0 %v4275_v55  ;;  %v745_v55 = vld [vmem:[%s5671_s9 + $0x248] sm:$0xff] }
 0x165   : > { %1445 = vmatmul.mubr.f32.gmra.mrb[22].mxu0 %v6026_v42 }
 0x166   : > { %937 = vmatmul.mubr.f32.gmra.mrb[24].mxu1 %v6042_v56  ;;  %1450 = vmatprep.mubr.f32.mxu0 %v6031_v47 }
 0x167   : > { %4086 = vmatpush1.bf16.xpose.msra.mxu1 %v4085_v57  ;;  %942 = vmatprep.mubr.f32.mxu1 %v6045_v58  ;;  %v749_v57 = vld [vmem:[%s5671_s9 + $0x268] sm:$0xff] }
 0x168   : > { %4088 = vmatprep.subr.bf16.mxu1 %v4087_v59  ;;  %v6115_v59 = vld [vmem:[%s5657_s26 + $0x128] sm:$0xff]  ;;  %v4287_v7 = vpack.c.bf16 %v749_v57, %v745_v55  ;;  %v752_v55 = vld [vmem:[%s5671_s9 + $0x280] sm:$0xff] }
 0x169   : > { %1451 = vmatmul.mubr.f32.gmra.mrb[24].mxu0 %v6042_v56  ;;  %v756_v57 = vld [vmem:[%s5671_s9 + $0x2a0] sm:$0xff] }
 0x16a   : > { %943 = vmatmul.mubr.f32.gmra.mrb[26].mxu1 %v6054_v0  ;;  %1456 = vmatprep.mubr.f32.mxu0 %v6045_v58 }
 0x16b   : > { %948 = vmatprep.mubr.f32.mxu1 %v6059_v4  ;;  %4278 = vmatpush1.bf16.xpose.msra.mxu0 %v4277_v10  ;;  %v6129_v10 = vld [vmem:[%s5657_s26 + $0x138] sm:$0xff] }
 0x16c   : > { %4280 = vmatprep.subr.bf16.mxu0 %v4279_v11  ;;  %v4099_v11 = vpack.c.bf16 %v523_v3, %v521_v1  ;;  %v765_v1 = vld [vmem:[%s5671_s9 + $0x2e8] sm:$0xff] }
 0x16d   : > { %1457 = vmatmul.mubr.f32.gmra.mrb[26].mxu0 %v6054_v0  ;;  %v6171_v3 = vld [vmem:[%s5657_s26 + $0x168] sm:$0xff] }
 0x16e   : > { %949 = vmatmul.mubr.f32.gmra.mrb[28].mxu1 %v6070_v15  ;;  %1462 = vmatprep.mubr.f32.mxu0 %v6059_v4 }
 0x16f   : > { %4090 = vmatpush1.bf16.xpose.msra.mxu1 %v4089_v17  ;;  %954 = vmatprep.mubr.f32.mxu1 %v6073_v18  ;;  %v744_v17 = vld [vmem:[%s5671_s9 + $0x240] sm:$0xff] }
 0x170   : > { %4092 = vmatprep.subr.bf16.mxu1 %v4091_v19  ;;  %v748_v19 = vld [vmem:[%s5671_s9 + $0x260] sm:$0xff] }
 0x171   : > { %1463 = vmatmul.mubr.f32.gmra.mrb[28].mxu0 %v6070_v15 }
 0x172   : > { %955 = vmatmul.mubr.f32.gmra.mrb[30].mxu1 %v6082_v26  ;;  %1468 = vmatprep.mubr.f32.mxu0 %v6073_v18 }
 0x173   : > { %960 = vmatprep.mubr.f32.mxu1 %v6087_v31  ;;  %4282 = vmatpush1.bf16.xpose.msra.mxu0 %v4281_v40  ;;  %v4289_v40 = vpack.c.bf16 %v748_v19, %v744_v17  ;;  %v4293_v17 = vpack.c.bf16 %v756_v57, %v752_v55  ;;  %v4295_v19 = vpack.c.bf16 %v765_v1, %v761_v63  ;;  %v528_v55 = vld [vmem:[%s5665_s29 + $0x380] sm:$0xff]  ;;  %v530_v57 = vld [vmem:[%s5665_s29 + $0x390] sm:$0xff]  ;;  %v533_v63 = vld [vmem:[%s5665_s29 + $0x3a8] sm:$0xff] }
 0x174   : > { %4284 = vmatprep.subr.bf16.mxu0 %v4283_v41  ;;  %v4291_v41 = vpack.c.bf16 %v757_v27, %v753_v24  ;;  %v6182_v24 = vld [vmem:[%s5657_s26 + $0x160] sm:$0xff]  ;;  %v535_v1 = vld [vmem:[%s5665_s29 + $0x3b8] sm:$0xff] }
 0x175   : > { %1469 = vmatmul.mubr.f32.gmra.mrb[30].mxu0 %v6082_v26 }
 0x176   : > { %961 = vmatmul.mubr.f32.gmra.mrb[32].mxu1 %v6098_v43  ;;  %1474 = vmatprep.mubr.f32.mxu0 %v6087_v31 }
 0x177   : > { %4094 = vmatpush1.bf16.xpose.msra.mxu1 %v4093_v45  ;;  %966 = vmatprep.mubr.f32.mxu1 %v6101_v48  ;;  %v6154_v45 = vld [vmem:[%s5657_s26 + $0x140] sm:$0xff] }
 0x178   : > { %4096 = vmatprep.subr.bf16.mxu1 %v4095_v49  ;;  %v4101_v49 = vpack.c.bf16 %v522_v33, %v520_v32  ;;  %v6185_v32 = vld [vmem:[%s5657_s26 + $0x178] sm:$0xff] }
 0x179   : > { %1475 = vmatmul.mubr.f32.gmra.mrb[32].mxu0 %v6098_v43  ;;  %7501 = vst [vmem:[#allocation22_spill] sm:$0xff] %v6185_v32 }
 0x17a   : > { %967 = vmatmul.mubr.f32.gmra.mrb[34].mxu1 %v6110_v54  ;;  %1480 = vmatprep.mubr.f32.mxu0 %v6101_v48 }
 0x17b   : > { %972 = vmatprep.mubr.f32.mxu1 %v6115_v59  ;;  %4286 = vmatpush1.bf16.xpose.msra.mxu0 %v4285_v6  ;;  %v524_v6 = vld [vmem:[%s5665_s29 + $0x360] sm:$0xff] }
 0x17c   : > { %4288 = vmatprep.subr.bf16.mxu0 %v4287_v7  ;;  %v526_v7 = vld [vmem:[%s5665_s29 + $0x370] sm:$0xff] }
 0x17d   : > { %1481 = vmatmul.mubr.f32.gmra.mrb[34].mxu0 %v6110_v54  ;;  %v4105_v27 = vpack.c.bf16 %v526_v7, %v524_v6  ;;  %v4297_v6 = vpack.c.bf16 %v764_v39, %v760_v36  ;;  %v6222_v36 = vld [vmem:[%s5657_s26 + $0x190] sm:$0xff]  ;;  %v777_v39 = vld [vmem:[%s5671_s9 + $0x348] sm:$0xff] }
 0x17e   : > { %973 = vmatmul.mubr.f32.gmra.mrb[36].mxu1 %v6126_v8  ;;  %1486 = vmatprep.mubr.f32.mxu0 %v6115_v59  ;;  %7506 = vst [vmem:[#allocation27_spill] sm:$0xff] %v6222_v36 }
 0x17f   : > { %4098 = vmatpush1.bf16.xpose.msra.mxu1 %v4097_v9  ;;  %978 = vmatprep.mubr.f32.mxu1 %v6129_v10  ;;  %v529_v9 = vld [vmem:[%s5665_s29 + $0x388] sm:$0xff] }
 0x180   : > { %4100 = vmatprep.subr.bf16.mxu1 %v4099_v11  ;;  %v531_v11 = vld [vmem:[%s5665_s29 + $0x398] sm:$0xff] }
 0x181   : > { %1487 = vmatmul.mubr.f32.gmra.mrb[36].mxu0 %v6126_v8  ;;  %v4107_v33 = vpack.c.bf16 %v531_v11, %v529_v9  ;;  %v6210_v9 = vld [vmem:[%s5657_s26 + $0x180] sm:$0xff]  ;;  %v4109_v11 = vpack.c.bf16 %v530_v57, %v528_v55  ;;  %v534_v57 = vld [vmem:[%s5665_s29 + $0x3b0] sm:$0xff] }
 0x182   : > { %979 = vmatmul.mubr.f32.gmra.mrb[38].mxu1 %v6138_v23  ;;  %1492 = vmatprep.mubr.f32.mxu0 %v6129_v10  ;;  %7504 = vst [vmem:[#allocation25_spill] sm:$0xff] %v6210_v9  ;;  %v532_v55 = vld [vmem:[%s5665_s29 + $0x3a0] sm:$0xff] }
 0x183   : > { %984 = vmatprep.mubr.f32.mxu1 %v6143_v29  ;;  %4290 = vmatpush1.bf16.xpose.msra.mxu0 %v4289_v40  ;;  %v6194_v40 = vld [vmem:[%s5657_s26 + $0x170] sm:$0xff] }
 0x184   : > { %4292 = vmatprep.subr.bf16.mxu0 %v4291_v41  ;;  %7502 = vst [vmem:[#allocation23_spill] sm:$0xff] %v6194_v40  ;;  %v769_v41 = vld [vmem:[%s5671_s9 + $0x308] sm:$0xff] }
 0x185   : > { %1493 = vmatmul.mubr.f32.gmra.mrb[38].mxu0 %v6138_v23 }
 0x186   : > { %985 = vmatmul.mubr.f32.gmra.mrb[40].mxu1 %v6154_v45  ;;  %1498 = vmatprep.mubr.f32.mxu0 %v6143_v29 }
 0x187   : > { %4102 = vmatpush1.bf16.xpose.msra.mxu1 %v4101_v49  ;;  %990 = vmatprep.mubr.f32.mxu1 %v6157_v51  ;;  %v773_v49 = vld [vmem:[%s5671_s9 + $0x328] sm:$0xff] }
 0x188   : > { %4104 = vmatprep.subr.bf16.mxu1 %v4103_v52  ;;  %v6199_v52 = vld [vmem:[%s5657_s26 + $0x188] sm:$0xff]  ;;  %v4299_v7 = vpack.c.bf16 %v773_v49, %v769_v41 }
 0x189   : > { %1499 = vmatmul.mubr.f32.gmra.mrb[40].mxu0 %v6154_v45  ;;  %7503 = vst [vmem:[#allocation24_spill] sm:$0xff] %v6199_v52  ;;  %v781_v41 = vld [vmem:[%s5671_s9 + $0x368] sm:$0xff] }
 0x18a   : > { %991 = vmatmul.mubr.f32.gmra.mrb[42].mxu1 %v6166_v61  ;;  %1504 = vmatprep.mubr.f32.mxu0 %v6157_v51  ;;  %v6227_v49 = vld [vmem:[%s5657_s26 + $0x1a8] sm:$0xff] }
 0x18b   : > { %996 = vmatprep.mubr.f32.mxu1 %v6171_v3  ;;  %4294 = vmatpush1.bf16.xpose.msra.mxu0 %v4293_v17  ;;  %v6213_v17 = vld [vmem:[%s5657_s26 + $0x198] sm:$0xff]  ;;  %7507 = vst [vmem:[#allocation28_spill] sm:$0xff] %v6227_v49 }
 0x18c   : > { %4296 = vmatprep.subr.bf16.mxu0 %v4295_v19  ;;  %7505 = vst [vmem:[#allocation26_spill] sm:$0xff] %v6213_v17  ;;  %v4111_v19 = vpack.c.bf16 %v535_v1, %v533_v63  ;;  %v537_v63 = vld [vmem:[%s5665_s29 + $0x3c8] sm:$0xff]  ;;  %v539_v1 = vld [vmem:[%s5665_s29 + $0x3d8] sm:$0xff] }
 0x18d   : > { %1505 = vmatmul.mubr.f32.gmra.mrb[42].mxu0 %v6166_v61 }
 0x18e   : > { %997 = vmatmul.mubr.f32.gmra.mrb[44].mxu1 %v6182_v24  ;;  %1510 = vmatprep.mubr.f32.mxu0 %v6171_v3 }
 0x18f   : > { %4106 = vmatpush1.bf16.xpose.msra.mxu1 %v4105_v27  ;;  %1002 = vmatprep.mubr.f32.mxu1 %v6185_v32  ;;  %v768_v27 = vld [vmem:[%s5671_s9 + $0x300] sm:$0xff] }
 0x190   : > { %4108 = vmatprep.subr.bf16.mxu1 %v4107_v33  ;;  %v772_v33 = vld [vmem:[%s5671_s9 + $0x320] sm:$0xff] }
 0x191   : > { %1511 = vmatmul.mubr.f32.gmra.mrb[44].mxu0 %v6182_v24 }
 0x192   : > { %1003 = vmatmul.mubr.f32.gmra.mrb[46].mxu1 %v6194_v40  ;;  %1516 = vmatprep.mubr.f32.mxu0 %v6185_v32  ;;  %v4115_v32 = vpack.c.bf16 %v539_v1, %v537_v63  ;;  %v536_v63 = vld [vmem:[%s5665_s29 + $0x3c0] sm:$0xff]  ;;  %v538_v1 = vld [vmem:[%s5665_s29 + $0x3d0] sm:$0xff] }
 0x193   : > { %1008 = vmatprep.mubr.f32.mxu1 %v6199_v52  ;;  %4298 = vmatpush1.bf16.xpose.msra.mxu0 %v4297_v6  ;;  %v4301_v6 = vpack.c.bf16 %v772_v33, %v768_v27  ;;  %v776_v27 = vld [vmem:[%s5671_s9 + $0x340] sm:$0xff] }
 0x194   : > { %4300 = vmatprep.subr.bf16.mxu0 %v4299_v7  ;;  %v4303_v7 = vpack.c.bf16 %v781_v41, %v777_v39  ;;  %v780_v33 = vld [vmem:[%s5671_s9 + $0x360] sm:$0xff]  ;;  %v6250_v39 = vld [vmem:[%s5657_s26 + $0x1b0] sm:$0xff]  ;;  %v785_v41 = vld [vmem:[%s5671_s9 + $0x388] sm:$0xff] }
 0x195   : > { %1517 = vmatmul.mubr.f32.gmra.mrb[46].mxu0 %v6194_v40  ;;  %v6241_v40 = vld [vmem:[%s5657_s26 + $0x1b8] sm:$0xff]  ;;  %7510 = vst [vmem:[#allocation31_spill] sm:$0xff] %v6250_v39 }
 0x196   : > { %1009 = vmatmul.mubr.f32.gmra.mrb[48].mxu1 %v6210_v9  ;;  %1522 = vmatprep.mubr.f32.mxu0 %v6199_v52  ;;  %7509 = vst [vmem:[#allocation30_spill] sm:$0xff] %v6241_v40 }
 0x197   : > { %4110 = vmatpush1.bf16.xpose.msra.mxu1 %v4109_v11  ;;  %1014 = vmatprep.mubr.f32.mxu1 %v6213_v17  ;;  %v6238_v11 = vld [vmem:[%s5657_s26 + $0x1a0] sm:$0xff] }
 0x198   : > { %4112 = vmatprep.subr.bf16.mxu1 %v4111_v19  ;;  %7508 = vst [vmem:[#allocation29_spill] sm:$0xff] %v6238_v11  ;;  %v4113_v19 = vpack.c.bf16 %v534_v57, %v532_v55  ;;  %v789_v55 = vld [vmem:[%s5671_s9 + $0x3a8] sm:$0xff] }
 0x199   : > { %1523 = vmatmul.mubr.f32.gmra.mrb[48].mxu0 %v6210_v9  ;;  %v6255_v57 = vld [vmem:[%s5657_s26 + $0x1c8] sm:$0xff]  ;;  %v4117_v9 = vpack.c.bf16 %v538_v1, %v536_v63 }
 0x19a   : > { %1015 = vmatmul.mubr.f32.gmra.mrb[50].mxu1 %v6222_v36  ;;  %1528 = vmatprep.mubr.f32.mxu0 %v6213_v17  ;;  %v4307_v17 = vpack.c.bf16 %v789_v55, %v785_v41  ;;  %v6278_v41 = vld [vmem:[%s5657_s26 + $0x1d0] sm:$0xff]  ;;  %v793_v55 = vld [vmem:[%s5671_s9 + $0x3c8] sm:$0xff] }
 0x19b   : > { %1020 = vmatprep.mubr.f32.mxu1 %v6227_v49  ;;  %4302 = vmatpush1.bf16.xpose.msra.mxu0 %v4301_v6  ;;  %v541_v6 = vld [vmem:[%s5665_s29 + $0x3e8] sm:$0xff] }
 0x19c   : > { %4304 = vmatprep.subr.bf16.mxu0 %v4303_v7  ;;  %v543_v7 = vld [vmem:[%s5665_s29 + $0x3f8] sm:$0xff]  ;;  %v797_v63 = vld [vmem:[%s5671_s9 + $0x3e8] sm:$0xff] }
 0x19d   : > { %1529 = vmatmul.mubr.f32.gmra.mrb[50].mxu0 %v6222_v36  ;;  %v6269_v36 = vld [vmem:[%s5657_s26 + $0x1d8] sm:$0xff]  ;;  %v4119_v52 = vpack.c.bf16 %v543_v7, %v541_v6  ;;  %v6283_v1 = vld [vmem:[%s5657_s26 + $0x1e8] sm:$0xff]  ;;  %v540_v6 = vld [vmem:[%s5665_s29 + $0x3e0] sm:$0xff] }
 0x19e   : > { %1021 = vmatmul.mubr.f32.gmra.mrb[52].mxu1 %v6238_v11  ;;  %1534 = vmatprep.mubr.f32.mxu0 %v6227_v49  ;;  %v542_v7 = vld [vmem:[%s5665_s29 + $0x3f0] sm:$0xff]  ;;  %v6297_v49 = vld [vmem:[%s5657_s26 + $0x1f8] sm:$0xff] }
 0x19f   : > { %4114 = vmatpush1.bf16.xpose.msra.mxu1 %v4113_v19  ;;  %1026 = vmatprep.mubr.f32.mxu1 %v6241_v40  ;;  %v4305_v19 = vpack.c.bf16 %v780_v33, %v776_v27  ;;  %v784_v27 = vld [vmem:[%s5671_s9 + $0x380] sm:$0xff] }
 0x1a0   : > { %4116 = vmatprep.subr.bf16.mxu1 %v4115_v32  ;;  %v6266_v32 = vld [vmem:[%s5657_s26 + $0x1c0] sm:$0xff] }
 0x1a1   : > { %1535 = vmatmul.mubr.f32.gmra.mrb[52].mxu0 %v6238_v11  ;;  %v788_v33 = vld [vmem:[%s5671_s9 + $0x3a0] sm:$0xff] }
 0x1a2   : > { %1027 = vmatmul.mubr.f32.gmra.mrb[54].mxu1 %v6250_v39  ;;  %1540 = vmatprep.mubr.f32.mxu0 %v6241_v40  ;;  %v4311_v40 = vpack.c.bf16 %v797_v63, %v793_v55  ;;  %v6294_v11 = vld [vmem:[%s5657_s26 + $0x1e0] sm:$0xff]  ;;  %v6306_v55 = vld [vmem:[%s5657_s26 + $0x1f0] sm:$0xff] }
 0x1a3   : > { %1032 = vmatprep.mubr.f32.mxu1 %v6255_v57  ;;  %4306 = vmatpush1.bf16.xpose.msra.mxu0 %v4305_v19  ;;  %v609_v19 = vld [vmem:[%s5665_s29 + $0x608] sm:$0xff]  ;;  %v608_v63 = vld [vmem:[%s5665_s29 + $0x600] sm:$0xff] }
 0x1a4   : > { %4308 = vmatprep.subr.bf16.mxu0 %v4307_v17  ;;  %v611_v17 = vld [vmem:[%s5665_s29 + $0x618] sm:$0xff] }
 0x1a5   : > { %1541 = vmatmul.mubr.f32.gmra.mrb[54].mxu0 %v6250_v39  ;;  %v4187_v39 = vpack.c.bf16 %v611_v17, %v609_v19  ;;  %v615_v19 = vld [vmem:[%s5665_s29 + $0x638] sm:$0xff] }
 0x1a6   : > { %1033 = vmatmul.mubr.f32.gmra.mrb[56].mxu1 %v6266_v32  ;;  %1546 = vmatprep.mubr.f32.mxu0 %v6255_v57 }
 0x1a7   : > { %4118 = vmatpush1.bf16.xpose.msra.mxu1 %v4117_v9  ;;  %1038 = vmatprep.mubr.f32.mxu1 %v6269_v36  ;;  %v4309_v9 = vpack.c.bf16 %v788_v33, %v784_v27  ;;  %v792_v27 = vld [vmem:[%s5671_s9 + $0x3c0] sm:$0xff] }
 0x1a8   : > { %4120 = vmatprep.subr.bf16.mxu1 %v4119_v52  ;;  %v4121_v52 = vpack.c.bf16 %v542_v7, %v540_v6  ;;  %v796_v33 = vld [vmem:[%s5671_s9 + $0x3e0] sm:$0xff]  ;;  %v610_v6 = vld [vmem:[%s5665_s29 + $0x610] sm:$0xff]  ;;  %v613_v7 = vld [vmem:[%s5665_s29 + $0x628] sm:$0xff] }
 0x1a9   : > { %1547 = vmatmul.mubr.f32.gmra.mrb[56].mxu0 %v6266_v32  ;;  %v4313_v17 = vpack.c.bf16 %v796_v33, %v792_v27  ;;  %v614_v27 = vld [vmem:[%s5665_s29 + $0x630] sm:$0xff]  ;;  %v617_v33 = vld [vmem:[%s5665_s29 + $0x648] sm:$0xff] }
 0x1aa   : > { %1039 = vmatmul.mubr.f32.gmra.mrb[58].mxu1 %v6278_v41  ;;  %1552 = vmatprep.mubr.f32.mxu0 %v6269_v36 }
 0x1ab   : > { %1044 = vmatprep.mubr.f32.mxu1 %v6283_v1  ;;  %4310 = vmatpush1.bf16.xpose.msra.mxu0 %v4309_v9  ;;  %v4191_v9 = vpack.c.bf16 %v615_v19, %v613_v7  ;;  %v618_v7 = vld [vmem:[%s5665_s29 + $0x650] sm:$0xff]  ;;  %v621_v19 = vld [vmem:[%s5665_s29 + $0x668] sm:$0xff] }
 0x1ac   : > { %4312 = vmatprep.subr.bf16.mxu0 %v4311_v40  ;;  %v6316_v40 = vld [vmem:[%s5657_s26 + $0x8] sm:$0xff] }
 0x1ad   : > { %1553 = vmatmul.mubr.f32.gmra.mrb[58].mxu0 %v6278_v41 }
 0x1ae   : > { %1045 = vmatmul.mubr.f32.gmra.mrb[60].mxu1 %v6294_v11  ;;  %1558 = vmatprep.mubr.f32.mxu0 %v6283_v1 }
 0x1af   : > { %4122 = vmatpush1.bf16.xpose.msra.mxu1 %v4121_v52  ;;  %1050 = vmatprep.mubr.f32.mxu1 %v6297_v49  ;;  %v612_v52 = vld [vmem:[%s5665_s29 + $0x620] sm:$0xff] }
 0x1b0   : > { %4188 = vmatprep.subr.bf16.mxu1 %v4187_v39  ;;  %v4189_v39 = vpack.c.bf16 %v610_v6, %v608_v63  ;;  %v619_v63 = vld [vmem:[%s5665_s29 + $0x658] sm:$0xff]  ;;  %v4193_v6 = vpack.c.bf16 %v614_v27, %v612_v52  ;;  %v629_v52 = vld [vmem:[%s5665_s29 + $0x6a8] sm:$0xff] }
 0x1b1   : > { %1559 = vmatmul.mubr.f32.gmra.mrb[60].mxu0 %v6294_v11  ;;  %v631_v27 = vld [vmem:[%s5665_s29 + $0x6b8] sm:$0xff] }
 0x1b2   : > { %1051 = vmatmul.mubr.f32.gmra.mrb[62].mxu1 %v6306_v55  ;;  %1564 = vmatprep.mubr.f32.mxu0 %v6297_v49 }
 0x1b3   : > { %1121 = vmatprep.mubr.f32.mxu1 %v6316_v40  ;;  %4314 = vmatpush1.bf16.xpose.msra.mxu0 %v4313_v17  ;;  %v623_v17 = vld [vmem:[%s5665_s29 + $0x678] sm:$0xff] }
 0x1b5   : > { %1565 = vmatmul.mubr.f32.gmra.mrb[62].mxu0 %v6306_v55 }
 0x1b6   : > { %1122 = vmatmul.mubr.f32.vlgmr.msra.gmra.mrb[64].mxu1 %v5878_v12  ;;  %v4195_v12 = vpack.c.bf16 %v619_v63, %v617_v33  ;;  %v633_v33 = vld [vmem:[%s5665_s29 + $0x6c8] sm:$0xff]  ;;  %v635_v63 = vld [vmem:[%s5665_s29 + $0x6d8] sm:$0xff] }
 0x1b7   : > { %4190 = vmatpush1.bf16.xpose.msra.mxu1 %v4189_v39  ;;  %1127 = vmatprep.mubr.f32.mxu1 %v5881_v14  ;;  %v616_v14 = vld [vmem:[%s5665_s29 + $0x640] sm:$0xff]  ;;  %v625_v39 = vld [vmem:[%s5665_s29 + $0x688] sm:$0xff] }
 0x1b8   : > { %4192 = vmatprep.subr.bf16.mxu1 %v4191_v9  ;;  %v627_v9 = vld [vmem:[%s5665_s29 + $0x698] sm:$0xff] }
 0x1ba   : > { %1128 = vmatmul.mubr.f32.gmra.mrb[66].mxu1 %v5890_v20  ;;  %v4197_v20 = vpack.c.bf16 %v618_v7, %v616_v14  ;;  %v641_v14 = vld [vmem:[%s5665_s29 + $0x708] sm:$0xff]  ;;  %v643_v7 = vld [vmem:[%s5665_s29 + $0x718] sm:$0xff] }
 0x1bb   : > { %1133 = vmatprep.mubr.f32.mxu1 %v5893_v21  ;;  %v4199_v21 = vpack.c.bf16 %v623_v17, %v621_v19  ;;  %v645_v19 = vld [vmem:[%s5665_s29 + $0x728] sm:$0xff]  ;;  %v647_v17 = vld [vmem:[%s5665_s29 + $0x738] sm:$0xff] }
 0x1be   : > { %1134 = vmatmul.mubr.f32.gmra.mrb[68].mxu1 %v5902_v28  ;;  %v620_v28 = vld [vmem:[%s5665_s29 + $0x660] sm:$0xff] }
 0x1bf   : > { %4194 = vmatpush1.bf16.xpose.msra.mxu1 %v4193_v6  ;;  %1139 = vmatprep.mubr.f32.mxu1 %v5906_v30  ;;  %v622_v30 = vld [vmem:[%s5665_s29 + $0x670] sm:$0xff]  ;;  %v637_v6 = vld [vmem:[%s5665_s29 + $0x6e8] sm:$0xff] }
 0x1c0   : > { %4196 = vmatprep.subr.bf16.mxu1 %v4195_v12  ;;  %v639_v12 = vld [vmem:[%s5665_s29 + $0x6f8] sm:$0xff] }
 0x1c2   : > { %1140 = vmatmul.mubr.f32.gmra.mrb[70].mxu1 %v5914_v34  ;;  %v4201_v34 = vpack.c.bf16 %v622_v30, %v620_v28  ;;  %v653_v28 = vld [vmem:[%s5665_s29 + $0x768] sm:$0xff]  ;;  %v655_v30 = vld [vmem:[%s5665_s29 + $0x778] sm:$0xff] }
 0x1c3   : > { %1145 = vmatprep.mubr.f32.mxu1 %v5919_v37  ;;  %v4203_v37 = vpack.c.bf16 %v627_v9, %v625_v39  ;;  %v657_v9 = vld [vmem:[%s5665_s29 + $0x788] sm:$0xff] }
 0x1c6   : > { %1146 = vmatmul.mubr.f32.gmra.mrb[72].mxu1 %v5930_v44  ;;  %v624_v44 = vld [vmem:[%s5665_s29 + $0x680] sm:$0xff] }
 0x1c7   : > { %4198 = vmatpush1.bf16.xpose.msra.mxu1 %v4197_v20  ;;  %1151 = vmatprep.mubr.f32.mxu1 %v5933_v46  ;;  %v626_v46 = vld [vmem:[%s5665_s29 + $0x690] sm:$0xff]  ;;  %v649_v20 = vld [vmem:[%s5665_s29 + $0x748] sm:$0xff] }
 0x1c8   : > { %4200 = vmatprep.subr.bf16.mxu1 %v4199_v21  ;;  %v651_v21 = vld [vmem:[%s5665_s29 + $0x758] sm:$0xff] }
 0x1ca   : > { %1152 = vmatmul.mubr.f32.gmra.mrb[74].mxu1 %v5942_v50  ;;  %v4205_v50 = vpack.c.bf16 %v626_v46, %v624_v44 }
 0x1cb   : > { %1157 = vmatprep.mubr.f32.mxu1 %v5947_v53  ;;  %v4207_v53 = vpack.c.bf16 %v631_v27, %v629_v52  ;;  %v675_v27 = vld [vmem:[%s5671_s9 + $0x18] sm:$0xff] }
 0x1ce   : > { %1158 = vmatmul.mubr.f32.gmra.mrb[76].mxu1 %v5958_v60  ;;  %v628_v60 = vld [vmem:[%s5665_s29 + $0x6a0] sm:$0xff] }
 0x1cf   : > { %4202 = vmatpush1.bf16.xpose.msra.mxu1 %v4201_v34  ;;  %1163 = vmatprep.mubr.f32.mxu1 %v5961_v62  ;;  %v630_v62 = vld [vmem:[%s5665_s29 + $0x6b0] sm:$0xff]  ;;  %v659_v34 = vld [vmem:[%s5665_s29 + $0x798] sm:$0xff] }
 0x1d0   : > { %4204 = vmatprep.subr.bf16.mxu1 %v4203_v37 }
 0x1d2   : > { %1164 = vmatmul.mubr.f32.gmra.mrb[78].mxu1 %v5970_v2  ;;  %v4209_v2 = vpack.c.bf16 %v630_v62, %v628_v60 }
 0x1d3   : > { %1169 = vmatprep.mubr.f32.mxu1 %v5975_v5  ;;  %v4211_v5 = vpack.c.bf16 %v635_v63, %v633_v33  ;;  %v656_v33 = vld [vmem:[%s5665_s29 + $0x780] sm:$0xff]  ;;  %v658_v63 = vld [vmem:[%s5665_s29 + $0x790] sm:$0xff] }
 0x1d6   : > { %1170 = vmatmul.mubr.f32.gmra.mrb[80].mxu1 %v5986_v13  ;;  %v632_v13 = vld [vmem:[%s5665_s29 + $0x6c0] sm:$0xff] }
 0x1d7   : > { %4206 = vmatpush1.bf16.xpose.msra.mxu1 %v4205_v50  ;;  %1175 = vmatprep.mubr.f32.mxu1 %v5989_v16  ;;  %v634_v16 = vld [vmem:[%s5665_s29 + $0x6d0] sm:$0xff] }
 0x1d8   : > { %4208 = vmatprep.subr.bf16.mxu1 %v4207_v53  ;;  %v7511_v53 = vld [vmem:[#allocation22_spill] sm:$0xff] }
 0x1da   : > { %1176 = vmatmul.mubr.f32.gmra.mrb[82].mxu1 %v5998_v22  ;;  %v4213_v22 = vpack.c.bf16 %v634_v16, %v632_v13 }
 0x1db   : > { %1181 = vmatprep.mubr.f32.mxu1 %v6003_v25  ;;  %v4215_v25 = vpack.c.bf16 %v639_v12, %v637_v6  ;;  %v7512_v6 = vld [vmem:[#allocation23_spill] sm:$0xff] }
 0x1de   : > { %1182 = vmatmul.mubr.f32.gmra.mrb[84].mxu1 %v6014_v35  ;;  %v636_v35 = vld [vmem:[%s5665_s29 + $0x6e0] sm:$0xff] }
 0x1df   : > { %4210 = vmatpush1.bf16.xpose.msra.mxu1 %v4209_v2  ;;  %1187 = vmatprep.mubr.f32.mxu1 %v6017_v38  ;;  %v638_v38 = vld [vmem:[%s5665_s29 + $0x6f0] sm:$0xff] }
 0x1e0   : > { %4212 = vmatprep.subr.bf16.mxu1 %v4211_v5  ;;  %v663_v5 = vld [vmem:[%s5665_s29 + $0x7b8] sm:$0xff] }
 0x1e2   : > { %1188 = vmatmul.mubr.f32.gmra.mrb[86].mxu1 %v6026_v42  ;;  %v4217_v42 = vpack.c.bf16 %v638_v38, %v636_v35 }
 0x1e3   : > { %1193 = vmatprep.mubr.f32.mxu1 %v6031_v47  ;;  %v4219_v47 = vpack.c.bf16 %v643_v7, %v641_v14 }
 0x1e6   : > { %1194 = vmatmul.mubr.f32.gmra.mrb[88].mxu1 %v6042_v56  ;;  %v640_v56 = vld [vmem:[%s5665_s29 + $0x700] sm:$0xff] }
 0x1e7   : > { %4214 = vmatpush1.bf16.xpose.msra.mxu1 %v4213_v22  ;;  %1199 = vmatprep.mubr.f32.mxu1 %v6045_v58  ;;  %v642_v58 = vld [vmem:[%s5665_s29 + $0x710] sm:$0xff] }
 0x1e8   : > { %4216 = vmatprep.subr.bf16.mxu1 %v4215_v25  ;;  %v7513_v22 = vld [vmem:[#allocation24_spill] sm:$0xff]  ;;  %v4237_v25 = vpack.c.bf16 %v658_v63, %v656_v33 }
 0x1ea   : > { %1200 = vmatmul.mubr.f32.gmra.mrb[90].mxu1 %v6054_v0  ;;  %v4221_v0 = vpack.c.bf16 %v642_v58, %v640_v56  ;;  %v7514_v58 = vld [vmem:[#allocation25_spill] sm:$0xff] }
 0x1eb   : > { %1205 = vmatprep.mubr.f32.mxu1 %v6059_v4  ;;  %v4223_v4 = vpack.c.bf16 %v647_v17, %v645_v19 }
 0x1ee   : > { %1206 = vmatmul.mubr.f32.gmra.mrb[92].mxu1 %v6070_v15  ;;  %v644_v15 = vld [vmem:[%s5665_s29 + $0x720] sm:$0xff] }
 0x1ef   : > { %4218 = vmatpush1.bf16.xpose.msra.mxu1 %v4217_v42  ;;  %1211 = vmatprep.mubr.f32.mxu1 %v6073_v18  ;;  %v646_v18 = vld [vmem:[%s5665_s29 + $0x730] sm:$0xff] }
 0x1f0   : > { %4220 = vmatprep.subr.bf16.mxu1 %v4219_v47 }
 0x1f2   : > { %1212 = vmatmul.mubr.f32.gmra.mrb[94].mxu1 %v6082_v26  ;;  %v4225_v26 = vpack.c.bf16 %v646_v18, %v644_v15 }
 0x1f3   : > { %1217 = vmatprep.mubr.f32.mxu1 %v6087_v31  ;;  %v4227_v31 = vpack.c.bf16 %v651_v21, %v649_v20  ;;  %v660_v20 = vld [vmem:[%s5665_s29 + $0x7a0] sm:$0xff]  ;;  %v662_v21 = vld [vmem:[%s5665_s29 + $0x7b0] sm:$0xff] }
 0x1f6   : > { %1218 = vmatmul.mubr.f32.gmra.mrb[96].mxu1 %v6098_v43  ;;  %v648_v43 = vld [vmem:[%s5665_s29 + $0x740] sm:$0xff] }
 0x1f7   : > { %4222 = vmatpush1.bf16.xpose.msra.mxu1 %v4221_v0  ;;  %1223 = vmatprep.mubr.f32.mxu1 %v6101_v48  ;;  %v650_v48 = vld [vmem:[%s5665_s29 + $0x750] sm:$0xff] }
 0x1f8   : > { %4224 = vmatprep.subr.bf16.mxu1 %v4223_v4  ;;  %v7515_v4 = vld [vmem:[#allocation26_spill] sm:$0xff] }
 0x1fa   : > { %1224 = vmatmul.mubr.f32.gmra.mrb[98].mxu1 %v6110_v54  ;;  %v4229_v54 = vpack.c.bf16 %v650_v48, %v648_v43  ;;  %v665_v43 = vld [vmem:[%s5665_s29 + $0x7c8] sm:$0xff]  ;;  %v667_v48 = vld [vmem:[%s5665_s29 + $0x7d8] sm:$0xff] }
 0x1fb   : > { %1229 = vmatprep.mubr.f32.mxu1 %v6115_v59  ;;  %v4231_v59 = vpack.c.bf16 %v655_v30, %v653_v28 }
 0x1fe   : > { %1230 = vmatmul.mubr.f32.gmra.mrb[100].mxu1 %v6126_v8  ;;  %v652_v8 = vld [vmem:[%s5665_s29 + $0x760] sm:$0xff] }
 0x1ff   : > { %4226 = vmatpush1.bf16.xpose.msra.mxu1 %v4225_v26  ;;  %1235 = vmatprep.mubr.f32.mxu1 %v6129_v10  ;;  %v654_v10 = vld [vmem:[%s5665_s29 + $0x770] sm:$0xff] }
 0x200   : > { %4228 = vmatprep.subr.bf16.mxu1 %v4227_v31 }
 0x202   : > { %1236 = vmatmul.mubr.f32.gmra.mrb[102].mxu1 %v6138_v23 }
 0x203   : > { %1241 = vmatprep.mubr.f32.mxu1 %v6143_v29 }
 0x206   : > { %1242 = vmatmul.mubr.f32.gmra.mrb[104].mxu1 %v6154_v45  ;;  %v4233_v45 = vpack.c.bf16 %v654_v10, %v652_v8 }
 0x207   : > { %4230 = vmatpush1.bf16.xpose.msra.mxu1 %v4229_v54  ;;  %1247 = vmatprep.mubr.f32.mxu1 %v6157_v51  ;;  %v4235_v51 = vpack.c.bf16 %v659_v34, %v657_v9  ;;  %v7517_v34 = vld [vmem:[#allocation28_spill] sm:$0xff] }
 0x208   : > { %4232 = vmatprep.subr.bf16.mxu1 %v4231_v59  ;;  %v7516_v59 = vld [vmem:[#allocation27_spill] sm:$0xff] }
 0x209   : > { %v6406_v39 = vpop.f32.mrb[0].mxu1 }
 0x20a   : > { %v3853_v23 = vmul.f32 -1.442695, %v6406_v39  ;;  %v6411_v37 = vpop.f32.mrb[1].mxu1  ;;  %1248 = vmatmul.mubr.f32.gmra.mrb[106].mxu1 %v6166_v61 }
 0x20b   : > { %v3854_v29 = vmul.f32 -1.442695, %v6411_v37  ;;  %1253 = vmatprep.mubr.f32.mxu1 %v6171_v3  ;;  %v679_v3 = vld [vmem:[%s5671_s9 + $0x38] sm:$0xff] }
 0x20c   : > { %4563 = vpow2.f32 %v3853_v23  ;;  %v6422_v61 = vpop.f32.mrb[0].mxu0  ;;  %v4315_v62 = vpack.c.bf16 %v679_v3, %v675_v27  ;;  %v4241_v23 = vpack.c.bf16 %v662_v21, %v660_v20 }
 0x20d   : > { %4565 = vpow2.f32 %v3854_v29  ;;  %v6416_v44 = vpop.f32.mrb[2].mxu1  ;;  %v6428_v60 = vpop.f32.mrb[1].mxu0 }
 0x20e   : > { %v3857_v46 = vmul.f32 -1.442695, %v6416_v44  ;;  %v6419_v52 = vpop.f32.mrb[3].mxu1  ;;  %1254 = vmatmul.mubr.f32.gmra.mrb[108].mxu1 %v6182_v24  ;;  %v661_v24 = vld [vmem:[%s5665_s29 + $0x7a8] sm:$0xff]  ;;  %4316 = vmatprep.subr.bf16.mxu0 %v4315_v62  ;;  %v7518_v62 = vld [vmem:[#allocation29_spill] sm:$0xff] }
 0x20f   : > { %v3858_v50 = vmul.f32 -1.442695, %v6419_v52  ;;  %4234 = vmatpush1.bf16.xpose.msra.mxu1 %v4233_v45  ;;  %1259 = vmatprep.mubr.f32.mxu1 %v7511_v53  ;;  %v4239_v38 = vpack.c.bf16 %v663_v5, %v661_v24  ;;  %v7519_v5 = vld [vmem:[#allocation30_spill] sm:$0xff] }
 0x210   : > { %4567 = vpow2.f32 %v3857_v46  ;;  %4236 = vmatprep.subr.bf16.mxu1 %v4235_v51  ;;  %v6442_v35 = vpop.f32.mrb[2].mxu0  ;;  %v4243_v51 = vpack.c.bf16 %v667_v48, %v665_v43 }
 0x211   : > { %4569 = vpow2.f32 %v3858_v50  ;;  %v6432_v2 = vpop.f32.mrb[4].mxu1  ;;  %v6444_v14 = vpop.f32.mrb[3].mxu0 }
 0x212   : > { %v3861_v13 = vmul.f32 -1.442695, %v6432_v2  ;;  %v6437_v16 = vpop.f32.mrb[5].mxu1  ;;  %1260 = vmatmul.mubr.f32.gmra.mrb[110].mxu1 %v7512_v6 }
 0x213   : > { %v3862_v12 = vmul.f32 -1.442695, %v6437_v16  ;;  %1265 = vmatprep.mubr.f32.mxu1 %v7513_v22  ;;  %v666_v22 = vld [vmem:[%s5665_s29 + $0x7d0] sm:$0xff] }
 0x214   : > { %4571 = vpow2.f32 %v3861_v13  ;;  %v6454_v15 = vpop.f32.mrb[4].mxu0 }
 0x215   : > { %4573 = vpow2.f32 %v3862_v12  ;;  %v6446_v7 = vpop.f32.mrb[6].mxu1  ;;  %v6458_v26 = vpop.f32.mrb[5].mxu0  ;;  %v664_v12 = vld [vmem:[%s5665_s29 + $0x7c0] sm:$0xff] }
 0x216   : > { %v4564_v42 = vpop.eup %4563  ;;  %v3865_v47 = vmul.f32 -1.442695, %v6446_v7  ;;  %v6449_v56 = vpop.f32.mrb[7].mxu1  ;;  %1266 = vmatmul.mubr.f32.gmra.mrb[112].mxu1 %v7514_v58  ;;  %v4245_v21 = vpack.c.bf16 %v666_v22, %v664_v12 }
 0x217   : > { %v4566_v19 = vpop.eup %4565  ;;  %v2212_v17 = vadd.f32 1.0, %v4564_v42  ;;  %v3866_v0 = vmul.f32 -1.442695, %v6449_v56  ;;  %4238 = vmatpush1.bf16.xpose.msra.mxu1 %v4237_v25  ;;  %1271 = vmatprep.mubr.f32.mxu1 %v7515_v4  ;;  %v669_v42 = vld [vmem:[%s5665_s29 + $0x7e8] sm:$0xff] }
 0x218   : > { %v2213_v18 = vadd.f32 1.0, %v4566_v19  ;;  %4575 = vpow2.f32 %v3865_v47  ;;  %4240 = vmatprep.subr.bf16.mxu1 %v4239_v38  ;;  %v6470_v29 = vpop.f32.mrb[6].mxu0  ;;  %v671_v47 = vld [vmem:[%s5665_s29 + $0x7f8] sm:$0xff] }
 0x219   : > { %4577 = vrcp.f32 %v2212_v17  ;;  %v6460_v31 = vpop.f32.mrb[8].mxu1  ;;  %v6472_v46 = vpop.f32.mrb[7].mxu0 }
 0x21a   : > { %v4568_v28 = vpop.eup %4567  ;;  %4579 = vrcp.f32 %v2213_v18  ;;  %v3869_v30 = vmul.f32 -1.442695, %v6460_v31  ;;  %v6465_v54 = vpop.f32.mrb[9].mxu1  ;;  %1272 = vmatmul.mubr.f32.gmra.mrb[114].mxu1 %v7516_v59 }
 0x21b   : > { %v4570_v8 = vpop.eup %4569  ;;  %v2216_v10 = vadd.f32 1.0, %v4568_v28  ;;  %4581 = vpow2.f32 %v3866_v0  ;;  %v3870_v9 = vmul.f32 -1.442695, %v6465_v54  ;;  %1277 = vmatprep.mubr.f32.mxu1 %v7517_v34  ;;  %v7520_v0 = vld [vmem:[#allocation31_spill] sm:$0xff] }
 0x21c   : > { %v2217_v45 = vadd.f32 1.0, %v4570_v8  ;;  %4583 = vpow2.f32 %v3869_v30  ;;  %v6482_v13 = vpop.f32.mrb[8].mxu0  ;;  %v4247_v30 = vpack.c.bf16 %v671_v47, %v669_v42  ;;  %v674_v8 = vld [vmem:[%s5671_s9 + $0x10] sm:$0xff] }
 0x21d   : > { %4585 = vrcp.f32 %v2216_v10  ;;  %v6474_v27 = vpop.f32.mrb[10].mxu1  ;;  %v6486_v25 = vpop.f32.mrb[9].mxu0  ;;  %v678_v10 = vld [vmem:[%s5671_s9 + $0x30] sm:$0xff] }
 0x21e   : > { %v4572_v3 = vpop.eup %4571  ;;  %4587 = vrcp.f32 %v2217_v45  ;;  %v3873_v50 = vmul.f32 -1.442695, %v6474_v27  ;;  %v6477_v53 = vpop.f32.mrb[11].mxu1  ;;  %1278 = vmatmul.mubr.f32.gmra.mrb[116].mxu1 %v7518_v62  ;;  %v687_v45 = vld [vmem:[%s5671_s9 + $0x78] sm:$0xff] }
 0x21f   : > { %v4574_v33 = vpop.eup %4573  ;;  %v2220_v63 = vadd.f32 1.0, %v4572_v3  ;;  %4589 = vpow2.f32 %v3870_v9  ;;  %v3874_v24 = vmul.f32 -1.442695, %v6477_v53  ;;  %4242 = vmatpush1.bf16.xpose.msra.mxu1 %v4241_v23  ;;  %1283 = vmatprep.mubr.f32.mxu1 %v7519_v5 }
 0x220   : > { %v2221_v6 = vadd.f32 1.0, %v4574_v33  ;;  %4591 = vpow2.f32 %v3873_v50  ;;  %4244 = vmatprep.subr.bf16.mxu1 %v4243_v51  ;;  %v6498_v43 = vpop.f32.mrb[10].mxu0  ;;  %v6516_v33 = vld [vmem:[%s5665_s29 + $0x7e0] sm:$0xff] }
 0x221   : > { %4593 = vrcp.f32 %v2220_v63  ;;  %v6488_v38 = vpop.f32.mrb[12].mxu1  ;;  %v6501_v59 = vpop.f32.mrb[11].mxu0  ;;  %v6519_v63 = vld [vmem:[%s5665_s29 + $0x7f0] sm:$0xff] }
 0x222   : > { %v4576_v58 = vpop.eup %4575  ;;  %4595 = vrcp.f32 %v2221_v6  ;;  %v3877_v19 = vmul.f32 -1.442695, %v6488_v38  ;;  %v6493_v17 = vpop.f32.mrb[13].mxu1  ;;  %1284 = vmatmul.mubr.f32.gmra.mrb[118].mxu1 %v7520_v0 }
 0x223   : > { %v4578_v4 = vpop.eup %4577  ;;  %v2224_v18 = vadd.f32 1.0, %v4576_v58  ;;  %4597 = vpow2.f32 %v3874_v24  ;;  %v3878_v20 = vmul.f32 -1.442695, %v6493_v17  ;;  %1289 = vmatprep.mubr.f32.mxu1 %v6255_v57  ;;  %v683_v57 = vld [vmem:[%s5671_s9 + $0x58] sm:$0xff] }
 0x224   : > { %v4580_v48 = vpop.eup %4579  ;;  %v2596_v28 = vmul.f32 %v4578_v4, %v6406_v39  ;;  %4599 = vpow2.f32 %v3877_v19  ;;  %v6524_v12 = vpop.f32.mrb[12].mxu0  ;;  %v4319_v47 = vpack.c.bf16 %v687_v45, %v683_v57  ;;  %v695_v45 = vld [vmem:[%s5671_s9 + $0xb8] sm:$0xff] }
 0x225   : > { %v4582_v9 = vpop.eup %4581  ;;  %v2597_v34 = vmul.f32 %v4580_v48, %v6411_v37  ;;  %4601 = vrcp.f32 %v2224_v18  ;;  %v6506_v23 = vpop.f32.mrb[14].mxu1 }
 0x226   : > { %v4584_v51 = vpop.eup %4583  ;;  %v2225_v3 = vadd.f32 1.0, %v4582_v9  ;;  %4603 = vpow2.f32 %v3878_v20  ;;  %v3881_v39 = vmul.f32 -1.442695, %v6506_v23  ;;  %v2724_v50 = vmul.f32 %v2596_v28, %v6422_v61  ;;  %v6512_v62 = vpop.f32.mrb[15].mxu1  ;;  %1290 = vmatmul.mubr.f32.gmra.mrb[120].mxu1 %v6266_v32  ;;  %v686_v9 = vld [vmem:[%s5671_s9 + $0x70] sm:$0xff] }
 0x227   : > { %v4586_v37 = vpop.eup %4585  ;;  %v2228_v24 = vadd.f32 1.0, %v4584_v51  ;;  %v3882_v5 = vmul.f32 -1.442695, %v6512_v62  ;;  %v2725_v6 = vmul.f32 %v2597_v34, %v6428_v60  ;;  %4246 = vmatpush1.bf16.xpose.msra.mxu1 %v4245_v21  ;;  %1295 = vmatprep.mubr.f32.mxu1 %v6269_v36  ;;  %v4317_v61 = vpack.c.bf16 %v678_v10, %v674_v8  ;;  %v6527_v32 = vpop.f32.mrb[13].mxu0  ;;  %v682_v10 = vld [vmem:[%s5671_s9 + $0x50] sm:$0xff] }
 0x228   : > { %v4588_v22 = vpop.eup %4587  ;;  %v2600_v42 = vmul.f32 %v4586_v37, %v6416_v44  ;;  %4605 = vrcp.f32 %v2225_v3  ;;  %4248 = vmatprep.subr.bf16.mxu1 %v4247_v30  ;;  %v4249_v36 = vpack.c.bf16 %v6519_v63, %v6516_v33  ;;  %v6542_v30 = vpop.f32.mrb[14].mxu0 }
 0x229   : > { %v4590_v58 = vpop.eup %4589  ;;  %v2601_v19 = vmul.f32 %v4588_v22, %v6419_v52  ;;  %4607 = vrcp.f32 %v2228_v24  ;;  %v6530_v0 = vpop.f32.mrb[16].mxu1  ;;  %2980 = vmatprep.mubr.f32.mxu0 %v2725_v6  ;;  %v4321_v24 = vpack.c.bf16 %v686_v9, %v682_v10  ;;  %v5076_v10 = vld [vmem:[%s5657_s26] sm:$0xff]  ;;  %v699_v9 = vld [vmem:[%s5671_s9 + $0xd8] sm:$0xff] }
 0x22a   : > { %v4592_v60 = vpop.eup %4591  ;;  %v2229_v4 = vadd.f32 1.0, %v4590_v58  ;;  %4609 = vpow2.f32 %v3881_v39  ;;  %v3885_v44 = vmul.f32 -1.442695, %v6530_v0  ;;  %v2728_v18 = vmul.f32 %v2600_v42, %v6442_v35  ;;  %v6536_v20 = vpop.f32.mrb[17].mxu1  ;;  %1296 = vmatmul.mubr.f32.gmra.mrb[122].mxu1 %v6278_v41  ;;  %2981 = vmatmul.mubr.f32.vlgmr.msra.gmra.mrb[64].mxu0 %v2724_v50 }
 0x22b   : > { %v4594_v52 = vpop.eup %4593  ;;  %v2232_v21 = vadd.f32 1.0, %v4592_v60  ;;  %4611 = vpow2.f32 %v3882_v5  ;;  %v3886_v48 = vmul.f32 -1.442695, %v6536_v20  ;;  %v2729_v28 = vmul.f32 %v2601_v19, %v6444_v14  ;;  %1301 = vmatprep.mubr.f32.mxu1 %v6283_v1  ;;  %4318 = vmatpush1.bf16.xpose.msra.mxu0 %v4317_v61  ;;  %v6545_v41 = vpop.f32.mrb[15].mxu0  ;;  %v691_v1 = vld [vmem:[%s5671_s9 + $0x98] sm:$0xff] }
 0x22c   : > { %v4596_v35 = vpop.eup %4595  ;;  %v2604_v8 = vmul.f32 %v4594_v52, %v6432_v2  ;;  %4613 = vrcp.f32 %v2229_v4  ;;  %4320 = vmatprep.subr.bf16.mxu0 %v4319_v47  ;;  %v6561_v37 = vpop.f32.mrb[16].mxu0 }
 0x22d   : > { %v4598_v34 = vpop.eup %4597  ;;  %v2605_v57 = vmul.f32 %v4596_v35, %v6437_v16  ;;  %4615 = vrcp.f32 %v2232_v21  ;;  %v6550_v14 = vpop.f32.mrb[18].mxu1  ;;  %2986 = vmatprep.mubr.f32.mxu0 %v2729_v28  ;;  %v694_v21 = vld [vmem:[%s5671_s9 + $0xb0] sm:$0xff] }
 0x22e   : > { %v4600_v51 = vpop.eup %4599  ;;  %v2233_v3 = vadd.f32 1.0, %v4598_v34  ;;  %4617 = vpow2.f32 %v3885_v44  ;;  %v3889_v2 = vmul.f32 -1.442695, %v6550_v14  ;;  %v2732_v39 = vmul.f32 %v2604_v8, %v6454_v15  ;;  %v6556_v50 = vpop.f32.mrb[19].mxu1  ;;  %1302 = vmatmul.mubr.f32.gmra.mrb[124].mxu1 %v6294_v11  ;;  %2987 = vmatmul.mubr.f32.gmra.mrb[66].mxu0 %v2728_v18  ;;  %v703_v34 = vld [vmem:[%s5671_s9 + $0xf8] sm:$0xff] }
 0x22f   : > { %v4602_v33 = vpop.eup %4601  ;;  %v2236_v16 = vadd.f32 1.0, %v4600_v51  ;;  %4619 = vpow2.f32 %v3886_v48  ;;  %v2733_v63 = vmul.f32 %v2605_v57, %v6458_v26  ;;  %4250 = vmatpush1.bf16.xpose.msra.mxu1 %v4249_v36  ;;  %1307 = vmatprep.mubr.f32.mxu1 %v6297_v49  ;;  %v3890_v15 = vmul.f32 -1.442695, %v6556_v50  ;;  %v6565_v61 = vpop.f32.mrb[17].mxu0 }
 0x230   : > { %v4604_v5 = vpop.eup %4603  ;;  %v2608_v6 = vmul.f32 %v4602_v33, %v6446_v7  ;;  %4621 = vrcp.f32 %v2233_v3  ;;  %v4323_v11 = vpack.c.bf16 %v695_v45, %v691_v1  ;;  %v6577_v60 = vpop.f32.mrb[18].mxu0  ;;  %v5077_v45 = vld [vmem:[%s5657_s26 + $0x18] sm:$0xff] }
 0x231   : > { %4623 = vrcp.f32 %v2236_v16  ;;  %v2237_v22 = vadd.f32 1.0, %v4604_v5  ;;  %v6567_v42 = vpop.f32.mrb[20].mxu1  ;;  %2992 = vmatprep.mubr.f32.mxu0 %v2733_v63 }
 0x232   : > { %v4606_v26 = vpop.eup %4605  ;;  %4625 = vpow2.f32 %v3889_v2  ;;  %v3893_v49 = vmul.f32 -1.442695, %v6567_v42  ;;  %v2736_v47 = vmul.f32 %v2608_v6, %v6470_v29  ;;  %v6571_v58 = vpop.f32.mrb[21].mxu1  ;;  %1308 = vmatmul.mubr.f32.gmra.mrb[126].mxu1 %v6306_v55  ;;  %2993 = vmatmul.mubr.f32.gmra.mrb[68].mxu0 %v2732_v39 }
 0x233   : > { %v4608_v7 = vpop.eup %4607  ;;  %v2609_v19 = vmul.f32 %v4606_v26, %v6449_v56  ;;  %4627 = vrcp.f32 %v2237_v22  ;;  %v3894_v36 = vmul.f32 -1.442695, %v6571_v58  ;;  %1635 = vmatprep.mubr.f32.mxu1 %v6316_v40  ;;  %4322 = vmatpush1.bf16.xpose.msra.mxu0 %v4321_v24  ;;  %v6580_v55 = vpop.f32.mrb[19].mxu0  ;;  %v690_v40 = vld [vmem:[%s5671_s9 + $0x90] sm:$0xff]  ;;  %v4327_v24 = vpack.c.bf16 %v703_v34, %v699_v9  ;;  %v707_v9 = vld [vmem:[%s5671_s9 + $0x118] sm:$0xff] }
 0x234   : > { %v4610_v4 = vpop.eup %4609  ;;  %v2612_v29 = vmul.f32 %v4608_v7, %v6460_v31  ;;  %4629 = vpow2.f32 %v3890_v15  ;;  %4324 = vmatprep.subr.bf16.mxu0 %v4323_v11  ;;  %v6597_v51 = vpop.f32.mrb[20].mxu0  ;;  %v4325_v39 = vpack.c.bf16 %v694_v21, %v690_v40  ;;  %v5078_v22 = vld [vmem:[%s5657_s26 + $0x10] sm:$0xff]  ;;  %v711_v34 = vld [vmem:[%s5671_s9 + $0x138] sm:$0xff] }
 0x235   : > { %v4612_v56 = vpop.eup %4611  ;;  %v2240_v44 = vadd.f32 1.0, %v4610_v4  ;;  %4631 = vpow2.f32 %v3893_v49  ;;  %v2737_v18 = vmul.f32 %v2609_v19, %v6472_v46  ;;  %v6583_v52 = vpop.f32.mrb[22].mxu1 }
 0x236   : > { %v4614_v48 = vpop.eup %4613  ;;  %v2241_v28 = vadd.f32 1.0, %v4612_v56  ;;  %4633 = vpow2.f32 %v3894_v36  ;;  %v3897_v31 = vmul.f32 -1.442695, %v6583_v52  ;;  %v2740_v35 = vmul.f32 %v2612_v29, %v6482_v13  ;;  %v6589_v8 = vpop.f32.mrb[23].mxu1  ;;  %1636 = vmatmul.mubr.f32.vlgmr.msra.gmra.mrb[128].mxu1 %v5076_v10  ;;  %v5081_v10 = vld [vmem:[%s5657_s26 + $0x38] sm:$0xff] }
 0x237   : > { %v4616_v57 = vpop.eup %4615  ;;  %v2613_v46 = vmul.f32 %v4614_v48, %v6465_v54  ;;  %4635 = vrcp.f32 %v2240_v44  ;;  %2998 = vmatprep.mubr.f32.mxu0 %v2737_v18  ;;  %v3898_v1 = vmul.f32 -1.442695, %v6589_v8  ;;  %1641 = vmatprep.mubr.f32.mxu1 %v5077_v45  ;;  %v6600_v2 = vpop.f32.mrb[21].mxu0  ;;  %v5080_v48 = vld [vmem:[%s5657_s26 + $0x20] sm:$0xff] }
 0x238   : > { %v4618_v3 = vpop.eup %4617  ;;  %v2616_v13 = vmul.f32 %v4616_v57, %v6474_v27  ;;  %4637 = vrcp.f32 %v2241_v28  ;;  %2999 = vmatmul.mubr.f32.gmra.mrb[70].mxu0 %v2736_v47  ;;  %v5079_v47 = vld [vmem:[%s5657_s26 + $0x28] sm:$0xff]  ;;  %v6613_v7 = vpop.f32.mrb[22].mxu0  ;;  %v702_v28 = vld [vmem:[%s5671_s9 + $0xf0] sm:$0xff] }
 0x239   : > { %v4620_v33 = vpop.eup %4619  ;;  %v2244_v16 = vadd.f32 1.0, %v4618_v3  ;;  %4639 = vpow2.f32 %v3897_v31  ;;  %v2741_v54 = vmul.f32 %v2613_v46, %v6486_v25  ;;  %v6603_v63 = vpop.f32.mrb[24].mxu1 }
 0x23a   : > { %v4622_v5 = vpop.eup %4621  ;;  %v2245_v6 = vadd.f32 1.0, %v4620_v33  ;;  %4641 = vpow2.f32 %v3898_v1  ;;  %v3901_v27 = vmul.f32 -1.442695, %v6603_v63  ;;  %v2744_v15 = vmul.f32 %v2616_v13, %v6498_v43  ;;  %v6607_v11 = vpop.f32.mrb[25].mxu1  ;;  %1642 = vmatmul.mubr.f32.gmra.mrb[130].mxu1 %v5078_v22  ;;  %v5083_v22 = vld [vmem:[%s5657_s26 + $0x48] sm:$0xff] }
 0x23b   : > { %v4624_v26 = vpop.eup %4623  ;;  %v2617_v49 = vmul.f32 %v4622_v5, %v6477_v53  ;;  %4643 = vrcp.f32 %v2244_v16  ;;  %3004 = vmatprep.mubr.f32.mxu0 %v2741_v54  ;;  %v3902_v25 = vmul.f32 -1.442695, %v6607_v11  ;;  %1647 = vmatprep.mubr.f32.mxu1 %v5079_v47  ;;  %v6616_v43 = vpop.f32.mrb[23].mxu0 }
 0x23c   : > { %v4626_v19 = vpop.eup %4625  ;;  %v2620_v36 = vmul.f32 %v4624_v26, %v6488_v38  ;;  %4645 = vrcp.f32 %v2245_v6  ;;  %3005 = vmatmul.mubr.f32.gmra.mrb[72].mxu0 %v2740_v35  ;;  %v4331_v6 = vpack.c.bf16 %v711_v34, %v707_v9 }
 0x23d   : > { %v4628_v4 = vpop.eup %4627  ;;  %v2248_v53 = vadd.f32 1.0, %v4626_v19  ;;  %4647 = vpow2.f32 %v3901_v27  ;;  %v2745_v29 = vmul.f32 %v2617_v49, %v6501_v59  ;;  %v6619_v56 = vpop.f32.mrb[26].mxu1  ;;  %4326 = vmatpush1.bf16.xpose.msra.mxu0 %v4325_v39  ;;  %v698_v59 = vld [vmem:[%s5671_s9 + $0xd0] sm:$0xff] }
 0x23e   : > { %v4630_v44 = vpop.eup %4629  ;;  %v2621_v18 = vmul.f32 %v4628_v4, %v6493_v17  ;;  %4649 = vpow2.f32 %v3902_v25  ;;  %v3905_v38 = vmul.f32 -1.442695, %v6619_v56  ;;  %v2748_v40 = vmul.f32 %v2620_v36, %v6524_v12  ;;  %v6624_v21 = vpop.f32.mrb[27].mxu1  ;;  %1648 = vmatmul.mubr.f32.gmra.mrb[132].mxu1 %v5080_v48  ;;  %4328 = vmatprep.subr.bf16.mxu0 %v4327_v24  ;;  %v710_v48 = vld [vmem:[%s5671_s9 + $0x130] sm:$0xff] }
 0x23f   : > { %v4632_v31 = vpop.eup %4631  ;;  %4651 = vrcp.f32 %v2248_v53  ;;  %v2249_v35 = vadd.f32 1.0, %v4630_v44  ;;  %3010 = vmatprep.mubr.f32.mxu0 %v2745_v29  ;;  %1653 = vmatprep.mubr.f32.mxu1 %v5081_v10  ;;  %v6630_v17 = vpop.f32.mrb[24].mxu0  ;;  %v3906_v12 = vmul.f32 -1.442695, %v6624_v21  ;;  %v4329_v33 = vpack.c.bf16 %v702_v28, %v698_v59  ;;  %v5085_v28 = vld [vmem:[%s5657_s26 + $0x58] sm:$0xff] }
 0x240   : > { %v4634_v57 = vpop.eup %4633  ;;  %v2252_v46 = vadd.f32 1.0, %v4632_v31  ;;  %4653 = vpow2.f32 %v3905_v38  ;;  %v2749_v1 = vmul.f32 %v2621_v18, %v6527_v32  ;;  %3011 = vmatmul.mubr.f32.gmra.mrb[74].mxu0 %v2744_v15  ;;  %v6636_v45 = vpop.f32.mrb[25].mxu0  ;;  %v5082_v32 = vld [vmem:[%s5657_s26 + $0x30] sm:$0xff]  ;;  %v5084_v38 = vld [vmem:[%s5657_s26 + $0x40] sm:$0xff]  ;;  %v715_v31 = vld [vmem:[%s5671_s9 + $0x158] sm:$0xff] }
 0x241   : > { %v4636_v3 = vpop.eup %4635  ;;  %4655 = vrcp.f32 %v2249_v35  ;;  %v2253_v13 = vadd.f32 1.0, %v4634_v57  ;;  %v6638_v39 = vpop.f32.mrb[28].mxu1  ;;  %v719_v35 = vld [vmem:[%s5671_s9 + $0x178] sm:$0xff] }
 0x242   : > { %v4638_v16 = vpop.eup %4637  ;;  %v2624_v54 = vmul.f32 %v4636_v3, %v6506_v23  ;;  %4657 = vrcp.f32 %v2252_v46  ;;  %v3909_v24 = vmul.f32 -1.442695, %v6638_v39  ;;  %3016 = vmatprep.mubr.f32.mxu0 %v2749_v1  ;;  %v6642_v5 = vpop.f32.mrb[29].mxu1  ;;  %1654 = vmatmul.mubr.f32.gmra.mrb[134].mxu1 %v5082_v32  ;;  %v4335_v32 = vpack.c.bf16 %v719_v35, %v715_v31 }
 0x243   : > { %v4640_v27 = vpop.eup %4639  ;;  %v2625_v15 = vmul.f32 %v4638_v16, %v6512_v62  ;;  %4659 = vrcp.f32 %v2253_v13  ;;  %1659 = vmatprep.mubr.f32.mxu1 %v5083_v22  ;;  %v6647_v26 = vpop.f32.mrb[26].mxu0  ;;  %v3910_v47 = vmul.f32 -1.442695, %v6642_v5 }
 0x244   : > { %v4642_v49 = vpop.eup %4641  ;;  %v2256_v25 = vadd.f32 1.0, %v4640_v27  ;;  %4661 = vpow2.f32 %v3906_v12  ;;  %v2752_v23 = vmul.f32 %v2624_v54, %v6542_v30  ;;  %3017 = vmatmul.mubr.f32.gmra.mrb[76].mxu0 %v2748_v40  ;;  %v6651_v19 = vpop.f32.mrb[27].mxu0  ;;  %v706_v40 = vld [vmem:[%s5671_s9 + $0x110] sm:$0xff] }
 0x245   : > { %v4644_v36 = vpop.eup %4643  ;;  %v2257_v62 = vadd.f32 1.0, %v4642_v49  ;;  %4663 = vpow2.f32 %v3909_v24  ;;  %v2753_v4 = vmul.f32 %v2625_v15, %v6545_v41  ;;  %v6654_v53 = vpop.f32.mrb[30].mxu1  ;;  %4330 = vmatpush1.bf16.xpose.msra.mxu0 %v4329_v33  ;;  %v4333_v13 = vpack.c.bf16 %v710_v48, %v706_v40  ;;  %v5086_v24 = vld [vmem:[%s5657_s26 + $0x50] sm:$0xff]  ;;  %v5087_v15 = vld [vmem:[%s5657_s26 + $0x68] sm:$0xff] }
 0x246   : > { %v4646_v29 = vpop.eup %4645  ;;  %v2628_v44 = vmul.f32 %v4644_v36, %v6530_v0  ;;  %4665 = vrcp.f32 %v2256_v25  ;;  %v3913_v30 = vmul.f32 -1.442695, %v6654_v53  ;;  %v6658_v18 = vpop.f32.mrb[31].mxu1  ;;  %1660 = vmatmul.mubr.f32.gmra.mrb[136].mxu1 %v5084_v38  ;;  %4332 = vmatprep.subr.bf16.mxu0 %v4331_v6 }
 0x247   : > { %v4648_v41 = vpop.eup %4647  ;;  %v2629_v59 = vmul.f32 %v4646_v29, %v6536_v20  ;;  %4667 = vrcp.f32 %v2257_v62  ;;  %3022 = vmatprep.mubr.f32.mxu0 %v2753_v4  ;;  %1665 = vmatprep.mubr.f32.mxu1 %v5085_v28  ;;  %v6665_v0 = vpop.f32.mrb[28].mxu0  ;;  %v3914_v57 = vmul.f32 -1.442695, %v6658_v18 }
 0x248   : > { %v4650_v10 = vpop.eup %4649  ;;  %v2260_v9 = vadd.f32 1.0, %v4648_v41  ;;  %4669 = vpow2.f32 %v3910_v47  ;;  %v2756_v34 = vmul.f32 %v2628_v44, %v6561_v37  ;;  %3023 = vmatmul.mubr.f32.gmra.mrb[78].mxu0 %v2752_v23  ;;  %v6671_v46 = vpop.f32.mrb[29].mxu0 }
 0x249   : > { %v4652_v20 = vpop.eup %4651  ;;  %v2261_v12 = vadd.f32 1.0, %v4650_v10  ;;  %4671 = vpow2.f32 %v3913_v30  ;;  %v2757_v1 = vmul.f32 %v2629_v59, %v6565_v61  ;;  %v6674_v3 = vpop.f32.mrb[32].mxu1  ;;  %v5088_v30 = vld [vmem:[%s5657_s26 + $0x60] sm:$0xff]  ;;  %v718_v59 = vld [vmem:[%s5671_s9 + $0x170] sm:$0xff] }
 0x24a   : > { %v4654_v33 = vpop.eup %4653  ;;  %v2632_v16 = vmul.f32 %v4652_v20, %v6550_v14  ;;  %4673 = vrcp.f32 %v2260_v9  ;;  %v3917_v37 = vmul.f32 -1.442695, %v6674_v3  ;;  %v6678_v54 = vpop.f32.mrb[33].mxu1  ;;  %1666 = vmatmul.mubr.f32.gmra.mrb[138].mxu1 %v5086_v24  ;;  %v727_v20 = vld [vmem:[%s5671_s9 + $0x1b8] sm:$0xff] }
 0x24b   : > { %v4656_v6 = vpop.eup %4655  ;;  %4675 = vrcp.f32 %v2261_v12  ;;  %v2264_v27 = vadd.f32 1.0, %v4654_v33  ;;  %3028 = vmatprep.mubr.f32.mxu0 %v2757_v1  ;;  %v3918_v61 = vmul.f32 -1.442695, %v6678_v54  ;;  %1671 = vmatprep.mubr.f32.mxu1 %v5087_v15  ;;  %v6683_v22 = vpop.f32.mrb[30].mxu0  ;;  %v5090_v33 = vld [vmem:[%s5657_s26 + $0x70] sm:$0xff] }
 0x24c   : > { %v4658_v49 = vpop.eup %4657  ;;  %v2633_v14 = vmul.f32 %v4656_v6, %v6556_v50  ;;  %4677 = vpow2.f32 %v3914_v57  ;;  %v2760_v25 = vmul.f32 %v2632_v16, %v6577_v60  ;;  %3029 = vmatmul.mubr.f32.gmra.mrb[80].mxu0 %v2756_v34  ;;  %v6687_v23 = vpop.f32.mrb[31].mxu0  ;;  %v723_v57 = vld [vmem:[%s5671_s9 + $0x198] sm:$0xff]  ;;  %v5091_v6 = vld [vmem:[%s5657_s26 + $0x88] sm:$0xff] }
 0x24d   : > { %v4660_v47 = vpop.eup %4659  ;;  %v2636_v36 = vmul.f32 %v4658_v49, %v6567_v42  ;;  %4679 = vrcp.f32 %v2264_v27  ;;  %v6690_v62 = vpop.f32.mrb[34].mxu1  ;;  %4334 = vmatpush1.bf16.xpose.msra.mxu0 %v4333_v13 }
 0x24e   : > { %v4662_v4 = vpop.eup %4661  ;;  %v2637_v29 = vmul.f32 %v4660_v47, %v6571_v58  ;;  %4681 = vpow2.f32 %v3917_v37  ;;  %v2761_v50 = vmul.f32 %v2633_v14, %v6580_v55  ;;  %v3921_v60 = vmul.f32 -1.442695, %v6690_v62  ;;  %v6695_v44 = vpop.f32.mrb[35].mxu1  ;;  %1672 = vmatmul.mubr.f32.gmra.mrb[140].mxu1 %v5088_v30  ;;  %4336 = vmatprep.subr.bf16.mxu0 %v4335_v32  ;;  %v5089_v58 = vld [vmem:[%s5657_s26 + $0x78] sm:$0xff]  ;;  %v714_v55 = vld [vmem:[%s5671_s9 + $0x150] sm:$0xff] }
 0x24f   : > { %v4664_v42 = vpop.eup %4663  ;;  %v2265_v38 = vadd.f32 1.0, %v4662_v4  ;;  %4683 = vpow2.f32 %v3918_v61  ;;  %v2764_v40 = vmul.f32 %v2636_v36, %v6597_v51  ;;  %v3922_v48 = vmul.f32 -1.442695, %v6695_v44  ;;  %1677 = vmatprep.mubr.f32.mxu1 %v5089_v58  ;;  %v6701_v41 = vpop.f32.mrb[32].mxu0 }
 0x250   : > { %v4666_v28 = vpop.eup %4665  ;;  %v2268_v31 = vadd.f32 1.0, %v4664_v42  ;;  %4685 = vpow2.f32 %v3921_v60  ;;  %3034 = vmatprep.mubr.f32.mxu0 %v2761_v50  ;;  %v2765_v35 = vmul.f32 %v2637_v29, %v6600_v2  ;;  %v6706_v10 = vpop.f32.mrb[33].mxu0  ;;  %v4337_v16 = vpack.c.bf16 %v718_v59, %v714_v55  ;;  %v722_v59 = vld [vmem:[%s5671_s9 + $0x190] sm:$0xff] }
 0x251   : > { %v4668_v51 = vpop.eup %4667  ;;  %v2640_v9 = vmul.f32 %v4666_v28, %v6583_v52  ;;  %4687 = vrcp.f32 %v2265_v38  ;;  %3035 = vmatmul.mubr.f32.gmra.mrb[82].mxu0 %v2760_v25  ;;  %v6709_v34 = vpop.f32.mrb[36].mxu1  ;;  %v4339_v14 = vpack.c.bf16 %v727_v20, %v723_v57  ;;  %v5093_v38 = vld [vmem:[%s5657_s26 + $0x98] sm:$0xff] }
 0x252   : > { %v4670_v12 = vpop.eup %4669  ;;  %v2641_v1 = vmul.f32 %v4668_v51, %v6589_v8  ;;  %4689 = vrcp.f32 %v2268_v31  ;;  %v3925_v13 = vmul.f32 -1.442695, %v6709_v34  ;;  %3040 = vmatprep.mubr.f32.mxu0 %v2765_v35  ;;  %v6715_v2 = vpop.f32.mrb[37].mxu1  ;;  %1678 = vmatmul.mubr.f32.gmra.mrb[142].mxu1 %v5090_v33  ;;  %v731_v51 = vld [vmem:[%s5671_s9 + $0x1d8] sm:$0xff] }
 0x253   : > { %v4672_v52 = vpop.eup %4671  ;;  %v2269_v37 = vadd.f32 1.0, %v4670_v12  ;;  %4691 = vpow2.f32 %v3922_v48  ;;  %v2768_v24 = vmul.f32 %v2640_v9, %v6613_v7  ;;  %v3926_v32 = vmul.f32 -1.442695, %v6715_v2  ;;  %1683 = vmatprep.mubr.f32.mxu1 %v5091_v6  ;;  %v6721_v27 = vpop.f32.mrb[34].mxu0  ;;  %v735_v9 = vld [vmem:[%s5671_s9 + $0x1f8] sm:$0xff] }
 0x254   : > { %v4674_v8 = vpop.eup %4673  ;;  %v2272_v61 = vadd.f32 1.0, %v4672_v52  ;;  %4693 = vpow2.f32 %v3925_v13  ;;  %v2769_v15 = vmul.f32 %v2641_v1, %v6616_v43  ;;  %v6724_v49 = vpop.f32.mrb[35].mxu0  ;;  %v5092_v43 = vld [vmem:[%s5657_s26 + $0x80] sm:$0xff]  ;;  %v5094_v1 = vld [vmem:[%s5657_s26 + $0x90] sm:$0xff]  ;;  %v5095_v52 = vld [vmem:[%s5657_s26 + $0xa8] sm:$0xff] }
 0x255   : > { %v4676_v25 = vpop.eup %4675  ;;  %v2644_v47 = vmul.f32 %v4674_v8, %v6603_v63  ;;  %4695 = vrcp.f32 %v2269_v37  ;;  %3041 = vmatmul.mubr.f32.gmra.mrb[84].mxu0 %v2764_v40  ;;  %v6727_v7 = vpop.f32.mrb[38].mxu1  ;;  %v4343_v8 = vpack.c.bf16 %v735_v9, %v731_v51 }
 0x256   : > { %v4678_v36 = vpop.eup %4677  ;;  %v2645_v4 = vmul.f32 %v4676_v25, %v6607_v11  ;;  %4697 = vrcp.f32 %v2272_v61  ;;  %v3929_v29 = vmul.f32 -1.442695, %v6727_v7  ;;  %3046 = vmatprep.mubr.f32.mxu0 %v2769_v15  ;;  %v6731_v50 = vpop.f32.mrb[39].mxu1  ;;  %1684 = vmatmul.mubr.f32.gmra.mrb[144].mxu1 %v5092_v43 }
 0x257   : > { %v4680_v60 = vpop.eup %4679  ;;  %v2273_v63 = vadd.f32 1.0, %v4678_v36  ;;  %4699 = vpow2.f32 %v3926_v32  ;;  %v2772_v30 = vmul.f32 %v2644_v47, %v6630_v17  ;;  %v3930_v42 = vmul.f32 -1.442695, %v6731_v50  ;;  %1689 = vmatprep.mubr.f32.mxu1 %v5093_v38  ;;  %v6737_v11 = vpop.f32.mrb[36].mxu0  ;;  %4338 = vmatpush1.bf16.xpose.msra.mxu0 %v4337_v16  ;;  %v726_v17 = vld [vmem:[%s5671_s9 + $0x1b0] sm:$0xff] }
 0x258   : > { %v4682_v40 = vpop.eup %4681  ;;  %v2648_v48 = vmul.f32 %v4680_v60, %v6619_v56  ;;  %4701 = vpow2.f32 %v3929_v29  ;;  %v2773_v58 = vmul.f32 %v2645_v4, %v6636_v45  ;;  %v6741_v55 = vpop.f32.mrb[37].mxu0  ;;  %4340 = vmatprep.subr.bf16.mxu0 %v4339_v14  ;;  %v5096_v29 = vld [vmem:[%s5657_s26 + $0xa0] sm:$0xff] }
 0x259   : > { %v4684_v28 = vpop.eup %4683  ;;  %4703 = vrcp.f32 %v2273_v63  ;;  %v2276_v31 = vadd.f32 1.0, %v4682_v40  ;;  %3047 = vmatmul.mubr.f32.gmra.mrb[86].mxu0 %v2768_v24  ;;  %v6745_v35 = vpop.f32.mrb[40].mxu1  ;;  %v4341_v24 = vpack.c.bf16 %v726_v17, %v722_v59 }
 0x25a   : > { %v4686_v57 = vpop.eup %4685  ;;  %v2277_v56 = vadd.f32 1.0, %v4684_v28  ;;  %4705 = vpow2.f32 %v3930_v42  ;;  %v3933_v45 = vmul.f32 -1.442695, %v6745_v35  ;;  %v2776_v20 = vmul.f32 %v2648_v48, %v6647_v26  ;;  %3052 = vmatprep.mubr.f32.mxu0 %v2773_v58  ;;  %v6751_v12 = vpop.f32.mrb[41].mxu1  ;;  %1690 = vmatmul.mubr.f32.gmra.mrb[146].mxu1 %v5094_v1  ;;  %v730_v48 = vld [vmem:[%s5671_s9 + $0x1d0] sm:$0xff]  ;;  %v739_v28 = vld [vmem:[%s5671_s9 + $0x218] sm:$0xff] }
 0x25b   : > { %v4688_v13 = vpop.eup %4687  ;;  %4707 = vrcp.f32 %v2276_v31  ;;  %v2280_v33 = vadd.f32 1.0, %v4686_v57  ;;  %v3934_v16 = vmul.f32 -1.442695, %v6751_v12  ;;  %1695 = vmatprep.mubr.f32.mxu1 %v5095_v52  ;;  %v6756_v37 = vpop.f32.mrb[38].mxu0  ;;  %v743_v31 = vld [vmem:[%s5671_s9 + $0x238] sm:$0xff] }
 0x25c   : > { %v4690_v32 = vpop.eup %4689  ;;  %v2649_v6 = vmul.f32 %v4688_v13, %v6624_v21  ;;  %4709 = vrcp.f32 %v2277_v56  ;;  %v6759_v26 = vpop.f32.mrb[39].mxu0  ;;  %v5099_v13 = vld [vmem:[%s5657_s26 + $0xc8] sm:$0xff] }
 0x25d   : > { %v4692_v61 = vpop.eup %4691  ;;  %v2652_v15 = vmul.f32 %v4690_v32, %v6638_v39  ;;  %4711 = vrcp.f32 %v2280_v33  ;;  %3053 = vmatmul.mubr.f32.gmra.mrb[88].mxu0 %v2772_v30  ;;  %v6762_v14 = vpop.f32.mrb[42].mxu1  ;;  %v5097_v30 = vld [vmem:[%s5657_s26 + $0xb8] sm:$0xff] }
 0x25e   : > { %v4694_v25 = vpop.eup %4693  ;;  %v2281_v47 = vadd.f32 1.0, %v4692_v61  ;;  %4713 = vpow2.f32 %v3933_v45  ;;  %v2777_v36 = vmul.f32 %v2649_v6, %v6651_v19  ;;  %v3937_v4 = vmul.f32 -1.442695, %v6762_v14  ;;  %v6766_v21 = vpop.f32.mrb[43].mxu1  ;;  %1696 = vmatmul.mubr.f32.gmra.mrb[148].mxu1 %v5096_v29  ;;  %v5098_v45 = vld [vmem:[%s5657_s26 + $0xb0] sm:$0xff] }
 0x25f   : > { %v4696_v43 = vpop.eup %4695  ;;  %v2284_v39 = vadd.f32 1.0, %v4694_v25  ;;  %4715 = vpow2.f32 %v3934_v16  ;;  %v2780_v60 = vmul.f32 %v2652_v15, %v6665_v0  ;;  %v3938_v63 = vmul.f32 -1.442695, %v6766_v21  ;;  %1701 = vmatprep.mubr.f32.mxu1 %v5097_v30  ;;  %v6772_v42 = vpop.f32.mrb[40].mxu0  ;;  %4342 = vmatpush1.bf16.xpose.msra.mxu0 %v4341_v24  ;;  %v734_v0 = vld [vmem:[%s5671_s9 + $0x1f0] sm:$0xff] }
 0x260   : > { %v4698_v19 = vpop.eup %4697  ;;  %v2653_v38 = vmul.f32 %v4696_v43, %v6642_v5  ;;  %4717 = vrcp.f32 %v2281_v47  ;;  %3058 = vmatprep.mubr.f32.mxu0 %v2777_v36  ;;  %v6775_v40 = vpop.f32.mrb[41].mxu0  ;;  %4344 = vmatprep.subr.bf16.mxu0 %v4343_v8  ;;  %v4345_v16 = vpack.c.bf16 %v734_v0, %v730_v48  ;;  %v4347_v6 = vpack.c.bf16 %v743_v31, %v739_v28 }
 0x261   : > { %v4700_v58 = vpop.eup %4699  ;;  %v2656_v59 = vmul.f32 %v4698_v19, %v6654_v53  ;;  %4719 = vrcp.f32 %v2284_v39  ;;  %3059 = vmatmul.mubr.f32.gmra.mrb[90].mxu0 %v2776_v20  ;;  %v6780_v17 = vpop.f32.mrb[44].mxu1 }
 0x262   : > { %v4702_v51 = vpop.eup %4701  ;;  %v2285_v5 = vadd.f32 1.0, %v4700_v58  ;;  %4721 = vpow2.f32 %v3937_v4  ;;  %v2781_v9 = vmul.f32 %v2653_v38, %v6671_v46  ;;  %v3941_v57 = vmul.f32 -1.442695, %v6780_v17  ;;  %v6786_v56 = vpop.f32.mrb[45].mxu1  ;;  %1702 = vmatmul.mubr.f32.gmra.mrb[150].mxu1 %v5098_v45  ;;  %v5100_v4 = vld [vmem:[%s5657_s26 + $0xc0] sm:$0xff]  ;;  %v738_v58 = vld [vmem:[%s5671_s9 + $0x210] sm:$0xff] }
 0x263   : > { %v4704_v1 = vpop.eup %4703  ;;  %v2288_v53 = vadd.f32 1.0, %v4702_v51  ;;  %4723 = vpow2.f32 %v3938_v63  ;;  %v2784_v20 = vmul.f32 %v2656_v59, %v6683_v22  ;;  %1707 = vmatprep.mubr.f32.mxu1 %v5099_v13  ;;  %v6791_v33 = vpop.f32.mrb[42].mxu0  ;;  %v3942_v46 = vmul.f32 -1.442695, %v6786_v56 }
 0x264   : > { %v4706_v52 = vpop.eup %4705  ;;  %v2657_v24 = vmul.f32 %v4704_v1, %v6658_v18  ;;  %4725 = vrcp.f32 %v2285_v5  ;;  %3064 = vmatprep.mubr.f32.mxu0 %v2781_v9  ;;  %v6795_v32 = vpop.f32.mrb[43].mxu0  ;;  %v5102_v5 = vld [vmem:[%s5657_s26 + $0xd0] sm:$0xff]  ;;  %v747_v9 = vld [vmem:[%s5671_s9 + $0x258] sm:$0xff] }
 0x265   : > { %v4708_v8 = vpop.eup %4707  ;;  %4727 = vrcp.f32 %v2288_v53  ;;  %v2289_v22 = vadd.f32 1.0, %v4706_v52  ;;  %3065 = vmatmul.mubr.f32.gmra.mrb[92].mxu0 %v2780_v60  ;;  %v6797_v61 = vpop.f32.mrb[46].mxu1  ;;  %v5101_v60 = vld [vmem:[%s5657_s26 + $0xd8] sm:$0xff]  ;;  %v5103_v53 = vld [vmem:[%s5657_s26 + $0xe8] sm:$0xff] }
 0x266   : > { %v4710_v15 = vpop.eup %4709  ;;  %v2660_v25 = vmul.f32 %v4708_v8, %v6674_v3  ;;  %4729 = vpow2.f32 %v3941_v57  ;;  %v2785_v18 = vmul.f32 %v2657_v24, %v6687_v23  ;;  %v3945_v47 = vmul.f32 -1.442695, %v6797_v61  ;;  %v6802_v36 = vpop.f32.mrb[47].mxu1  ;;  %1708 = vmatmul.mubr.f32.gmra.mrb[152].mxu1 %v5100_v4  ;;  %v751_v57 = vld [vmem:[%s5671_s9 + $0x278] sm:$0xff] }
 0x267   : > { %v4712_v29 = vpop.eup %4711  ;;  %v2661_v43 = vmul.f32 %v4710_v15, %v6678_v54  ;;  %4731 = vrcp.f32 %v2289_v22  ;;  %v3946_v39 = vmul.f32 -1.442695, %v6802_v36  ;;  %1713 = vmatprep.mubr.f32.mxu1 %v5101_v60  ;;  %v6808_v63 = vpop.f32.mrb[44].mxu0  ;;  %4346 = vmatpush1.bf16.xpose.msra.mxu0 %v4345_v16  ;;  %v4351_v8 = vpack.c.bf16 %v751_v57, %v747_v9  ;;  %v759_v9 = vld [vmem:[%s5671_s9 + $0x2b8] sm:$0xff]  ;;  %v5107_v57 = vld [vmem:[%s5657_s26 + $0x108] sm:$0xff] }
 0x268   : > { %v4714_v3 = vpop.eup %4713  ;;  %v2664_v23 = vmul.f32 %v4712_v29, %v6690_v62  ;;  %4733 = vpow2.f32 %v3942_v46  ;;  %v2788_v30 = vmul.f32 %v2660_v25, %v6701_v41  ;;  %3070 = vmatprep.mubr.f32.mxu0 %v2785_v18  ;;  %v6812_v19 = vpop.f32.mrb[45].mxu0  ;;  %4348 = vmatprep.subr.bf16.mxu0 %v4347_v6  ;;  %v742_v62 = vld [vmem:[%s5671_s9 + $0x230] sm:$0xff] }
 0x269   : > { %v4716_v54 = vpop.eup %4715  ;;  %v2292_v38 = vadd.f32 1.0, %v4714_v3  ;;  %4735 = vpow2.f32 %v3945_v47  ;;  %v2789_v48 = vmul.f32 %v2661_v43, %v6706_v10  ;;  %3071 = vmatmul.mubr.f32.gmra.mrb[94].mxu0 %v2784_v20  ;;  %v6815_v0 = vpop.f32.mrb[48].mxu1  ;;  %v4349_v52 = vpack.c.bf16 %v742_v62, %v738_v58  ;;  %v5104_v47 = vld [vmem:[%s5657_s26 + $0xe0] sm:$0xff]  ;;  %v5105_v43 = vld [vmem:[%s5657_s26 + $0xf8] sm:$0xff] }
 0x26a   : > { %v4718_v59 = vpop.eup %4717  ;;  %v2293_v41 = vadd.f32 1.0, %v4716_v54  ;;  %4737 = vpow2.f32 %v3946_v39  ;;  %v3949_v28 = vmul.f32 -1.442695, %v6815_v0  ;;  %v2792_v31 = vmul.f32 %v2664_v23, %v6721_v27  ;;  %v6821_v51 = vpop.f32.mrb[49].mxu1  ;;  %1714 = vmatmul.mubr.f32.gmra.mrb[154].mxu1 %v5102_v5  ;;  %v746_v23 = vld [vmem:[%s5671_s9 + $0x250] sm:$0xff]  ;;  %v755_v5 = vld [vmem:[%s5671_s9 + $0x298] sm:$0xff] }
 0x26b   : > { %v4720_v10 = vpop.eup %4719  ;;  %v2665_v45 = vmul.f32 %v4718_v59, %v6695_v44  ;;  %4739 = vrcp.f32 %v2292_v38  ;;  %3076 = vmatprep.mubr.f32.mxu0 %v2789_v48  ;;  %v3950_v1 = vmul.f32 -1.442695, %v6821_v51  ;;  %1719 = vmatprep.mubr.f32.mxu1 %v5103_v53  ;;  %v6829_v20 = vpop.f32.mrb[46].mxu0 }
 0x26c   : > { %v4722_v13 = vpop.eup %4721  ;;  %v2668_v27 = vmul.f32 %v4720_v10, %v6709_v34  ;;  %4741 = vrcp.f32 %v2293_v41  ;;  %v6832_v16 = vpop.f32.mrb[47].mxu0 }
 0x26d   : > { %v4724_v24 = vpop.eup %4723  ;;  %v2296_v46 = vadd.f32 1.0, %v4722_v13  ;;  %4743 = vpow2.f32 %v3949_v28  ;;  %v2793_v44 = vmul.f32 %v2665_v45, %v6724_v49  ;;  %3077 = vmatmul.mubr.f32.gmra.mrb[96].mxu0 %v2788_v30  ;;  %v6835_v6 = vpop.f32.mrb[50].mxu1  ;;  %v750_v30 = vld [vmem:[%s5671_s9 + $0x270] sm:$0xff] }
 0x26e   : > { %v4726_v22 = vpop.eup %4725  ;;  %v2297_v15 = vadd.f32 1.0, %v4724_v24  ;;  %4745 = vpow2.f32 %v3950_v1  ;;  %v3953_v34 = vmul.f32 -1.442695, %v6835_v6  ;;  %v2796_v25 = vmul.f32 %v2668_v27, %v6737_v11  ;;  %v6839_v18 = vpop.f32.mrb[51].mxu1  ;;  %1720 = vmatmul.mubr.f32.gmra.mrb[156].mxu1 %v5104_v47  ;;  %v5106_v28 = vld [vmem:[%s5657_s26 + $0xf0] sm:$0xff] }
 0x26f   : > { %v4728_v4 = vpop.eup %4727  ;;  %v2669_v49 = vmul.f32 %v4726_v22, %v6715_v2  ;;  %4747 = vrcp.f32 %v2296_v46  ;;  %3082 = vmatprep.mubr.f32.mxu0 %v2793_v44  ;;  %v3954_v29 = vmul.f32 -1.442695, %v6839_v18  ;;  %1725 = vmatprep.mubr.f32.mxu1 %v5105_v43  ;;  %v6845_v39 = vpop.f32.mrb[48].mxu0  ;;  %v4355_v46 = vpack.c.bf16 %v759_v9, %v755_v5  ;;  %v767_v5 = vld [vmem:[%s5671_s9 + $0x2f8] sm:$0xff] }
 0x270   : > { %v4730_v60 = vpop.eup %4729  ;;  %v2672_v11 = vmul.f32 %v4728_v4, %v6727_v7  ;;  %4749 = vrcp.f32 %v2297_v15  ;;  %v6848_v3 = vpop.f32.mrb[49].mxu0  ;;  %4350 = vmatpush1.bf16.xpose.msra.mxu0 %v4349_v52 }
 0x271   : > { %v4732_v2 = vpop.eup %4731  ;;  %v2300_v54 = vadd.f32 1.0, %v4730_v60  ;;  %4751 = vpow2.f32 %v3953_v34  ;;  %v2797_v38 = vmul.f32 %v2669_v49, %v6741_v55  ;;  %3083 = vmatmul.mubr.f32.gmra.mrb[98].mxu0 %v2792_v31  ;;  %v6853_v48 = vpop.f32.mrb[52].mxu1  ;;  %4352 = vmatprep.subr.bf16.mxu0 %v4351_v8 }
 0x272   : > { %v4734_v7 = vpop.eup %4733  ;;  %v2673_v58 = vmul.f32 %v4732_v2, %v6731_v50  ;;  %4753 = vpow2.f32 %v3954_v29  ;;  %v3957_v62 = vmul.f32 -1.442695, %v6853_v48  ;;  %v2800_v59 = vmul.f32 %v2672_v11, %v6756_v37  ;;  %v6858_v41 = vpop.f32.mrb[53].mxu1  ;;  %1726 = vmatmul.mubr.f32.gmra.mrb[158].mxu1 %v5106_v28  ;;  %v754_v11 = vld [vmem:[%s5671_s9 + $0x290] sm:$0xff]  ;;  %v763_v28 = vld [vmem:[%s5671_s9 + $0x2d8] sm:$0xff] }
 0x273   : > { %v4736_v55 = vpop.eup %4735  ;;  %4755 = vrcp.f32 %v2300_v54  ;;  %v2301_v31 = vadd.f32 1.0, %v4734_v7  ;;  %3088 = vmatprep.mubr.f32.mxu0 %v2797_v38  ;;  %1731 = vmatprep.mubr.f32.mxu1 %v5107_v57  ;;  %v6864_v10 = vpop.f32.mrb[50].mxu0  ;;  %v4353_v50 = vpack.c.bf16 %v750_v30, %v746_v23  ;;  %v3958_v37 = vmul.f32 -1.442695, %v6858_v41  ;;  %v758_v23 = vld [vmem:[%s5671_s9 + $0x2b0] sm:$0xff] }
 0x274   : > { %v4738_v45 = vpop.eup %4737  ;;  %v2304_v1 = vadd.f32 1.0, %v4736_v55  ;;  %4757 = vpow2.f32 %v3957_v62  ;;  %v2801_v53 = vmul.f32 %v2673_v58, %v6759_v26  ;;  %v6868_v13 = vpop.f32.mrb[51].mxu0  ;;  %v5108_v26 = vld [vmem:[%s5657_s26 + $0x100] sm:$0xff]  ;;  %v5110_v62 = vld [vmem:[%s5657_s26 + $0x110] sm:$0xff] }
 0x275   : > { %v4740_v27 = vpop.eup %4739  ;;  %4759 = vrcp.f32 %v2301_v31  ;;  %v2305_v52 = vadd.f32 1.0, %v4738_v45  ;;  %3089 = vmatmul.mubr.f32.gmra.mrb[100].mxu0 %v2796_v25  ;;  %v6870_v24 = vpop.f32.mrb[54].mxu1  ;;  %v5109_v25 = vld [vmem:[%s5657_s26 + $0x118] sm:$0xff]  ;;  %v4357_v31 = vpack.c.bf16 %v758_v23, %v754_v11 }
 0x276   : > { %v4742_v44 = vpop.eup %4741  ;;  %v2676_v8 = vmul.f32 %v4740_v27, %v6745_v35  ;;  %4761 = vrcp.f32 %v2304_v1  ;;  %v3961_v22 = vmul.f32 -1.442695, %v6870_v24  ;;  %3094 = vmatprep.mubr.f32.mxu0 %v2801_v53  ;;  %v6874_v15 = vpop.f32.mrb[55].mxu1  ;;  %1732 = vmatmul.mubr.f32.gmra.mrb[160].mxu1 %v5108_v26 }
 0x277   : > { %v4744_v34 = vpop.eup %4743  ;;  %v2677_v47 = vmul.f32 %v4742_v44, %v6751_v12  ;;  %4763 = vrcp.f32 %v2305_v52  ;;  %1737 = vmatprep.mubr.f32.mxu1 %v5109_v25  ;;  %v6879_v4 = vpop.f32.mrb[52].mxu0  ;;  %v3962_v43 = vmul.f32 -1.442695, %v6874_v15  ;;  %v4359_v52 = vpack.c.bf16 %v767_v5, %v763_v28 }
 0x278   : > { %v4746_v49 = vpop.eup %4745  ;;  %v2308_v35 = vadd.f32 1.0, %v4744_v34  ;;  %4765 = vpow2.f32 %v3958_v37  ;;  %v2804_v29 = vmul.f32 %v2676_v8, %v6772_v42  ;;  %v6883_v60 = vpop.f32.mrb[53].mxu0  ;;  %4354 = vmatpush1.bf16.xpose.msra.mxu0 %v4353_v50 }
 0x279   : > { %v4748_v12 = vpop.eup %4747  ;;  %v2309_v30 = vadd.f32 1.0, %v4746_v49  ;;  %4767 = vpow2.f32 %v3961_v22  ;;  %v2805_v2 = vmul.f32 %v2677_v47, %v6775_v40  ;;  %3095 = vmatmul.mubr.f32.gmra.mrb[102].mxu0 %v2800_v59  ;;  %v6888_v54 = vpop.f32.mrb[56].mxu1  ;;  %4356 = vmatprep.subr.bf16.mxu0 %v4355_v46  ;;  %v5111_v59 = vld [vmem:[%s5657_s26 + $0x128] sm:$0xff]  ;;  %v5112_v22 = vld [vmem:[%s5657_s26 + $0x120] sm:$0xff]  ;;  %v5113_v47 = vld [vmem:[%s5657_s26 + $0x138] sm:$0xff] }
 0x27a   : > { %v4750_v42 = vpop.eup %4749  ;;  %v2680_v38 = vmul.f32 %v4748_v12, %v6762_v14  ;;  %4769 = vrcp.f32 %v2308_v35  ;;  %v3965_v7 = vmul.f32 -1.442695, %v6888_v54  ;;  %v6892_v58 = vpop.f32.mrb[57].mxu1  ;;  %1738 = vmatmul.mubr.f32.gmra.mrb[162].mxu1 %v5110_v62  ;;  %v762_v12 = vld [vmem:[%s5671_s9 + $0x2d0] sm:$0xff]  ;;  %v775_v62 = vld [vmem:[%s5671_s9 + $0x338] sm:$0xff] }
 0x27b   : > { %v4752_v9 = vpop.eup %4751  ;;  %v2681_v40 = vmul.f32 %v4750_v42, %v6766_v21  ;;  %4771 = vrcp.f32 %v2309_v30  ;;  %3100 = vmatprep.mubr.f32.mxu0 %v2805_v2  ;;  %1743 = vmatprep.mubr.f32.mxu1 %v5111_v59  ;;  %v6899_v55 = vpop.f32.mrb[54].mxu0  ;;  %v3966_v45 = vmul.f32 -1.442695, %v6892_v58  ;;  %v766_v30 = vld [vmem:[%s5671_s9 + $0x2f0] sm:$0xff]  ;;  %v5115_v59 = vld [vmem:[%s5657_s26 + $0x148] sm:$0xff] }
 0x27c   : > { %v4754_v14 = vpop.eup %4753  ;;  %v2312_v57 = vadd.f32 1.0, %v4752_v9  ;;  %4773 = vpow2.f32 %v3962_v43  ;;  %v2808_v50 = vmul.f32 %v2680_v38, %v6791_v33  ;;  %v6903_v1 = vpop.f32.mrb[55].mxu0 }
 0x27d   : > { %v4756_v37 = vpop.eup %4755  ;;  %v2313_v53 = vadd.f32 1.0, %v4754_v14  ;;  %4775 = vpow2.f32 %v3965_v7  ;;  %v2809_v21 = vmul.f32 %v2681_v40, %v6795_v32  ;;  %3101 = vmatmul.mubr.f32.gmra.mrb[104].mxu0 %v2804_v29  ;;  %v6906_v27 = vpop.f32.mrb[58].mxu1  ;;  %v771_v7 = vld [vmem:[%s5671_s9 + $0x318] sm:$0xff] }
 0x27e   : > { %v4758_v46 = vpop.eup %4757  ;;  %v2684_v44 = vmul.f32 %v4756_v37, %v6780_v17  ;;  %4777 = vrcp.f32 %v2312_v57  ;;  %v3969_v33 = vmul.f32 -1.442695, %v6906_v27  ;;  %v6910_v8 = vpop.f32.mrb[59].mxu1  ;;  %1744 = vmatmul.mubr.f32.gmra.mrb[164].mxu1 %v5112_v22 }
 0x27f   : > { %v4760_v26 = vpop.eup %4759  ;;  %4779 = vrcp.f32 %v2313_v53  ;;  %v2316_v34 = vadd.f32 1.0, %v4758_v46  ;;  %3106 = vmatprep.mubr.f32.mxu0 %v2809_v21  ;;  %v3970_v32 = vmul.f32 -1.442695, %v6910_v8  ;;  %1749 = vmatprep.mubr.f32.mxu1 %v5113_v47  ;;  %v6915_v25 = vpop.f32.mrb[56].mxu0  ;;  %v4363_v53 = vpack.c.bf16 %v775_v62, %v771_v7  ;;  %v5119_v62 = vld [vmem:[%s5657_s26 + $0x168] sm:$0xff] }
 0x280   : > { %v4762_v17 = vpop.eup %4761  ;;  %v2685_v49 = vmul.f32 %v4760_v26, %v6786_v56  ;;  %4781 = vpow2.f32 %v3966_v45  ;;  %v2812_v35 = vmul.f32 %v2684_v44, %v6808_v63  ;;  %v6919_v29 = vpop.f32.mrb[57].mxu0  ;;  %4358 = vmatpush1.bf16.xpose.msra.mxu0 %v4357_v31  ;;  %v5116_v44 = vld [vmem:[%s5657_s26 + $0x140] sm:$0xff] }
 0x281   : > { %v4764_v43 = vpop.eup %4763  ;;  %v2688_v11 = vmul.f32 %v4762_v17, %v6797_v61  ;;  %4783 = vrcp.f32 %v2316_v34  ;;  %3107 = vmatmul.mubr.f32.gmra.mrb[106].mxu0 %v2808_v50  ;;  %v6922_v23 = vpop.f32.mrb[60].mxu1  ;;  %4360 = vmatprep.subr.bf16.mxu0 %v4359_v52  ;;  %v5114_v61 = vld [vmem:[%s5657_s26 + $0x130] sm:$0xff]  ;;  %v4361_v50 = vpack.c.bf16 %v766_v30, %v762_v12  ;;  %v5117_v34 = vld [vmem:[%s5657_s26 + $0x158] sm:$0xff] }
 0x282   : > { %v4766_v56 = vpop.eup %4765  ;;  %v2689_v63 = vmul.f32 %v4764_v43, %v6802_v36  ;;  %4785 = vpow2.f32 %v3969_v33  ;;  %v2813_v2 = vmul.f32 %v2685_v49, %v6812_v19  ;;  %v3973_v42 = vmul.f32 -1.442695, %v6922_v23  ;;  %v6929_v38 = vpop.f32.mrb[61].mxu1  ;;  %1750 = vmatmul.mubr.f32.gmra.mrb[166].mxu1 %v5114_v61  ;;  %v774_v12 = vld [vmem:[%s5671_s9 + $0x330] sm:$0xff] }
 0x283   : > { %v4768_v28 = vpop.eup %4767  ;;  %v2317_v5 = vadd.f32 1.0, %v4766_v56  ;;  %4787 = vpow2.f32 %v3970_v32  ;;  %v2816_v9 = vmul.f32 %v2688_v11, %v6829_v20  ;;  %v3974_v40 = vmul.f32 -1.442695, %v6929_v38  ;;  %1755 = vmatprep.mubr.f32.mxu1 %v5115_v59  ;;  %v6937_v36 = vpop.f32.mrb[58].mxu0  ;;  %v770_v11 = vld [vmem:[%s5671_s9 + $0x310] sm:$0xff] }
 0x284   : > { %v4770_v19 = vpop.eup %4769  ;;  %v2320_v31 = vadd.f32 1.0, %v4768_v28  ;;  %4789 = vpow2.f32 %v3973_v42  ;;  %3112 = vmatprep.mubr.f32.mxu0 %v2813_v2  ;;  %v2817_v14 = vmul.f32 %v2689_v63, %v6832_v16  ;;  %v6940_v57 = vpop.f32.mrb[59].mxu0  ;;  %v5118_v63 = vld [vmem:[%s5657_s26 + $0x150] sm:$0xff]  ;;  %v779_v2 = vld [vmem:[%s5671_s9 + $0x358] sm:$0xff]  ;;  %v4365_v59 = vpack.c.bf16 %v774_v12, %v770_v11 }
 0x285   : > { %v4772_v45 = vpop.eup %4771  ;;  %v2692_v37 = vmul.f32 %v4770_v19, %v6815_v0  ;;  %4791 = vrcp.f32 %v2317_v5  ;;  %3113 = vmatmul.mubr.f32.gmra.mrb[108].mxu0 %v2812_v35  ;;  %v6943_v20 = vpop.f32.mrb[62].mxu1  ;;  %v783_v42 = vld [vmem:[%s5671_s9 + $0x378] sm:$0xff] }
 0x286   : > { %v4774_v21 = vpop.eup %4773  ;;  %v2693_v52 = vmul.f32 %v4772_v45, %v6821_v51  ;;  %4793 = vrcp.f32 %v2320_v31  ;;  %v3977_v46 = vmul.f32 -1.442695, %v6943_v20  ;;  %3118 = vmatprep.mubr.f32.mxu0 %v2817_v14  ;;  %v6947_v16 = vpop.f32.mrb[63].mxu1  ;;  %1756 = vmatmul.mubr.f32.gmra.mrb[168].mxu1 %v5116_v44 }
 0x287   : > { %v4776_v33 = vpop.eup %4775  ;;  %v2321_v22 = vadd.f32 1.0, %v4774_v21  ;;  %4795 = vpow2.f32 %v3974_v40  ;;  %v2820_v0 = vmul.f32 %v2692_v37, %v6845_v39  ;;  %v3978_v26 = vmul.f32 -1.442695, %v6947_v16  ;;  %1761 = vmatprep.mubr.f32.mxu1 %v5117_v34  ;;  %v6953_v51 = vpop.f32.mrb[60].mxu0 }
 0x288   : > { %v4778_v32 = vpop.eup %4777  ;;  %v2324_v47 = vadd.f32 1.0, %v4776_v33  ;;  %4797 = vpow2.f32 %v3977_v46  ;;  %v2821_v17 = vmul.f32 %v2693_v52, %v6848_v3  ;;  %v6956_v49 = vpop.f32.mrb[61].mxu0  ;;  %4362 = vmatpush1.bf16.xpose.msra.mxu0 %v4361_v50  ;;  %v5121_v52 = vld [vmem:[%s5657_s26 + $0x178] sm:$0xff] }
 0x289   : > { %v4780_v35 = vpop.eup %4779  ;;  %v2696_v39 = vmul.f32 %v4778_v32, %v6835_v6  ;;  %4799 = vrcp.f32 %v2321_v22  ;;  %3119 = vmatmul.mubr.f32.gmra.mrb[110].mxu0 %v2816_v9  ;;  %v6959_v43 = vpop.f32.mrb[64].mxu1  ;;  %4364 = vmatprep.subr.bf16.mxu0 %v4363_v53 }
 0x28a   : > { %v4782_v30 = vpop.eup %4781  ;;  %v2697_v3 = vmul.f32 %v4780_v35, %v6839_v18  ;;  %4801 = vrcp.f32 %v2324_v47  ;;  %3124 = vmatprep.mubr.f32.mxu0 %v2821_v17  ;;  %v6964_v56 = vpop.f32.mrb[65].mxu1  ;;  %1762 = vmatmul.mubr.f32.gmra.mrb[170].mxu1 %v5118_v63  ;;  %v5122_v17 = vld [vmem:[%s5657_s26 + $0x170] sm:$0xff]  ;;  %v787_v35 = vld [vmem:[%s5671_s9 + $0x398] sm:$0xff] }
 0x28b   : > { %v4784_v6 = vpop.eup %4783  ;;  %v2325_v61 = vadd.f32 1.0, %v4782_v30  ;;  %4803 = vpow2.f32 %v3978_v26  ;;  %v2824_v7 = vmul.f32 %v2696_v39, %v6864_v10  ;;  %1767 = vmatprep.mubr.f32.mxu1 %v5119_v62  ;;  %v6971_v28 = vpop.f32.mrb[62].mxu0  ;;  %v4367_v10 = vpack.c.bf16 %v783_v42, %v779_v2  ;;  %v782_v26 = vld [vmem:[%s5671_s9 + $0x370] sm:$0xff]  ;;  %v791_v39 = vld [vmem:[%s5671_s9 + $0x3b8] sm:$0xff]  ;;  %v5123_v30 = vld [vmem:[%s5657_s26 + $0x188] sm:$0xff] }
 0x28c   : > { %v4786_v5 = vpop.eup %4785  ;;  %v2700_v18 = vmul.f32 %v4784_v6, %v6853_v48  ;;  %v2825_v9 = vmul.f32 %v2697_v3, %v6868_v13  ;;  %v6975_v40 = vpop.f32.mrb[63].mxu0  ;;  %v5120_v48 = vld [vmem:[%s5657_s26 + $0x160] sm:$0xff] }
 0x28d   : > { %v4788_v19 = vpop.eup %4787  ;;  %4805 = vrcp.f32 %v2325_v61  ;;  %v2328_v31 = vadd.f32 1.0, %v4786_v5  ;;  %3125 = vmatmul.mubr.f32.gmra.mrb[112].mxu0 %v2820_v0  ;;  %v6977_v14 = vpop.f32.mrb[66].mxu1  ;;  %v778_v0 = vld [vmem:[%s5671_s9 + $0x350] sm:$0xff]  ;;  %v4371_v61 = vpack.c.bf16 %v791_v39, %v787_v35 }
 0x28e   : > { %v4790_v50 = vpop.eup %4789  ;;  %v2329_v45 = vadd.f32 1.0, %v4788_v19  ;;  %v2828_v37 = vmul.f32 %v2700_v18, %v6879_v4  ;;  %3130 = vmatprep.mubr.f32.mxu0 %v2825_v9  ;;  %v6980_v53 = vpop.f32.mrb[67].mxu1  ;;  %1768 = vmatmul.mubr.f32.gmra.mrb[172].mxu1 %v5120_v48  ;;  %v5125_v9 = vld [vmem:[%s5657_s26 + $0x198] sm:$0xff]  ;;  %v786_v19 = vld [vmem:[%s5671_s9 + $0x390] sm:$0xff] }
 0x28f   : > { %v4792_v13 = vpop.eup %4791  ;;  %4807 = vrcp.f32 %v2328_v31  ;;  %v2332_v21 = vadd.f32 1.0, %v4790_v50  ;;  %1773 = vmatprep.mubr.f32.mxu1 %v5121_v52  ;;  %v790_v31 = vld [vmem:[%s5671_s9 + $0x3b0] sm:$0xff]  ;;  %v799_v48 = vld [vmem:[%s5671_s9 + $0x3f8] sm:$0xff]  ;;  %v5127_v52 = vld [vmem:[%s5657_s26 + $0x1a8] sm:$0xff] }
 0x290   : > { %v4794_v46 = vpop.eup %4793  ;;  %v2701_v44 = vmul.f32 %v4792_v13, %v6858_v41  ;;  %4809 = vrcp.f32 %v2329_v45  ;;  %4366 = vmatpush1.bf16.xpose.msra.mxu0 %v4365_v59  ;;  %v798_v35 = vld [vmem:[%s5671_s9 + $0x3f0] sm:$0xff] }
 0x291   : > { %v4796_v4 = vpop.eup %4795  ;;  %v2704_v33 = vmul.f32 %v4794_v46, %v6870_v24  ;;  %4811 = vrcp.f32 %v2332_v21  ;;  %3131 = vmatmul.mubr.f32.gmra.mrb[114].mxu0 %v2824_v7  ;;  %v6986_v22 = vpop.f32.mrb[68].mxu1  ;;  %4368 = vmatprep.subr.bf16.mxu0 %v4367_v10 }
 0x292   : > { %v4798_v34 = vpop.eup %4797  ;;  %v2333_v32 = vadd.f32 1.0, %v4796_v4  ;;  %v2829_v47 = vmul.f32 %v2701_v44, %v6883_v60  ;;  %v6991_v41 = vpop.f32.mrb[69].mxu1  ;;  %1774 = vmatmul.mubr.f32.gmra.mrb[174].mxu1 %v5122_v17  ;;  %v4369_v60 = vpack.c.bf16 %v782_v26, %v778_v0  ;;  %v794_v17 = vld [vmem:[%s5671_s9 + $0x3d0] sm:$0xff] }
 0x293   : > { %v4800_v11 = vpop.eup %4799  ;;  %v2336_v24 = vadd.f32 1.0, %v4798_v34  ;;  %v2832_v12 = vmul.f32 %v2704_v33, %v6899_v55  ;;  %1779 = vmatprep.mubr.f32.mxu1 %v5123_v30  ;;  %v5128_v34 = vld [vmem:[%s5657_s26 + $0x1a0] sm:$0xff] }
 0x294   : > { %v4802_v3 = vpop.eup %4801  ;;  %v2705_v63 = vmul.f32 %v4800_v11, %v6874_v15  ;;  %4813 = vrcp.f32 %v2333_v32  ;;  %3136 = vmatprep.mubr.f32.mxu0 %v2829_v47  ;;  %v5124_v15 = vld [vmem:[%s5657_s26 + $0x180] sm:$0xff]  ;;  %v5129_v32 = vld [vmem:[%s5657_s26 + $0x1b8] sm:$0xff] }
 0x295   : > { %v4804_v2 = vpop.eup %4803  ;;  %v2708_v42 = vmul.f32 %v4802_v3, %v6888_v54  ;;  %4815 = vrcp.f32 %v2336_v24  ;;  %3137 = vmatmul.mubr.f32.gmra.mrb[116].mxu0 %v2828_v37  ;;  %v7000_v6 = vpop.f32.mrb[70].mxu1  ;;  %v795_v37 = vld [vmem:[%s5671_s9 + $0x3d8] sm:$0xff]  ;;  %v5130_v24 = vld [vmem:[%s5657_s26 + $0x1b0] sm:$0xff] }
 0x296   : > { %v2337_v7 = vadd.f32 1.0, %v4804_v2  ;;  %v2833_v55 = vmul.f32 %v2705_v63, %v6903_v1  ;;  %v7003_v62 = vpop.f32.mrb[71].mxu1  ;;  %1780 = vmatmul.mubr.f32.gmra.mrb[176].mxu1 %v5124_v15  ;;  %v4375_v33 = vpack.c.bf16 %v799_v48, %v795_v37  ;;  %v5137_v15 = vld [vmem:[%s5657_s26 + $0x1f8] sm:$0xff] }
 0x297   : > { %v4806_v5 = vpop.eup %4805  ;;  %v2836_v18 = vmul.f32 %v2708_v42, %v6915_v25  ;;  %1785 = vmatprep.mubr.f32.mxu1 %v5125_v9  ;;  %v5135_v42 = vld [vmem:[%s5657_s26 + $0x1e8] sm:$0xff]  ;;  %v5138_v9 = vld [vmem:[%s5657_s26 + $0x1f0] sm:$0xff] }
 0x298   : > { %v2709_v54 = vmul.f32 %v4806_v5, %v6892_v58  ;;  %4817 = vrcp.f32 %v2337_v7  ;;  %3142 = vmatprep.mubr.f32.mxu0 %v2833_v55  ;;  %4370 = vmatpush1.bf16.xpose.msra.mxu0 %v4369_v60  ;;  %v5126_v58 = vld [vmem:[%s5657_s26 + $0x190] sm:$0xff]  ;;  %v5133_v60 = vld [vmem:[%s5657_s26 + $0x1d8] sm:$0xff]  ;;  %v5136_v55 = vld [vmem:[%s5657_s26 + $0x1e0] sm:$0xff] }
 0x299   : > { %v4808_v1 = vpop.eup %4807  ;;  %3143 = vmatmul.mubr.f32.gmra.mrb[118].mxu0 %v2832_v12  ;;  %v7009_v59 = vpop.f32.mrb[72].mxu1  ;;  %4372 = vmatprep.subr.bf16.mxu0 %v4371_v61  ;;  %v5131_v12 = vld [vmem:[%s5657_s26 + $0x1c8] sm:$0xff] }
 0x29a   : > { %v4810_v10 = vpop.eup %4809  ;;  %v2712_v25 = vmul.f32 %v4808_v1, %v6906_v27  ;;  %v2837_v50 = vmul.f32 %v2709_v54, %v6919_v29  ;;  %v7015_v45 = vpop.f32.mrb[73].mxu1  ;;  %1786 = vmatmul.mubr.f32.gmra.mrb[178].mxu1 %v5126_v58  ;;  %v4373_v27 = vpack.c.bf16 %v790_v31, %v786_v19 }
 0x29b   : > { %v4812_v13 = vpop.eup %4811  ;;  %v2713_v21 = vmul.f32 %v4810_v10, %v6910_v8  ;;  %1791 = vmatprep.mubr.f32.mxu1 %v5127_v52 }
 0x29c   : > { %v2716_v46 = vmul.f32 %v4812_v13, %v6922_v23  ;;  %v2840_v44 = vmul.f32 %v2712_v25, %v6937_v36  ;;  %3148 = vmatprep.mubr.f32.mxu0 %v2837_v50 }
 0x29d   : > { %v2841_v29 = vmul.f32 %v2713_v21, %v6940_v57  ;;  %3149 = vmatmul.mubr.f32.gmra.mrb[120].mxu0 %v2836_v18  ;;  %v7025_v4 = vpop.f32.mrb[74].mxu1 }
 0x29e   : > { %v4814_v0 = vpop.eup %4813  ;;  %v2844_v26 = vmul.f32 %v2716_v46, %v6953_v51  ;;  %v7028_v8 = vpop.f32.mrb[75].mxu1  ;;  %1792 = vmatmul.mubr.f32.gmra.mrb[180].mxu1 %v5128_v34 }
 0x29f   : > { %v4816_v23 = vpop.eup %4815  ;;  %v2717_v36 = vmul.f32 %v4814_v0, %v6929_v38  ;;  %3154 = vmatprep.mubr.f32.mxu0 %v2841_v29  ;;  %1797 = vmatprep.mubr.f32.mxu1 %v5129_v32 }
 0x2a0   : > { %v2720_v57 = vmul.f32 %v4816_v23, %v6943_v20  ;;  %4374 = vmatpush1.bf16.xpose.msra.mxu0 %v4373_v27 }
 0x2a1   : > { %v2845_v47 = vmul.f32 %v2717_v36, %v6956_v49  ;;  %3155 = vmatmul.mubr.f32.gmra.mrb[122].mxu0 %v2840_v44  ;;  %v7035_v51 = vpop.f32.mrb[76].mxu1  ;;  %4376 = vmatprep.subr.bf16.mxu0 %v4375_v33  ;;  %v4377_v49 = vpack.c.bf16 %v798_v35, %v794_v17  ;;  %v3856_v17 = vmul.f32 -1.442695, %v6964_v56 }
 0x2a2   : > { %v4818_v39 = vpop.eup %4817  ;;  %v2848_v11 = vmul.f32 %v2720_v57, %v6971_v28  ;;  %v7040_v38 = vpop.f32.mrb[77].mxu1  ;;  %1798 = vmatmul.mubr.f32.gmra.mrb[182].mxu1 %v5130_v24  ;;  %v5132_v28 = vld [vmem:[%s5657_s26 + $0x1c0] sm:$0xff]  ;;  %v3855_v57 = vmul.f32 -1.442695, %v6959_v43  ;;  %v3860_v24 = vmul.f32 -1.442695, %v6980_v53 }
 0x2a3   : > { %v2721_v20 = vmul.f32 %v4818_v39, %v6947_v16  ;;  %3160 = vmatprep.mubr.f32.mxu0 %v2845_v47  ;;  %1803 = vmatprep.mubr.f32.mxu1 %v5131_v12  ;;  %v3859_v39 = vmul.f32 -1.442695, %v6977_v14  ;;  %v3863_v12 = vmul.f32 -1.442695, %v6986_v22 }
 0x2a4   : > { %4819 = vpow2.f32 %v3855_v57  ;;  %v3871_v57 = vmul.f32 -1.442695, %v7009_v59 }
 0x2a5   : > { %v2849_v30 = vmul.f32 %v2721_v20, %v6975_v40  ;;  %3161 = vmatmul.mubr.f32.gmra.mrb[124].mxu0 %v2844_v26  ;;  %v7046_v3 = vpop.f32.mrb[78].mxu1  ;;  %v5134_v40 = vld [vmem:[%s5657_s26 + $0x1d0] sm:$0xff]  ;;  %4821 = vpow2.f32 %v3856_v17  ;;  %v3872_v17 = vmul.f32 -1.442695, %v7015_v45 }
 0x2a6   : > { %v7048_v63 = vpop.f32.mrb[79].mxu1  ;;  %1804 = vmatmul.mubr.f32.gmra.mrb[184].mxu1 %v5132_v28  ;;  %4823 = vpow2.f32 %v3859_v39 }
 0x2a7   : > { %3166 = vmatprep.mubr.f32.mxu0 %v2849_v30  ;;  %1809 = vmatprep.mubr.f32.mxu1 %v5133_v60  ;;  %4825 = vpow2.f32 %v3860_v24  ;;  %v3867_v60 = vmul.f32 -1.442695, %v7000_v6 }
 0x2a8   : > { %4378 = vmatpush1.bf16.xpose.msra.mxu0 %v4377_v49  ;;  %v3864_v49 = vmul.f32 -1.442695, %v6991_v41  ;;  %4827 = vpow2.f32 %v3863_v12 }
 0x2a9   : > { %3167 = vmatmul.mubr.f32.gmra.mrb[126].mxu0 %v2848_v11  ;;  %v7052_v16 = vpop.f32.mrb[80].mxu1 }
 0x2aa   : > { %v7054_v2 = vpop.f32.mrb[81].mxu1  ;;  %1810 = vmatmul.mubr.f32.gmra.mrb[186].mxu1 %v5134_v40  ;;  %4829 = vpow2.f32 %v3864_v49  ;;  %v3868_v40 = vmul.f32 -1.442695, %v7003_v62 }
 0x2ab   : > { %1815 = vmatprep.mubr.f32.mxu1 %v5135_v42  ;;  %4831 = vpow2.f32 %v3867_v60  ;;  %v3876_v60 = vmul.f32 -1.442695, %v7028_v8 }
 0x2ac   : > { %4833 = vpow2.f32 %v3868_v40 }
 0x2ad   : > { %v7058_v61 = vpop.f32.mrb[82].mxu1  ;;  %4835 = vpow2.f32 %v3871_v57 }
 0x2ae   : > { %v7060_v7 = vpop.f32.mrb[83].mxu1  ;;  %1816 = vmatmul.mubr.f32.gmra.mrb[188].mxu1 %v5136_v55  ;;  %4837 = vpow2.f32 %v3872_v17 }
 0x2af   : > { %1821 = vmatprep.mubr.f32.mxu1 %v5137_v15  ;;  %v4820_v15 = vpop.eup %4819 }
 0x2b0   : > { %v2214_v24 = vadd.f32 1.0, %v4820_v15 }
 0x2b1   : > { %v7064_v5 = vpop.f32.mrb[84].mxu1 }
 0x2b2   : > { %v7066_v18 = vpop.f32.mrb[85].mxu1  ;;  %1822 = vmatmul.mubr.f32.gmra.mrb[190].mxu1 %v5138_v9  ;;  %v4822_v9 = vpop.eup %4821  ;;  %4839 = vrcp.f32 %v2214_v24  ;;  %v3880_v24 = vmul.f32 -1.442695, %v7040_v38 }
 0x2b3   : > { %v4824_v49 = vpop.eup %4823 }
 0x2b4   : > { %v2218_v40 = vadd.f32 1.0, %v4824_v49 }
 0x2b5   : > { %v7069_v54 = vpop.f32.mrb[86].mxu1 }
 0x2b6   : > { %v7071_v1 = vpop.f32.mrb[87].mxu1 }
 0x2b9   : > { %v7073_v19 = vpop.f32.mrb[88].mxu1 }
 0x2ba   : > { %v7075_v31 = vpop.f32.mrb[89].mxu1 }
 0x2bd   : > { %v7077_v10 = vpop.f32.mrb[90].mxu1 }
 0x2be   : > { %v7079_v25 = vpop.f32.mrb[91].mxu1 }
 0x2c1   : > { %v7081_v50 = vpop.f32.mrb[92].mxu1 }
 0x2c2   : > { %v7083_v58 = vpop.f32.mrb[93].mxu1 }
 0x2c5   : > { %v7085_v37 = vpop.f32.mrb[94].mxu1 }
 0x2c6   : > { %v7087_v48 = vpop.f32.mrb[95].mxu1 }
 0x2c9   : > { %v7089_v13 = vpop.f32.mrb[96].mxu1 }
 0x2ca   : > { %v7091_v21 = vpop.f32.mrb[97].mxu1 }
 0x2cd   : > { %v7093_v52 = vpop.f32.mrb[98].mxu1 }
 0x2ce   : > { %v7095_v46 = vpop.f32.mrb[99].mxu1 }
 0x2d1   : > { %v7097_v44 = vpop.f32.mrb[100].mxu1 }
 0x2d2   : > { %v7099_v27 = vpop.f32.mrb[101].mxu1 }
 0x2d5   : > { %v7101_v29 = vpop.f32.mrb[102].mxu1 }
 0x2d6   : > { %v7103_v33 = vpop.f32.mrb[103].mxu1 }
 0x2d9   : > { %v7105_v0 = vpop.f32.mrb[104].mxu1 }
 0x2da   : > { %v7107_v26 = vpop.f32.mrb[105].mxu1 }
 0x2dd   : > { %v7109_v34 = vpop.f32.mrb[106].mxu1 }
 0x2de   : > { %7521 = vst [vmem:[#allocation22_spill] sm:$0xff] %v7109_v34  ;;  %v7111_v23 = vpop.f32.mrb[107].mxu1 }
 0x2df   : > { %7522 = vst [vmem:[#allocation23_spill] sm:$0xff] %v7111_v23  ;;  %v3892_v23 = vmul.f32 -1.442695, %v7060_v7 }
 0x2e1   : > { %v7113_v36 = vpop.f32.mrb[108].mxu1 }
 0x2e2   : > { %7523 = vst [vmem:[#allocation24_spill] sm:$0xff] %v7113_v36  ;;  %v7115_v32 = vpop.f32.mrb[109].mxu1 }
 0x2e3   : > { %7524 = vst [vmem:[#allocation25_spill] sm:$0xff] %v7115_v32 }
 0x2e5   : > { %v7118_v47 = vpop.f32.mrb[110].mxu1 }
 0x2e6   : > { %7525 = vst [vmem:[#allocation26_spill] sm:$0xff] %v7118_v47  ;;  %v7121_v35 = vpop.f32.mrb[111].mxu1 }
 0x2e7   : > { %7526 = vst [vmem:[#allocation27_spill] sm:$0xff] %v7121_v35 }
 0x2e9   : > { %v7124_v11 = vpop.f32.mrb[112].mxu1 }
 0x2ea   : > { %7527 = vst [vmem:[#allocation28_spill] sm:$0xff] %v7124_v11  ;;  %v7127_v20 = vpop.f32.mrb[113].mxu1 }
 0x2eb   : > { %7528 = vst [vmem:[#allocation29_spill] sm:$0xff] %v7127_v20 }
 0x2ed   : > { %v7131_v30 = vpop.f32.mrb[114].mxu1 }
 0x2ee   : > { %7529 = vst [vmem:[#allocation30_spill] sm:$0xff] %v7131_v30  ;;  %v7133_v28 = vpop.f32.mrb[115].mxu1  ;;  %v4826_v30 = vpop.eup %4825 }
 0x2ef   : > { %7530 = vst [vmem:[#allocation31_spill] sm:$0xff] %v7133_v28  ;;  %v2215_v28 = vadd.f32 1.0, %v4822_v9  ;;  %v2219_v15 = vadd.f32 1.0, %v4826_v30  ;;  %v3879_v9 = vmul.f32 -1.442695, %v7035_v51 }
 0x2f1   : > { %v7137_v42 = vpop.f32.mrb[116].mxu1  ;;  %4841 = vrcp.f32 %v2215_v28  ;;  %v3883_v28 = vmul.f32 -1.442695, %v7046_v3 }
 0x2f2   : > { %7531 = vst [vmem:[#allocation32_spill] sm:$0xff] %v7137_v42  ;;  %v7139_v55 = vpop.f32.mrb[117].mxu1  ;;  %v3875_v42 = vmul.f32 -1.442695, %v7025_v4 }
 0x2f3   : > { %7532 = vst [vmem:[#allocation33_spill] sm:$0xff] %v7139_v55  ;;  %v4828_v55 = vpop.eup %4827 }
 0x2f4   : > { %4843 = vpow2.f32 %v3875_v42 }
 0x2f5   : > { %v7143_v39 = vpop.f32.mrb[118].mxu1  ;;  %4845 = vpow2.f32 %v3876_v60 }
 0x2f6   : > { %7533 = vst [vmem:[#allocation34_spill] sm:$0xff] %v7143_v39  ;;  %v7145_v12 = vpop.f32.mrb[119].mxu1  ;;  %v4830_v39 = vpop.eup %4829  ;;  %4847 = vrcp.f32 %v2218_v40 }
 0x2f7   : > { %7534 = vst [vmem:[#allocation35_spill] sm:$0xff] %v7145_v12  ;;  %v2222_v12 = vadd.f32 1.0, %v4828_v55  ;;  %v4832_v35 = vpop.eup %4831  ;;  %v2223_v17 = vadd.f32 1.0, %v4830_v39  ;;  %4849 = vrcp.f32 %v2219_v15  ;;  %v3884_v39 = vmul.f32 -1.442695, %v7048_v63 }
 0x2f8   : > { %v2226_v30 = vadd.f32 1.0, %v4832_v35  ;;  %v3887_v15 = vmul.f32 -1.442695, %v7052_v16 }
 0x2f9   : > { %v7149_v20 = vpop.f32.mrb[120].mxu1  ;;  %4851 = vrcp.f32 %v2222_v12 }
 0x2fa   : > { %7535 = vst [vmem:[#allocation36_spill] sm:$0xff] %v7149_v20  ;;  %v7151_v11 = vpop.f32.mrb[121].mxu1  ;;  %v4834_v20 = vpop.eup %4833  ;;  %4853 = vpow2.f32 %v3879_v9 }
 0x2fb   : > { %7536 = vst [vmem:[#allocation37_spill] sm:$0xff] %v7151_v11  ;;  %v4836_v55 = vpop.eup %4835  ;;  %4855 = vrcp.f32 %v2223_v17  ;;  %v2227_v49 = vadd.f32 1.0, %v4834_v20 }
 0x2fc   : > { %v4838_v40 = vpop.eup %4837  ;;  %4857 = vpow2.f32 %v3880_v24  ;;  %v3888_v24 = vmul.f32 -1.442695, %v7054_v2 }
 0x2fd   : > { %v7154_v57 = vpop.f32.mrb[122].mxu1  ;;  %4859 = vpow2.f32 %v3883_v28  ;;  %v3891_v28 = vmul.f32 -1.442695, %v7058_v61 }
 0x2fe   : > { %7537 = vst [vmem:[#allocation38_spill] sm:$0xff] %v7154_v57  ;;  %v7156_v47 = vpop.f32.mrb[123].mxu1  ;;  %4861 = vrcp.f32 %v2226_v30  ;;  %v2230_v57 = vadd.f32 1.0, %v4836_v55 }
 0x2ff   : > { %7538 = vst [vmem:[#allocation39_spill] sm:$0xff] %v7156_v47  ;;  %v4840_v47 = vpop.eup %4839  ;;  %4863 = vrcp.f32 %v2227_v49 }
 0x300   : > { %v4842_v12 = vpop.eup %4841  ;;  %4865 = vpow2.f32 %v3884_v39  ;;  %v2598_v11 = vmul.f32 %v4840_v47, %v6959_v43 }
 0x301   : > { %v7160_v42 = vpop.f32.mrb[124].mxu1  ;;  %v4844_v9 = vpop.eup %4843  ;;  %4867 = vpow2.f32 %v3887_v15  ;;  %v2599_v30 = vmul.f32 %v4842_v12, %v6964_v56  ;;  %v3895_v15 = vmul.f32 -1.442695, %v7064_v5 }
 0x302   : > { %7539 = vst [vmem:[#allocation40_spill] sm:$0xff] %v7160_v42  ;;  %v7162_v60 = vpop.f32.mrb[125].mxu1  ;;  %v2231_v42 = vadd.f32 1.0, %v4838_v40  ;;  %v4846_v20 = vpop.eup %4845  ;;  %4869 = vrcp.f32 %v2230_v57  ;;  %v2234_v55 = vadd.f32 1.0, %v4844_v9 }
 0x303   : > { %7540 = vst [vmem:[#allocation41_spill] sm:$0xff] %v7162_v60  ;;  %v4848_v60 = vpop.eup %4847  ;;  %v2235_v40 = vadd.f32 1.0, %v4846_v20 }
 0x304   : > { %v4850_v32 = vpop.eup %4849  ;;  %4871 = vrcp.f32 %v2231_v42  ;;  %v2602_v47 = vmul.f32 %v4848_v60, %v6977_v14  ;;  %v3896_v42 = vmul.f32 -1.442695, %v7066_v18  ;;  %v3899_v14 = vmul.f32 -1.442695, %v7069_v54 }
 0x305   : > { %v7166_v35 = vpop.f32.mrb[126].mxu1  ;;  %v4852_v49 = vpop.eup %4851  ;;  %4873 = vpow2.f32 %v3888_v24  ;;  %v2603_v57 = vmul.f32 %v4850_v32, %v6980_v53 }
 0x306   : > { %7541 = vst [vmem:[#allocation42_spill] sm:$0xff] %v7166_v35  ;;  %v7168_v17 = vpop.f32.mrb[127].mxu1  ;;  %v4854_v39 = vpop.eup %4853  ;;  %4875 = vpow2.f32 %v3891_v28  ;;  %v2606_v28 = vmul.f32 %v4852_v49, %v6986_v22  ;;  %v3903_v22 = vmul.f32 -1.442695, %v7073_v19 }
 0x307   : > { %7542 = vst [vmem:[#allocation43_spill] sm:$0xff] %v7168_v17  ;;  %v4856_v43 = vpop.eup %4855  ;;  %4877 = vrcp.f32 %v2234_v55 }
 0x308   : > { %v4858_v56 = vpop.eup %4857  ;;  %4879 = vrcp.f32 %v2235_v40 }
 0x309   : > { %v1637_v35 = vpop.f32.mrb[128].mxu1  ;;  %4881 = vpow2.f32 %v3892_v23  ;;  %v2239_v53 = vadd.f32 1.0, %v4858_v56 }
 0x30a   : > { %v2726_v17 = vmul.f32 %v2598_v11, %v1637_v35  ;;  %v1639_v36 = vpop.f32.mrb[129].mxu1  ;;  %v4860_v11 = vpop.eup %4859  ;;  %v2238_v35 = vadd.f32 1.0, %v4854_v39  ;;  %4883 = vpow2.f32 %v3895_v15 }
 0x30b   : > { %v2727_v34 = vmul.f32 %v2599_v30, %v1639_v36  ;;  %v4862_v36 = vpop.eup %4861  ;;  %v2607_v30 = vmul.f32 %v4856_v43, %v6991_v41  ;;  %4885 = vpow2.f32 %v3896_v42 }
 0x30c   : > { %v4864_v24 = vpop.eup %4863  ;;  %4887 = vrcp.f32 %v2238_v35  ;;  %v2610_v56 = vmul.f32 %v4862_v36, %v7000_v6  ;;  %v3904_v35 = vmul.f32 -1.442695, %v7075_v31  ;;  %v3907_v6 = vmul.f32 -1.442695, %v7077_v10 }
 0x30d   : > { %v1643_v12 = vpop.f32.mrb[130].mxu1  ;;  %3237 = vmatprep.mubr.f32.mxu0 %v2727_v34  ;;  %v4866_v32 = vpop.eup %4865  ;;  %v2242_v34 = vadd.f32 1.0, %v4860_v11  ;;  %4889 = vpow2.f32 %v3899_v14 }
 0x30e   : > { %v2730_v9 = vmul.f32 %v2602_v47, %v1643_v12  ;;  %v1645_v20 = vpop.f32.mrb[131].mxu1  ;;  %3238 = vmatmul.mubr.f32.vlgmr.msra.gmra.mrb[64].mxu0 %v2726_v17  ;;  %v4868_v40 = vpop.eup %4867  ;;  %v3900_v17 = vmul.f32 -1.442695, %v7071_v1  ;;  %4891 = vrcp.f32 %v2239_v53  ;;  %v2243_v41 = vadd.f32 1.0, %v4866_v32 }
 0x30f   : > { %v2731_v60 = vmul.f32 %v2603_v57, %v1645_v20  ;;  %v4870_v47 = vpop.eup %4869  ;;  %v2611_v57 = vmul.f32 %v4864_v24, %v7003_v62  ;;  %4893 = vrcp.f32 %v2242_v34  ;;  %v2246_v42 = vadd.f32 1.0, %v4868_v40 }
 0x310   : > { %v4872_v15 = vpop.eup %4871  ;;  %4895 = vpow2.f32 %v3900_v17 }
 0x311   : > { %v1649_v55 = vpop.f32.mrb[132].mxu1  ;;  %3243 = vmatprep.mubr.f32.mxu0 %v2731_v60  ;;  %v4874_v43 = vpop.eup %4873  ;;  %4897 = vpow2.f32 %v3903_v22  ;;  %v2615_v53 = vmul.f32 %v4872_v15, %v7015_v45 }
 0x312   : > { %v2734_v23 = vmul.f32 %v2606_v28, %v1649_v55  ;;  %v1651_v39 = vpop.f32.mrb[133].mxu1  ;;  %3244 = vmatmul.mubr.f32.gmra.mrb[66].mxu0 %v2730_v9  ;;  %v4876_v11 = vpop.eup %4875  ;;  %v2614_v28 = vmul.f32 %v4870_v47, %v7009_v59  ;;  %4899 = vrcp.f32 %v2243_v41  ;;  %v2247_v62 = vadd.f32 1.0, %v4874_v43 }
 0x313   : > { %v2735_v49 = vmul.f32 %v2607_v30, %v1651_v39  ;;  %v4878_v14 = vpop.eup %4877  ;;  %4901 = vrcp.f32 %v2246_v42  ;;  %v2250_v32 = vadd.f32 1.0, %v4876_v11  ;;  %v3908_v55 = vmul.f32 -1.442695, %v7079_v25 }
 0x314   : > { %v4880_v60 = vpop.eup %4879  ;;  %4903 = vpow2.f32 %v3904_v35  ;;  %v3911_v59 = vmul.f32 -1.442695, %v7081_v50  ;;  %v2618_v22 = vmul.f32 %v4878_v14, %v7025_v4  ;;  %v3912_v35 = vmul.f32 -1.442695, %v7083_v58 }
 0x315   : > { %v1655_v12 = vpop.f32.mrb[134].mxu1  ;;  %3249 = vmatprep.mubr.f32.mxu0 %v2735_v49  ;;  %v4882_v24 = vpop.eup %4881  ;;  %4905 = vpow2.f32 %v3907_v6  ;;  %v2619_v15 = vmul.f32 %v4880_v60, %v7028_v8 }
 0x316   : > { %v2738_v9 = vmul.f32 %v2610_v56, %v1655_v12  ;;  %v1657_v20 = vpop.f32.mrb[135].mxu1  ;;  %3250 = vmatmul.mubr.f32.gmra.mrb[68].mxu0 %v2734_v23  ;;  %v4884_v34 = vpop.eup %4883  ;;  %4907 = vrcp.f32 %v2247_v62  ;;  %v2251_v45 = vadd.f32 1.0, %v4882_v24  ;;  %v3916_v62 = vmul.f32 -1.442695, %v7087_v48 }
 0x317   : > { %v2739_v36 = vmul.f32 %v2611_v57, %v1657_v20  ;;  %v4886_v23 = vpop.eup %4885  ;;  %4909 = vrcp.f32 %v2250_v32  ;;  %v2254_v56 = vadd.f32 1.0, %v4884_v34 }
 0x318   : > { %v4888_v47 = vpop.eup %4887  ;;  %v2255_v57 = vadd.f32 1.0, %v4886_v23  ;;  %4911 = vpow2.f32 %v3908_v55  ;;  %v3919_v23 = vmul.f32 -1.442695, %v7089_v13 }
 0x319   : > { %v1661_v30 = vpop.f32.mrb[136].mxu1  ;;  %3255 = vmatprep.mubr.f32.mxu0 %v2739_v36  ;;  %v4890_v49 = vpop.eup %4889  ;;  %4913 = vpow2.f32 %v3911_v59  ;;  %v2622_v20 = vmul.f32 %v4888_v47, %v7035_v51  ;;  %v3915_v36 = vmul.f32 -1.442695, %v7085_v37  ;;  %v3920_v47 = vmul.f32 -1.442695, %v7091_v21 }
 0x31a   : > { %v2742_v40 = vmul.f32 %v2614_v28, %v1661_v30  ;;  %v1663_v17 = vpop.f32.mrb[137].mxu1  ;;  %3256 = vmatmul.mubr.f32.gmra.mrb[70].mxu0 %v2738_v9  ;;  %v4892_v43 = vpop.eup %4891  ;;  %4915 = vrcp.f32 %v2251_v45  ;;  %v2258_v8 = vadd.f32 1.0, %v4890_v49 }
 0x31b   : > { %v2743_v39 = vmul.f32 %v2615_v53, %v1663_v17  ;;  %v4894_v11 = vpop.eup %4893  ;;  %v2623_v6 = vmul.f32 %v4892_v43, %v7040_v38  ;;  %4917 = vrcp.f32 %v2254_v56 }
 0x31c   : > { %v4896_v9 = vpop.eup %4895  ;;  %4919 = vrcp.f32 %v2255_v57  ;;  %v2626_v55 = vmul.f32 %v4894_v11, %v7046_v3 }
 0x31d   : > { %v1667_v41 = vpop.f32.mrb[138].mxu1  ;;  %3261 = vmatprep.mubr.f32.mxu0 %v2743_v39  ;;  %v4898_v14 = vpop.eup %4897  ;;  %v2259_v30 = vadd.f32 1.0, %v4896_v9  ;;  %4921 = vpow2.f32 %v3912_v35  ;;  %v3924_v35 = vmul.f32 -1.442695, %v7095_v46 }
 0x31e   : > { %v2746_v42 = vmul.f32 %v2618_v22, %v1667_v41  ;;  %v1669_v12 = vpop.f32.mrb[139].mxu1  ;;  %3262 = vmatmul.mubr.f32.gmra.mrb[72].mxu0 %v2742_v40  ;;  %v4900_v28 = vpop.eup %4899  ;;  %4923 = vrcp.f32 %v2258_v8  ;;  %v2262_v38 = vadd.f32 1.0, %v4898_v14 }
 0x31f   : > { %v2747_v4 = vmul.f32 %v2619_v15, %v1669_v12  ;;  %v4902_v32 = vpop.eup %4901  ;;  %v2627_v17 = vmul.f32 %v4900_v28, %v7048_v63  ;;  %4925 = vpow2.f32 %v3915_v36  ;;  %v3927_v28 = vmul.f32 -1.442695, %v7097_v44 }
 0x320   : > { %v4904_v34 = vpop.eup %4903  ;;  %4927 = vpow2.f32 %v3916_v62  ;;  %v2630_v41 = vmul.f32 %v4902_v32, %v7052_v16 }
 0x321   : > { %v1673_v60 = vpop.f32.mrb[140].mxu1  ;;  %3267 = vmatprep.mubr.f32.mxu0 %v2747_v4  ;;  %v4906_v40 = vpop.eup %4905  ;;  %4929 = vrcp.f32 %v2259_v30  ;;  %v2263_v3 = vadd.f32 1.0, %v4904_v34 }
 0x322   : > { %v2750_v24 = vmul.f32 %v2622_v20, %v1673_v60  ;;  %v1675_v53 = vpop.f32.mrb[141].mxu1  ;;  %3268 = vmatmul.mubr.f32.gmra.mrb[74].mxu0 %v2746_v42  ;;  %v4908_v39 = vpop.eup %4907  ;;  %4931 = vrcp.f32 %v2262_v38  ;;  %v2266_v63 = vadd.f32 1.0, %v4906_v40  ;;  %v3923_v42 = vmul.f32 -1.442695, %v7093_v52 }
 0x323   : > { %v2751_v51 = vmul.f32 %v2623_v6, %v1675_v53  ;;  %v4910_v49 = vpop.eup %4909  ;;  %v2631_v57 = vmul.f32 %v4908_v39, %v7054_v2  ;;  %4933 = vpow2.f32 %v3919_v23  ;;  %v3928_v53 = vmul.f32 -1.442695, %v7099_v27 }
 0x324   : > { %v4912_v56 = vpop.eup %4911  ;;  %4935 = vpow2.f32 %v3920_v47  ;;  %v2634_v6 = vmul.f32 %v4910_v49, %v7058_v61  ;;  %v3931_v61 = vmul.f32 -1.442695, %v7101_v29  ;;  %v3932_v23 = vmul.f32 -1.442695, %v7103_v33 }
 0x325   : > { %v1679_v59 = vpop.f32.mrb[142].mxu1  ;;  %3273 = vmatprep.mubr.f32.mxu0 %v2751_v51  ;;  %v4914_v43 = vpop.eup %4913  ;;  %4937 = vrcp.f32 %v2263_v3  ;;  %v2267_v16 = vadd.f32 1.0, %v4912_v56 }
 0x326   : > { %v2754_v22 = vmul.f32 %v2626_v55, %v1679_v59  ;;  %v1681_v45 = vpop.f32.mrb[143].mxu1  ;;  %3274 = vmatmul.mubr.f32.gmra.mrb[76].mxu0 %v2750_v24  ;;  %v4916_v11 = vpop.eup %4915  ;;  %4939 = vrcp.f32 %v2266_v63  ;;  %v2270_v2 = vadd.f32 1.0, %v4914_v43  ;;  %v3936_v43 = vmul.f32 -1.442695, %v7107_v26 }
 0x327   : > { %v2755_v15 = vmul.f32 %v2627_v17, %v1681_v45  ;;  %v4918_v20 = vpop.eup %4917  ;;  %v2635_v60 = vmul.f32 %v4916_v11, %v7060_v7  ;;  %4941 = vpow2.f32 %v3923_v42 }
 0x328   : > { %v4920_v14 = vpop.eup %4919  ;;  %4943 = vpow2.f32 %v3924_v35  ;;  %v2638_v7 = vmul.f32 %v4918_v20, %v7064_v5 }
 0x329   : > { %v1685_v12 = vpop.f32.mrb[144].mxu1  ;;  %3279 = vmatprep.mubr.f32.mxu0 %v2755_v15  ;;  %v4922_v36 = vpop.eup %4921  ;;  %4945 = vrcp.f32 %v2267_v16  ;;  %v2639_v17 = vmul.f32 %v4920_v14, %v7066_v18  ;;  %v3935_v18 = vmul.f32 -1.442695, %v7105_v0 }
 0x32a   : > { %v2758_v4 = vmul.f32 %v2630_v41, %v1685_v12  ;;  %v1687_v9 = vpop.f32.mrb[145].mxu1  ;;  %3280 = vmatmul.mubr.f32.gmra.mrb[78].mxu0 %v2754_v22  ;;  %v4924_v24 = vpop.eup %4923  ;;  %4947 = vrcp.f32 %v2270_v2  ;;  %v2271_v38 = vadd.f32 1.0, %v4922_v36  ;;  %v7544_v2 = vld [vmem:[#allocation23_spill] sm:$0xff] }
 0x32b   : > { %v2759_v8 = vmul.f32 %v2631_v57, %v1687_v9  ;;  %v4926_v51 = vpop.eup %4925  ;;  %4949 = vpow2.f32 %v3927_v28  ;;  %v2642_v56 = vmul.f32 %v4924_v24, %v7069_v54  ;;  %v3940_v36 = vmul.f32 -1.442695, %v7544_v2 }
 0x32c   : > { %v4928_v55 = vpop.eup %4927  ;;  %v2274_v47 = vadd.f32 1.0, %v4926_v51  ;;  %4951 = vpow2.f32 %v3928_v53 }
 0x32d   : > { %v1691_v62 = vpop.f32.mrb[146].mxu1  ;;  %3285 = vmatprep.mubr.f32.mxu0 %v2759_v8  ;;  %v4930_v40 = vpop.eup %4929  ;;  %v2275_v3 = vadd.f32 1.0, %v4928_v55  ;;  %4953 = vpow2.f32 %v3931_v61 }
 0x32e   : > { %v2762_v32 = vmul.f32 %v2634_v6, %v1691_v62  ;;  %v1693_v30 = vpop.f32.mrb[147].mxu1  ;;  %3286 = vmatmul.mubr.f32.gmra.mrb[80].mxu0 %v2758_v4  ;;  %v4932_v39 = vpop.eup %4931  ;;  %4955 = vrcp.f32 %v2271_v38  ;;  %v2643_v63 = vmul.f32 %v4930_v40, %v7071_v1  ;;  %v7543_v1 = vld [vmem:[#allocation22_spill] sm:$0xff]  ;;  %v7546_v38 = vld [vmem:[#allocation25_spill] sm:$0xff] }
 0x32f   : > { %v2763_v34 = vmul.f32 %v2635_v60, %v1693_v30  ;;  %v4934_v49 = vpop.eup %4933  ;;  %4957 = vpow2.f32 %v3932_v23  ;;  %v2646_v16 = vmul.f32 %v4932_v39, %v7073_v19  ;;  %v3939_v8 = vmul.f32 -1.442695, %v7543_v1 }
 0x330   : > { %v4936_v15 = vpop.eup %4935  ;;  %4959 = vrcp.f32 %v2274_v47  ;;  %v2278_v12 = vadd.f32 1.0, %v4934_v49  ;;  %v3944_v40 = vmul.f32 -1.442695, %v7546_v38 }
 0x331   : > { %v1697_v59 = vpop.f32.mrb[148].mxu1  ;;  %3291 = vmatprep.mubr.f32.mxu0 %v2763_v34  ;;  %v4938_v41 = vpop.eup %4937  ;;  %4961 = vrcp.f32 %v2275_v3  ;;  %v2279_v54 = vadd.f32 1.0, %v4936_v15 }
 0x332   : > { %v2766_v22 = vmul.f32 %v2638_v7, %v1697_v59  ;;  %v1699_v45 = vpop.f32.mrb[149].mxu1  ;;  %3292 = vmatmul.mubr.f32.gmra.mrb[82].mxu0 %v2762_v32  ;;  %v4940_v42 = vpop.eup %4939  ;;  %4963 = vpow2.f32 %v3935_v18  ;;  %v2647_v6 = vmul.f32 %v4938_v41, %v7075_v31  ;;  %v7545_v31 = vld [vmem:[#allocation24_spill] sm:$0xff] }
 0x333   : > { %v2767_v5 = vmul.f32 %v2639_v17, %v1699_v45  ;;  %v4942_v4 = vpop.eup %4941  ;;  %4965 = vpow2.f32 %v3936_v43  ;;  %v2650_v61 = vmul.f32 %v4940_v42, %v7077_v10  ;;  %v3943_v34 = vmul.f32 -1.442695, %v7545_v31 }
 0x334   : > { %v4944_v20 = vpop.eup %4943  ;;  %4967 = vrcp.f32 %v2278_v12  ;;  %v2282_v62 = vadd.f32 1.0, %v4942_v4 }
 0x335   : > { %v1703_v57 = vpop.f32.mrb[150].mxu1  ;;  %3297 = vmatprep.mubr.f32.mxu0 %v2767_v5  ;;  %v4946_v14 = vpop.eup %4945  ;;  %4969 = vrcp.f32 %v2279_v54  ;;  %v2283_v19 = vadd.f32 1.0, %v4944_v20 }
 0x336   : > { %v2770_v11 = vmul.f32 %v2642_v56, %v1703_v57  ;;  %v1705_v35 = vpop.f32.mrb[151].mxu1  ;;  %3298 = vmatmul.mubr.f32.gmra.mrb[84].mxu0 %v2766_v22  ;;  %v4948_v28 = vpop.eup %4947  ;;  %4971 = vpow2.f32 %v3939_v8  ;;  %v2651_v7 = vmul.f32 %v4946_v14, %v7079_v25  ;;  %v7547_v56 = vld [vmem:[#allocation26_spill] sm:$0xff] }
 0x337   : > { %v2771_v9 = vmul.f32 %v2643_v63, %v1705_v35  ;;  %v4950_v32 = vpop.eup %4949  ;;  %4973 = vpow2.f32 %v3940_v36  ;;  %v2654_v3 = vmul.f32 %v4948_v28, %v7081_v50  ;;  %v3947_v18 = vmul.f32 -1.442695, %v7547_v56 }
 0x338   : > { %v4952_v51 = vpop.eup %4951  ;;  %4975 = vrcp.f32 %v2282_v62  ;;  %v2286_v59 = vadd.f32 1.0, %v4950_v32 }
 0x339   : > { %v1709_v60 = vpop.f32.mrb[152].mxu1  ;;  %3303 = vmatprep.mubr.f32.mxu0 %v2771_v9  ;;  %v4954_v55 = vpop.eup %4953  ;;  %4977 = vrcp.f32 %v2283_v19  ;;  %v2287_v10 = vadd.f32 1.0, %v4952_v51 }
 0x33a   : > { %v2774_v24 = vmul.f32 %v2646_v16, %v1709_v60  ;;  %v1711_v53 = vpop.f32.mrb[153].mxu1  ;;  %3304 = vmatmul.mubr.f32.gmra.mrb[86].mxu0 %v2770_v11  ;;  %v4956_v23 = vpop.eup %4955  ;;  %v2290_v5 = vadd.f32 1.0, %v4954_v55  ;;  %4979 = vpow2.f32 %v3943_v34  ;;  %v7548_v11 = vld [vmem:[#allocation27_spill] sm:$0xff] }
 0x33b   : > { %v2775_v30 = vmul.f32 %v2647_v6, %v1711_v53  ;;  %v4958_v22 = vpop.eup %4957  ;;  %v2655_v15 = vmul.f32 %v4956_v23, %v7083_v58  ;;  %4981 = vpow2.f32 %v3944_v40  ;;  %v3948_v50 = vmul.f32 -1.442695, %v7548_v11  ;;  %v7549_v58 = vld [vmem:[#allocation28_spill] sm:$0xff] }
 0x33c   : > { %v4960_v49 = vpop.eup %4959  ;;  %4983 = vrcp.f32 %v2286_v59  ;;  %v2291_v43 = vadd.f32 1.0, %v4958_v22  ;;  %v3951_v9 = vmul.f32 -1.442695, %v7549_v58 }
 0x33d   : > { %v1715_v17 = vpop.f32.mrb[154].mxu1  ;;  %3309 = vmatprep.mubr.f32.mxu0 %v2775_v30  ;;  %v4962_v25 = vpop.eup %4961  ;;  %4985 = vrcp.f32 %v2287_v10  ;;  %v2658_v54 = vmul.f32 %v4960_v49, %v7085_v37 }
 0x33e   : > { %v2778_v39 = vmul.f32 %v2650_v61, %v1715_v17  ;;  %v1717_v47 = vpop.f32.mrb[155].mxu1  ;;  %3310 = vmatmul.mubr.f32.gmra.mrb[88].mxu0 %v2774_v24  ;;  %v4964_v63 = vpop.eup %4963  ;;  %4987 = vrcp.f32 %v2290_v5  ;;  %v2659_v16 = vmul.f32 %v4962_v25, %v7087_v48  ;;  %v7550_v24 = vld [vmem:[#allocation29_spill] sm:$0xff]  ;;  %v7551_v48 = vld [vmem:[#allocation30_spill] sm:$0xff] }
 0x33f   : > { %v2779_v45 = vmul.f32 %v2651_v7, %v1717_v47  ;;  %v4966_v12 = vpop.eup %4965  ;;  %v2294_v8 = vadd.f32 1.0, %v4964_v63  ;;  %4989 = vpow2.f32 %v3947_v18  ;;  %v3952_v37 = vmul.f32 -1.442695, %v7550_v24 }
 0x340   : > { %v4968_v4 = vpop.eup %4967  ;;  %4991 = vrcp.f32 %v2291_v43  ;;  %v2295_v36 = vadd.f32 1.0, %v4966_v12  ;;  %v3955_v30 = vmul.f32 -1.442695, %v7551_v48 }
 0x341   : > { %v1721_v41 = vpop.f32.mrb[156].mxu1  ;;  %3315 = vmatprep.mubr.f32.mxu0 %v2779_v45  ;;  %v4970_v20 = vpop.eup %4969  ;;  %4993 = vpow2.f32 %v3948_v50  ;;  %v2662_v19 = vmul.f32 %v4968_v4, %v7089_v13 }
 0x342   : > { %v2782_v57 = vmul.f32 %v2654_v3, %v1721_v41  ;;  %v1723_v42 = vpop.f32.mrb[157].mxu1  ;;  %3316 = vmatmul.mubr.f32.gmra.mrb[90].mxu0 %v2778_v39  ;;  %v4972_v6 = vpop.eup %4971  ;;  %4995 = vpow2.f32 %v3951_v9  ;;  %v2663_v61 = vmul.f32 %v4970_v20, %v7091_v21  ;;  %v7552_v39 = vld [vmem:[#allocation31_spill] sm:$0xff]  ;;  %v7553_v21 = vld [vmem:[#allocation32_spill] sm:$0xff] }
 0x343   : > { %v2783_v35 = vmul.f32 %v2655_v15, %v1723_v42  ;;  %v4974_v62 = vpop.eup %4973  ;;  %4997 = vrcp.f32 %v2294_v8  ;;  %v2298_v34 = vadd.f32 1.0, %v4972_v6  ;;  %v3956_v13 = vmul.f32 -1.442695, %v7552_v39 }
 0x344   : > { %v4976_v32 = vpop.eup %4975  ;;  %4999 = vrcp.f32 %v2295_v36  ;;  %v2299_v40 = vadd.f32 1.0, %v4974_v62  ;;  %v3959_v45 = vmul.f32 -1.442695, %v7553_v21  ;;  %v7556_v36 = vld [vmem:[#allocation35_spill] sm:$0xff] }
 0x345   : > { %v1727_v14 = vpop.f32.mrb[158].mxu1  ;;  %3321 = vmatprep.mubr.f32.mxu0 %v2783_v35  ;;  %v4978_v51 = vpop.eup %4977  ;;  %5001 = vpow2.f32 %v3952_v37  ;;  %v2666_v10 = vmul.f32 %v4976_v32, %v7093_v52 }
 0x346   : > { %v2786_v60 = vmul.f32 %v2658_v54, %v1727_v14  ;;  %v1729_v28 = vpop.f32.mrb[159].mxu1  ;;  %3322 = vmatmul.mubr.f32.gmra.mrb[92].mxu0 %v2782_v57  ;;  %v4980_v7 = vpop.eup %4979  ;;  %5003 = vpow2.f32 %v3955_v30  ;;  %v2667_v3 = vmul.f32 %v4978_v51, %v7095_v46  ;;  %v7554_v57 = vld [vmem:[#allocation33_spill] sm:$0xff]  ;;  %v7555_v46 = vld [vmem:[#allocation34_spill] sm:$0xff]  ;;  %v7557_v51 = vld [vmem:[#allocation36_spill] sm:$0xff] }
 0x347   : > { %v2787_v53 = vmul.f32 %v2659_v16, %v1729_v28  ;;  %v4982_v59 = vpop.eup %4981  ;;  %5005 = vrcp.f32 %v2298_v34  ;;  %v2302_v5 = vadd.f32 1.0, %v4980_v7  ;;  %v3960_v52 = vmul.f32 -1.442695, %v7554_v57 }
 0x348   : > { %v4984_v22 = vpop.eup %4983  ;;  %5007 = vrcp.f32 %v2299_v40  ;;  %v2303_v18 = vadd.f32 1.0, %v4982_v59  ;;  %v3963_v35 = vmul.f32 -1.442695, %v7555_v46  ;;  %v7558_v40 = vld [vmem:[#allocation37_spill] sm:$0xff] }
 0x349   : > { %v1733_v55 = vpop.f32.mrb[160].mxu1  ;;  %3327 = vmatprep.mubr.f32.mxu0 %v2787_v53  ;;  %v4986_v49 = vpop.eup %4985  ;;  %5009 = vpow2.f32 %v3956_v13  ;;  %v2670_v50 = vmul.f32 %v4984_v22, %v7097_v44 }
 0x34a   : > { %v2790_v17 = vmul.f32 %v2662_v19, %v1733_v55  ;;  %v1735_v23 = vpop.f32.mrb[161].mxu1  ;;  %3328 = vmatmul.mubr.f32.gmra.mrb[94].mxu0 %v2786_v60  ;;  %v4988_v15 = vpop.eup %4987  ;;  %5011 = vpow2.f32 %v3959_v45  ;;  %v2671_v54 = vmul.f32 %v4986_v49, %v7099_v27  ;;  %v3964_v60 = vmul.f32 -1.442695, %v7556_v36  ;;  %v7559_v49 = vld [vmem:[#allocation38_spill] sm:$0xff] }
 0x34b   : > { %v2791_v47 = vmul.f32 %v2663_v61, %v1735_v23  ;;  %v4990_v43 = vpop.eup %4989  ;;  %5013 = vrcp.f32 %v2302_v5  ;;  %v2674_v62 = vmul.f32 %v4988_v15, %v7101_v29  ;;  %v3967_v61 = vmul.f32 -1.442695, %v7557_v51 }
 0x34c   : > { %v4992_v12 = vpop.eup %4991  ;;  %5015 = vrcp.f32 %v2303_v18  ;;  %v2306_v16 = vadd.f32 1.0, %v4990_v43  ;;  %v7560_v18 = vld [vmem:[#allocation39_spill] sm:$0xff] }
 0x34d   : > { %v1739_v25 = vpop.f32.mrb[162].mxu1  ;;  %3333 = vmatprep.mubr.f32.mxu0 %v2791_v47  ;;  %v4994_v4 = vpop.eup %4993  ;;  %5017 = vpow2.f32 %v3960_v52  ;;  %v2675_v53 = vmul.f32 %v4992_v12, %v7103_v33 }
 0x34e   : > { %v2794_v41 = vmul.f32 %v2666_v10, %v1739_v25  ;;  %v1741_v63 = vpop.f32.mrb[163].mxu1  ;;  %3334 = vmatmul.mubr.f32.gmra.mrb[96].mxu0 %v2790_v17  ;;  %v4996_v20 = vpop.eup %4995  ;;  %v2307_v37 = vadd.f32 1.0, %v4994_v4  ;;  %5019 = vpow2.f32 %v3963_v35  ;;  %v3968_v17 = vmul.f32 -1.442695, %v7558_v40  ;;  %v7561_v4 = vld [vmem:[#allocation40_spill] sm:$0xff] }
 0x34f   : > { %v2795_v42 = vmul.f32 %v2667_v3, %v1741_v63  ;;  %v4998_v6 = vpop.eup %4997  ;;  %v2310_v32 = vadd.f32 1.0, %v4996_v20  ;;  %5021 = vrcp.f32 %v2306_v16  ;;  %v3971_v3 = vmul.f32 -1.442695, %v7559_v49  ;;  %v7562_v16 = vld [vmem:[#allocation41_spill] sm:$0xff] }
 0x350   : > { %v5000_v28 = vpop.eup %4999  ;;  %5023 = vpow2.f32 %v3964_v60  ;;  %v2678_v59 = vmul.f32 %v4998_v6, %v7105_v0  ;;  %v3972_v0 = vmul.f32 -1.442695, %v7560_v18 }
 0x351   : > { %v1745_v9 = vpop.f32.mrb[164].mxu1  ;;  %3339 = vmatprep.mubr.f32.mxu0 %v2795_v42  ;;  %v5002_v27 = vpop.eup %5001  ;;  %5025 = vrcp.f32 %v2307_v37  ;;  %v2679_v47 = vmul.f32 %v5000_v28, %v7107_v26 }
 0x352   : > { %v2798_v8 = vmul.f32 %v2670_v50, %v1745_v9  ;;  %v1747_v14 = vpop.f32.mrb[165].mxu1  ;;  %3340 = vmatmul.mubr.f32.gmra.mrb[98].mxu0 %v2794_v41  ;;  %v5004_v30 = vpop.eup %5003  ;;  %v2311_v33 = vadd.f32 1.0, %v5002_v27  ;;  %5027 = vrcp.f32 %v2310_v32  ;;  %v7563_v27 = vld [vmem:[#allocation42_spill] sm:$0xff] }
 0x353   : > { %v2799_v44 = vmul.f32 %v2671_v54, %v1747_v14  ;;  %v5006_v7 = vpop.eup %5005  ;;  %v2314_v22 = vadd.f32 1.0, %v5004_v30  ;;  %5029 = vpow2.f32 %v3967_v61  ;;  %v3975_v54 = vmul.f32 -1.442695, %v7561_v4  ;;  %v7564_v61 = vld [vmem:[#allocation43_spill] sm:$0xff] }
 0x354   : > { %v5008_v23 = vpop.eup %5007  ;;  %5031 = vpow2.f32 %v3968_v17  ;;  %v2682_v43 = vmul.f32 %v5006_v7, %v7543_v1 }
 0x355   : > { %v1751_v19 = vpop.f32.mrb[166].mxu1  ;;  %3345 = vmatprep.mubr.f32.mxu0 %v2799_v44  ;;  %v5010_v13 = vpop.eup %5009  ;;  %5033 = vrcp.f32 %v2311_v33  ;;  %v2683_v42 = vmul.f32 %v5008_v23, %v7544_v2 }
 0x356   : > { %v2802_v34 = vmul.f32 %v2674_v62, %v1751_v19  ;;  %v1753_v55 = vpop.f32.mrb[167].mxu1  ;;  %3346 = vmatmul.mubr.f32.gmra.mrb[100].mxu0 %v2798_v8  ;;  %v5012_v45 = vpop.eup %5011  ;;  %v2315_v26 = vadd.f32 1.0, %v5010_v13  ;;  %5035 = vrcp.f32 %v2314_v22  ;;  %v3976_v8 = vmul.f32 -1.442695, %v7562_v16 }
 0x357   : > { %v2803_v29 = vmul.f32 %v2675_v53, %v1753_v55  ;;  %v5014_v15 = vpop.eup %5013  ;;  %v2318_v12 = vadd.f32 1.0, %v5012_v45  ;;  %5037 = vpow2.f32 %v3971_v3  ;;  %v3979_v53 = vmul.f32 -1.442695, %v7563_v27 }
 0x358   : > { %v5016_v63 = vpop.eup %5015  ;;  %5039 = vpow2.f32 %v3972_v0  ;;  %v2686_v6 = vmul.f32 %v5014_v15, %v7545_v31  ;;  %v3980_v31 = vmul.f32 -1.442695, %v7564_v61 }
 0x359   : > { %v1757_v10 = vpop.f32.mrb[168].mxu1  ;;  %3351 = vmatprep.mubr.f32.mxu0 %v2803_v29  ;;  %v5018_v52 = vpop.eup %5017  ;;  %5041 = vrcp.f32 %v2315_v26  ;;  %v2687_v44 = vmul.f32 %v5016_v63, %v7546_v38 }
 0x35a   : > { %v2806_v5 = vmul.f32 %v2678_v59, %v1757_v10  ;;  %v1759_v25 = vpop.f32.mrb[169].mxu1  ;;  %3352 = vmatmul.mubr.f32.gmra.mrb[102].mxu0 %v2802_v34  ;;  %v5020_v35 = vpop.eup %5019  ;;  %v2319_v2 = vadd.f32 1.0, %v5018_v52  ;;  %5043 = vrcp.f32 %v2318_v12 }
 0x35b   : > { %v2807_v41 = vmul.f32 %v2679_v47, %v1759_v25  ;;  %v5022_v14 = vpop.eup %5021  ;;  %v2322_v28 = vadd.f32 1.0, %v5020_v35  ;;  %5045 = vpow2.f32 %v3975_v54 }
 0x35c   : > { %v5024_v60 = vpop.eup %5023  ;;  %5047 = vpow2.f32 %v3976_v8  ;;  %v2690_v7 = vmul.f32 %v5022_v14, %v7547_v56 }
 0x35d   : > { %v1763_v50 = vpop.f32.mrb[170].mxu1  ;;  %3357 = vmatprep.mubr.f32.mxu0 %v2807_v41  ;;  %v5026_v37 = vpop.eup %5025  ;;  %5049 = vrcp.f32 %v2319_v2  ;;  %v2323_v38 = vadd.f32 1.0, %v5024_v60 }
 0x35e   : > { %v2810_v9 = vmul.f32 %v2682_v43, %v1763_v50  ;;  %v1765_v20 = vpop.f32.mrb[171].mxu1  ;;  %3358 = vmatmul.mubr.f32.gmra.mrb[104].mxu0 %v2806_v5  ;;  %v5028_v30 = vpop.eup %5027  ;;  %v2691_v29 = vmul.f32 %v5026_v37, %v7548_v11  ;;  %5051 = vrcp.f32 %v2322_v28 }
 0x35f   : > { %v2811_v1 = vmul.f32 %v2683_v42, %v1765_v20  ;;  %v5030_v55 = vpop.eup %5029  ;;  %5053 = vpow2.f32 %v3979_v53  ;;  %v2694_v56 = vmul.f32 %v5028_v30, %v7549_v58 }
 0x360   : > { %v5032_v17 = vpop.eup %5031  ;;  %v2326_v22 = vadd.f32 1.0, %v5030_v55  ;;  %5055 = vpow2.f32 %v3980_v31 }
 0x361   : > { %v1769_v62 = vpop.f32.mrb[172].mxu1  ;;  %3363 = vmatprep.mubr.f32.mxu0 %v2811_v1  ;;  %v5034_v59 = vpop.eup %5033  ;;  %5057 = vrcp.f32 %v2323_v38  ;;  %v2327_v3 = vadd.f32 1.0, %v5032_v17 }
 0x362   : > { %v2814_v32 = vmul.f32 %v2686_v6, %v1769_v62  ;;  %v1771_v19 = vpop.f32.mrb[173].mxu1  ;;  %3364 = vmatmul.mubr.f32.gmra.mrb[106].mxu0 %v2810_v9  ;;  %v5036_v47 = vpop.eup %5035  ;;  %v2695_v11 = vmul.f32 %v5034_v59, %v7550_v24  ;;  %5059 = vrcp.f32 %v2326_v22 }
 0x363   : > { %v2815_v34 = vmul.f32 %v2687_v44, %v1771_v19  ;;  %v5038_v45 = vpop.eup %5037  ;;  %v2698_v42 = vmul.f32 %v5036_v47, %v7551_v48  ;;  %5061 = vrcp.f32 %v2327_v3 }
 0x364   : > { %v5040_v5 = vpop.eup %5039  ;;  %v2330_v43 = vadd.f32 1.0, %v5038_v45 }
 0x365   : > { %v1775_v23 = vpop.f32.mrb[174].mxu1  ;;  %3369 = vmatprep.mubr.f32.mxu0 %v2815_v34  ;;  %v5042_v15 = vpop.eup %5041  ;;  %v2331_v58 = vadd.f32 1.0, %v5040_v5 }
 0x366   : > { %v2818_v33 = vmul.f32 %v2690_v7, %v1775_v23  ;;  %v1777_v13 = vpop.f32.mrb[175].mxu1  ;;  %3370 = vmatmul.mubr.f32.gmra.mrb[108].mxu0 %v2814_v32  ;;  %v5044_v63 = vpop.eup %5043  ;;  %v2699_v50 = vmul.f32 %v5042_v15, %v7552_v39  ;;  %5063 = vrcp.f32 %v2330_v43 }
 0x367   : > { %v2819_v10 = vmul.f32 %v2691_v29, %v1777_v13  ;;  %v5046_v52 = vpop.eup %5045  ;;  %v2702_v6 = vmul.f32 %v5044_v63, %v7553_v21  ;;  %5065 = vrcp.f32 %v2331_v58 }
 0x368   : > { %v5048_v12 = vpop.eup %5047  ;;  %v2334_v8 = vadd.f32 1.0, %v5046_v52 }
 0x369   : > { %v1781_v25 = vpop.f32.mrb[176].mxu1  ;;  %3375 = vmatprep.mubr.f32.mxu0 %v2819_v10  ;;  %v5050_v24 = vpop.eup %5049  ;;  %v2335_v48 = vadd.f32 1.0, %v5048_v12 }
 0x36a   : > { %v2822_v0 = vmul.f32 %v2694_v56, %v1781_v25  ;;  %v1783_v41 = vpop.f32.mrb[177].mxu1  ;;  %3376 = vmatmul.mubr.f32.gmra.mrb[110].mxu0 %v2818_v33  ;;  %v5052_v20 = vpop.eup %5051  ;;  %v2703_v60 = vmul.f32 %v5050_v24, %v7554_v57  ;;  %5067 = vrcp.f32 %v2334_v8  ;;  %v2854_v24 = vld [vmem:[#allocation2 + $0x10] sm:$0xff]  ;;  %v2856_v8 = vld [vmem:[#allocation2 + $0x20] sm:$0xff] }
 0x36b   : > { %v2823_v26 = vmul.f32 %v2695_v11, %v1783_v41  ;;  %v5054_v14 = vpop.eup %5053  ;;  %v2706_v32 = vmul.f32 %v5052_v20, %v7555_v46  ;;  %5069 = vrcp.f32 %v2335_v48 }
 0x36c   : > { %v5056_v2 = vpop.eup %5055  ;;  %v2338_v37 = vadd.f32 1.0, %v5054_v14 }
 0x36d   : > { %v1787_v35 = vpop.f32.mrb[178].mxu1  ;;  %3381 = vmatprep.mubr.f32.mxu0 %v2823_v26  ;;  %v5058_v39 = vpop.eup %5057  ;;  %v2339_v19 = vadd.f32 1.0, %v5056_v2 }
 0x36e   : > { %v2826_v54 = vmul.f32 %v2698_v42, %v1787_v35  ;;  %v1789_v9 = vpop.f32.mrb[179].mxu1  ;;  %3382 = vmatmul.mubr.f32.gmra.mrb[112].mxu0 %v2822_v0  ;;  %v5060_v30 = vpop.eup %5059  ;;  %v2707_v21 = vmul.f32 %v5058_v39, %v7556_v36  ;;  %5071 = vrcp.f32 %v2338_v37  ;;  %v2853_v42 = vld [vmem:[#allocation2 + $0x8] sm:$0xff] }
 0x36f   : > { %v2827_v1 = vmul.f32 %v2699_v50, %v1789_v9  ;;  %v5062_v34 = vpop.eup %5061  ;;  %v2710_v38 = vmul.f32 %v5060_v30, %v7557_v51  ;;  %5073 = vrcp.f32 %v2339_v19 }
 0x370   : > { %v5064_v17 = vpop.eup %5063  ;;  %v2711_v29 = vmul.f32 %v5062_v34, %v7558_v40  ;;  %v2862_v34 = vld [vmem:[#allocation2 + $0x50] sm:$0xff] }
 0x371   : > { %v1793_v44 = vpop.f32.mrb[180].mxu1  ;;  %3387 = vmatprep.mubr.f32.mxu0 %v2827_v1  ;;  %v5066_v23 = vpop.eup %5065  ;;  %v2714_v13 = vmul.f32 %v5064_v17, %v7559_v49  ;;  %v2857_v1 = vld [vmem:[#allocation2 + $0x28] sm:$0xff] }
 0x372   : > { %v2830_v28 = vmul.f32 %v2702_v6, %v1793_v44  ;;  %v1795_v62 = vpop.f32.mrb[181].mxu1  ;;  %3388 = vmatmul.mubr.f32.gmra.mrb[114].mxu0 %v2826_v54  ;;  %v2715_v22 = vmul.f32 %v5066_v23, %v7560_v18  ;;  %v2855_v54 = vld [vmem:[#allocation2 + $0x18] sm:$0xff] }
 0x373   : > { %v2831_v53 = vmul.f32 %v2703_v60, %v1795_v62  ;;  %v2858_v60 = vld [vmem:[#allocation2 + $0x30] sm:$0xff]  ;;  %v2859_v44 = vld [vmem:[#allocation2 + $0x38] sm:$0xff] }
 0x374   : > { %v5068_v47 = vpop.eup %5067 }
 0x375   : > { %v1799_v31 = vpop.f32.mrb[182].mxu1  ;;  %3393 = vmatprep.mubr.f32.mxu0 %v2831_v53  ;;  %v5070_v45 = vpop.eup %5069  ;;  %v2718_v40 = vmul.f32 %v5068_v47, %v7561_v4  ;;  %v2860_v53 = vld [vmem:[#allocation2 + $0x40] sm:$0xff]  ;;  %v2867_v47 = vld [vmem:[#allocation2 + $0x78] sm:$0xff] }
 0x376   : > { %v2834_v57 = vmul.f32 %v2706_v32, %v1799_v31  ;;  %v1801_v55 = vpop.f32.mrb[183].mxu1  ;;  %3394 = vmatmul.mubr.f32.gmra.mrb[116].mxu0 %v2830_v28  ;;  %v2719_v11 = vmul.f32 %v5070_v45, %v7562_v16  ;;  %v2852_v16 = vld [vmem:[#allocation2] sm:$0xff]  ;;  %v2861_v32 = vld [vmem:[#allocation2 + $0x48] sm:$0xff] }
 0x377   : > { %v2835_v7 = vmul.f32 %v2707_v21, %v1801_v55 }
 0x378   : > { %v5072_v5 = vpop.eup %5071 }
 0x379   : > { %v1805_v46 = vpop.f32.mrb[184].mxu1  ;;  %3399 = vmatprep.mubr.f32.mxu0 %v2835_v7  ;;  %v5074_v15 = vpop.eup %5073  ;;  %v2722_v18 = vmul.f32 %v5072_v5, %v7563_v27 }
 0x37a   : > { %v2838_v59 = vmul.f32 %v2710_v38, %v1805_v46  ;;  %v1807_v33 = vpop.f32.mrb[185].mxu1  ;;  %3400 = vmatmul.mubr.f32.gmra.mrb[118].mxu0 %v2834_v57  ;;  %v2723_v63 = vmul.f32 %v5074_v15, %v7564_v61  ;;  %v2863_v57 = vld [vmem:[#allocation2 + $0x58] sm:$0xff]  ;;  %v2865_v46 = vld [vmem:[#allocation2 + $0x68] sm:$0xff]  ;;  %v2870_v15 = vld [vmem:[#allocation2 + $0x90] sm:$0xff] }
 0x37b   : > { %v2839_v36 = vmul.f32 %v2711_v29, %v1807_v33  ;;  %v2864_v29 = vld [vmem:[#allocation2 + $0x60] sm:$0xff] }
 0x37d   : > { %v1811_v10 = vpop.f32.mrb[186].mxu1  ;;  %3405 = vmatprep.mubr.f32.mxu0 %v2839_v36 }
 0x37e   : > { %v2842_v51 = vmul.f32 %v2714_v13, %v1811_v10  ;;  %v1813_v56 = vpop.f32.mrb[187].mxu1  ;;  %3406 = vmatmul.mubr.f32.gmra.mrb[120].mxu0 %v2838_v59  ;;  %v2866_v13 = vld [vmem:[#allocation2 + $0x70] sm:$0xff] }
 0x37f   : > { %v2843_v3 = vmul.f32 %v2715_v22, %v1813_v56  ;;  %v2868_v56 = vld [vmem:[#allocation2 + $0x80] sm:$0xff] }
 0x381   : > { %v1817_v25 = vpop.f32.mrb[188].mxu1  ;;  %3411 = vmatprep.mubr.f32.mxu0 %v2843_v3  ;;  %v2869_v3 = vld [vmem:[#allocation2 + $0x88] sm:$0xff] }
 0x382   : > { %v2846_v0 = vmul.f32 %v2718_v40, %v1817_v25  ;;  %v1819_v49 = vpop.f32.mrb[189].mxu1  ;;  %3412 = vmatmul.mubr.f32.gmra.mrb[122].mxu0 %v2842_v51 }
 0x383   : > { %v2847_v41 = vmul.f32 %v2719_v11, %v1819_v49 }
 0x385   : > { %v1823_v43 = vpop.f32.mrb[190].mxu1  ;;  %3417 = vmatprep.mubr.f32.mxu0 %v2847_v41 }
 0x386   : > { %v2850_v26 = vmul.f32 %v2722_v18, %v1823_v43  ;;  %v1825_v52 = vpop.f32.mrb[191].mxu1  ;;  %3418 = vmatmul.mubr.f32.gmra.mrb[124].mxu0 %v2846_v0  ;;  %v2871_v0 = vld [vmem:[#allocation2 + $0x98] sm:$0xff]  ;;  %v2872_v43 = vld [vmem:[#allocation2 + $0xa0] sm:$0xff] }
 0x387   : > { %v2851_v4 = vmul.f32 %v2723_v63, %v1825_v52 }
 0x389   : > { %3423 = vmatprep.mubr.f32.mxu0 %v2851_v4 }
 0x38a   : > { %3424 = vmatmul.mubr.f32.gmra.mrb[126].mxu0 %v2850_v26  ;;  %v2873_v26 = vld [vmem:[#allocation2 + $0xa8] sm:$0xff] }
 0x3e1   : > { %v3239_v58 = vpop.f32.mrb[64].mxu0 }
 0x3e2   : > { %v3430_v12 = vadd.f32 %v3239_v58, %v2852_v16  ;;  %v3241_v50 = vpop.f32.mrb[65].mxu0  ;;  %v2874_v58 = vld [vmem:[#allocation2 + $0xb0] sm:$0xff] }
 0x3e3   : > { %v3431_v35 = vadd.f32 %v3241_v50, %v2853_v42 }
 0x3e4   : > { %3494 = vst [vmem:[#allocation2] sm:$0xff] %v3430_v12  ;;  %v2875_v12 = vld [vmem:[#allocation2 + $0xb8] sm:$0xff] }
 0x3e5   : > { %3495 = vst [vmem:[#allocation2 + $0x8] sm:$0xff] %v3431_v35  ;;  %v3245_v27 = vpop.f32.mrb[66].mxu0 }
 0x3e6   : > { %v3432_v61 = vadd.f32 %v3245_v27, %v2854_v24  ;;  %v3247_v9 = vpop.f32.mrb[67].mxu0  ;;  %v2876_v27 = vld [vmem:[#allocation2 + $0xc0] sm:$0xff] }
 0x3e7   : > { %v3433_v20 = vadd.f32 %v3247_v9, %v2855_v54 }
 0x3e8   : > { %3496 = vst [vmem:[#allocation2 + $0x10] sm:$0xff] %v3432_v61  ;;  %v2877_v61 = vld [vmem:[#allocation2 + $0xc8] sm:$0xff] }
 0x3e9   : > { %3497 = vst [vmem:[#allocation2 + $0x18] sm:$0xff] %v3433_v20  ;;  %v3251_v14 = vpop.f32.mrb[68].mxu0 }
 0x3ea   : > { %v3434_v6 = vadd.f32 %v3251_v14, %v2856_v8  ;;  %v3253_v48 = vpop.f32.mrb[69].mxu0  ;;  %v2878_v14 = vld [vmem:[#allocation2 + $0xd0] sm:$0xff] }
 0x3eb   : > { %v3435_v2 = vadd.f32 %v3253_v48, %v2857_v1 }
 0x3ec   : > { %3498 = vst [vmem:[#allocation2 + $0x20] sm:$0xff] %v3434_v6  ;;  %v2879_v6 = vld [vmem:[#allocation2 + $0xd8] sm:$0xff] }
 0x3ed   : > { %3499 = vst [vmem:[#allocation2 + $0x28] sm:$0xff] %v3435_v2  ;;  %v3257_v39 = vpop.f32.mrb[70].mxu0 }
 0x3ee   : > { %v3436_v28 = vadd.f32 %v3257_v39, %v2858_v60  ;;  %v3259_v62 = vpop.f32.mrb[71].mxu0  ;;  %v2880_v39 = vld [vmem:[#allocation2 + $0xe0] sm:$0xff] }
 0x3ef   : > { %v3437_v37 = vadd.f32 %v3259_v62, %v2859_v44 }
 0x3f0   : > { %3500 = vst [vmem:[#allocation2 + $0x30] sm:$0xff] %v3436_v28  ;;  %v2881_v28 = vld [vmem:[#allocation2 + $0xe8] sm:$0xff] }
 0x3f1   : > { %3501 = vst [vmem:[#allocation2 + $0x38] sm:$0xff] %v3437_v37  ;;  %v3263_v19 = vpop.f32.mrb[72].mxu0 }
 0x3f2   : > { %v3438_v30 = vadd.f32 %v3263_v19, %v2860_v53  ;;  %v3265_v21 = vpop.f32.mrb[73].mxu0  ;;  %v2882_v19 = vld [vmem:[#allocation2 + $0xf0] sm:$0xff] }
 0x3f3   : > { %v3439_v31 = vadd.f32 %v3265_v21, %v2861_v32 }
 0x3f4   : > { %3502 = vst [vmem:[#allocation2 + $0x40] sm:$0xff] %v3438_v30  ;;  %v2883_v30 = vld [vmem:[#allocation2 + $0xf8] sm:$0xff] }
 0x3f5   : > { %3503 = vst [vmem:[#allocation2 + $0x48] sm:$0xff] %v3439_v31  ;;  %v3269_v55 = vpop.f32.mrb[74].mxu0 }
 0x3f6   : > { %v3440_v7 = vadd.f32 %v3269_v55, %v2862_v34  ;;  %v3271_v38 = vpop.f32.mrb[75].mxu0  ;;  %v2884_v55 = vld [vmem:[#allocation2 + $0x100] sm:$0xff] }
 0x3f7   : > { %v3441_v17 = vadd.f32 %v3271_v38, %v2863_v57 }
 0x3f8   : > { %3504 = vst [vmem:[#allocation2 + $0x50] sm:$0xff] %v3440_v7  ;;  %v2885_v7 = vld [vmem:[#allocation2 + $0x108] sm:$0xff] }
 0x3f9   : > { %3505 = vst [vmem:[#allocation2 + $0x58] sm:$0xff] %v3441_v17  ;;  %v3275_v23 = vpop.f32.mrb[76].mxu0 }
 0x3fa   : > { %v3442_v59 = vadd.f32 %v3275_v23, %v2864_v29  ;;  %v3277_v33 = vpop.f32.mrb[77].mxu0  ;;  %v2886_v23 = vld [vmem:[#allocation2 + $0x110] sm:$0xff] }
 0x3fb   : > { %v3443_v36 = vadd.f32 %v3277_v33, %v2865_v46 }
 0x3fc   : > { %3506 = vst [vmem:[#allocation2 + $0x60] sm:$0xff] %v3442_v59  ;;  %v2887_v59 = vld [vmem:[#allocation2 + $0x118] sm:$0xff] }
 0x3fd   : > { %3507 = vst [vmem:[#allocation2 + $0x68] sm:$0xff] %v3443_v36  ;;  %v3281_v22 = vpop.f32.mrb[78].mxu0 }
 0x3fe   : > { %v3444_v10 = vadd.f32 %v3281_v22, %v2866_v13  ;;  %v3283_v45 = vpop.f32.mrb[79].mxu0  ;;  %v2888_v22 = vld [vmem:[#allocation2 + $0x120] sm:$0xff] }
 0x3ff   : > { %v3445_v51 = vadd.f32 %v3283_v45, %v2867_v47 }
 0x400   : > { %3508 = vst [vmem:[#allocation2 + $0x70] sm:$0xff] %v3444_v10  ;;  %v2889_v10 = vld [vmem:[#allocation2 + $0x128] sm:$0xff] }
 0x401   : > { %3509 = vst [vmem:[#allocation2 + $0x78] sm:$0xff] %v3445_v51  ;;  %v3287_v40 = vpop.f32.mrb[80].mxu0 }
 0x402   : > { %v3446_v5 = vadd.f32 %v3287_v40, %v2868_v56  ;;  %v3289_v11 = vpop.f32.mrb[81].mxu0  ;;  %v2890_v40 = vld [vmem:[#allocation2 + $0x130] sm:$0xff] }
 0x403   : > { %v3447_v25 = vadd.f32 %v3289_v11, %v2869_v3 }
 0x404   : > { %3510 = vst [vmem:[#allocation2 + $0x80] sm:$0xff] %v3446_v5  ;;  %v2891_v5 = vld [vmem:[#allocation2 + $0x138] sm:$0xff] }
 0x405   : > { %3511 = vst [vmem:[#allocation2 + $0x88] sm:$0xff] %v3447_v25  ;;  %v3293_v49 = vpop.f32.mrb[82].mxu0 }
 0x406   : > { %v3448_v41 = vadd.f32 %v3293_v49, %v2870_v15  ;;  %v3295_v18 = vpop.f32.mrb[83].mxu0  ;;  %v2892_v49 = vld [vmem:[#allocation2 + $0x140] sm:$0xff] }
 0x407   : > { %v3449_v63 = vadd.f32 %v3295_v18, %v2871_v0 }
 0x408   : > { %3512 = vst [vmem:[#allocation2 + $0x90] sm:$0xff] %v3448_v41  ;;  %v2893_v41 = vld [vmem:[#allocation2 + $0x148] sm:$0xff] }
 0x409   : > { %3513 = vst [vmem:[#allocation2 + $0x98] sm:$0xff] %v3449_v63  ;;  %v3299_v52 = vpop.f32.mrb[84].mxu0 }
 0x40a   : > { %v3450_v4 = vadd.f32 %v3299_v52, %v2872_v43  ;;  %v3301_v16 = vpop.f32.mrb[85].mxu0  ;;  %v2894_v52 = vld [vmem:[#allocation2 + $0x150] sm:$0xff] }
 0x40b   : > { %v3451_v42 = vadd.f32 %v3301_v16, %v2873_v26 }
 0x40c   : > { %3514 = vst [vmem:[#allocation2 + $0xa0] sm:$0xff] %v3450_v4  ;;  %v2895_v4 = vld [vmem:[#allocation2 + $0x158] sm:$0xff] }
 0x40d   : > { %3515 = vst [vmem:[#allocation2 + $0xa8] sm:$0xff] %v3451_v42  ;;  %v3305_v50 = vpop.f32.mrb[86].mxu0 }
 0x40e   : > { %v3452_v35 = vadd.f32 %v3305_v50, %v2874_v58  ;;  %v3307_v24 = vpop.f32.mrb[87].mxu0  ;;  %v2896_v50 = vld [vmem:[#allocation2 + $0x160] sm:$0xff] }
 0x40f   : > { %v3453_v54 = vadd.f32 %v3307_v24, %v2875_v12 }
 0x410   : > { %3516 = vst [vmem:[#allocation2 + $0xb0] sm:$0xff] %v3452_v35  ;;  %v2897_v35 = vld [vmem:[#allocation2 + $0x168] sm:$0xff] }
 0x411   : > { %3517 = vst [vmem:[#allocation2 + $0xb8] sm:$0xff] %v3453_v54  ;;  %v3311_v9 = vpop.f32.mrb[88].mxu0 }
 0x412   : > { %v3454_v20 = vadd.f32 %v3311_v9, %v2876_v27  ;;  %v3313_v8 = vpop.f32.mrb[89].mxu0  ;;  %v2898_v9 = vld [vmem:[#allocation2 + $0x170] sm:$0xff] }
 0x413   : > { %v3455_v1 = vadd.f32 %v3313_v8, %v2877_v61 }
 0x414   : > { %3518 = vst [vmem:[#allocation2 + $0xc0] sm:$0xff] %v3454_v20  ;;  %v2899_v20 = vld [vmem:[#allocation2 + $0x178] sm:$0xff] }
 0x415   : > { %3519 = vst [vmem:[#allocation2 + $0xc8] sm:$0xff] %v3455_v1  ;;  %v3317_v48 = vpop.f32.mrb[90].mxu0 }
 0x416   : > { %v3456_v2 = vadd.f32 %v3317_v48, %v2878_v14  ;;  %v3319_v60 = vpop.f32.mrb[91].mxu0  ;;  %v2900_v48 = vld [vmem:[#allocation2 + $0x180] sm:$0xff] }
 0x417   : > { %v3457_v44 = vadd.f32 %v3319_v60, %v2879_v6 }
 0x418   : > { %3520 = vst [vmem:[#allocation2 + $0xd0] sm:$0xff] %v3456_v2  ;;  %v2901_v2 = vld [vmem:[#allocation2 + $0x188] sm:$0xff] }
 0x419   : > { %3521 = vst [vmem:[#allocation2 + $0xd8] sm:$0xff] %v3457_v44  ;;  %v3323_v62 = vpop.f32.mrb[92].mxu0 }
 0x41a   : > { %v3458_v37 = vadd.f32 %v3323_v62, %v2880_v39  ;;  %v3325_v53 = vpop.f32.mrb[93].mxu0  ;;  %v2902_v62 = vld [vmem:[#allocation2 + $0x190] sm:$0xff] }
 0x41b   : > { %v3459_v32 = vadd.f32 %v3325_v53, %v2881_v28 }
 0x41c   : > { %3522 = vst [vmem:[#allocation2 + $0xe0] sm:$0xff] %v3458_v37  ;;  %v2903_v37 = vld [vmem:[#allocation2 + $0x198] sm:$0xff] }
 0x41d   : > { %3523 = vst [vmem:[#allocation2 + $0xe8] sm:$0xff] %v3459_v32  ;;  %v3329_v21 = vpop.f32.mrb[94].mxu0 }
 0x41e   : > { %v3460_v31 = vadd.f32 %v3329_v21, %v2882_v19  ;;  %v3331_v34 = vpop.f32.mrb[95].mxu0  ;;  %v2904_v21 = vld [vmem:[#allocation2 + $0x1a0] sm:$0xff] }
 0x41f   : > { %v3461_v57 = vadd.f32 %v3331_v34, %v2883_v30 }
 0x420   : > { %3524 = vst [vmem:[#allocation2 + $0xf0] sm:$0xff] %v3460_v31  ;;  %v2905_v31 = vld [vmem:[#allocation2 + $0x1a8] sm:$0xff] }
 0x421   : > { %3525 = vst [vmem:[#allocation2 + $0xf8] sm:$0xff] %v3461_v57  ;;  %v3335_v38 = vpop.f32.mrb[96].mxu0 }
 0x422   : > { %v3462_v17 = vadd.f32 %v3335_v38, %v2884_v55  ;;  %v3337_v29 = vpop.f32.mrb[97].mxu0  ;;  %v2906_v38 = vld [vmem:[#allocation2 + $0x1b0] sm:$0xff] }
 0x423   : > { %v3463_v46 = vadd.f32 %v3337_v29, %v2885_v7 }
 0x424   : > { %3526 = vst [vmem:[#allocation2 + $0x100] sm:$0xff] %v3462_v17  ;;  %v2907_v17 = vld [vmem:[#allocation2 + $0x1b8] sm:$0xff] }
 0x425   : > { %3527 = vst [vmem:[#allocation2 + $0x108] sm:$0xff] %v3463_v46  ;;  %v3341_v33 = vpop.f32.mrb[98].mxu0 }
 0x426   : > { %v3464_v36 = vadd.f32 %v3341_v33, %v2886_v23  ;;  %v3343_v13 = vpop.f32.mrb[99].mxu0  ;;  %v2908_v33 = vld [vmem:[#allocation2 + $0x1c0] sm:$0xff] }
 0x427   : > { %v3465_v47 = vadd.f32 %v3343_v13, %v2887_v59 }
 0x428   : > { %3528 = vst [vmem:[#allocation2 + $0x110] sm:$0xff] %v3464_v36  ;;  %v2909_v36 = vld [vmem:[#allocation2 + $0x1c8] sm:$0xff] }
 0x429   : > { %3529 = vst [vmem:[#allocation2 + $0x118] sm:$0xff] %v3465_v47  ;;  %v3347_v45 = vpop.f32.mrb[100].mxu0 }
 0x42a   : > { %v3466_v51 = vadd.f32 %v3347_v45, %v2888_v22  ;;  %v3349_v56 = vpop.f32.mrb[101].mxu0  ;;  %v2910_v45 = vld [vmem:[#allocation2 + $0x1d0] sm:$0xff] }
 0x42b   : > { %v3467_v3 = vadd.f32 %v3349_v56, %v2889_v10 }
 0x42c   : > { %3530 = vst [vmem:[#allocation2 + $0x120] sm:$0xff] %v3466_v51  ;;  %v2911_v51 = vld [vmem:[#allocation2 + $0x1d8] sm:$0xff] }
 0x42d   : > { %3531 = vst [vmem:[#allocation2 + $0x128] sm:$0xff] %v3467_v3  ;;  %v3353_v11 = vpop.f32.mrb[102].mxu0 }
 0x42e   : > { %v3468_v25 = vadd.f32 %v3353_v11, %v2890_v40  ;;  %v3355_v15 = vpop.f32.mrb[103].mxu0  ;;  %v2912_v11 = vld [vmem:[#allocation2 + $0x1e0] sm:$0xff] }
 0x42f   : > { %v3469_v0 = vadd.f32 %v3355_v15, %v2891_v5 }
 0x430   : > { %3532 = vst [vmem:[#allocation2 + $0x130] sm:$0xff] %v3468_v25  ;;  %v2913_v25 = vld [vmem:[#allocation2 + $0x1e8] sm:$0xff] }
 0x431   : > { %3533 = vst [vmem:[#allocation2 + $0x138] sm:$0xff] %v3469_v0  ;;  %v3359_v18 = vpop.f32.mrb[104].mxu0 }
 0x432   : > { %v3470_v63 = vadd.f32 %v3359_v18, %v2892_v49  ;;  %v3361_v43 = vpop.f32.mrb[105].mxu0  ;;  %v2914_v18 = vld [vmem:[#allocation2 + $0x1f0] sm:$0xff] }
 0x433   : > { %v3471_v26 = vadd.f32 %v3361_v43, %v2893_v41 }
 0x434   : > { %3534 = vst [vmem:[#allocation2 + $0x140] sm:$0xff] %v3470_v63  ;;  %v2915_v63 = vld [vmem:[#allocation2 + $0x1f8] sm:$0xff] }
 0x435   : > { %3535 = vst [vmem:[#allocation2 + $0x148] sm:$0xff] %v3471_v26  ;;  %v3365_v16 = vpop.f32.mrb[106].mxu0 }
 0x436   : > { %v3472_v42 = vadd.f32 %v3365_v16, %v2894_v52  ;;  %v3367_v58 = vpop.f32.mrb[107].mxu0  ;;  %v3562_v16 = vld [vmem:[#allocation2] sm:$0xff] (!%p3981_p13) }
 0x437   : > { %v3473_v12 = vadd.f32 %v3367_v58, %v2895_v4  ;;  %v3564_v58 = vld [vmem:[#allocation2 + $0x10] sm:$0xff] (!%p3981_p13)  ;;  %3626 = vst [vmem:[%s5673_s8] sm:$0xff] (!%p3981_p13), %v3562_v16 }
 0x438   : > { %3536 = vst [vmem:[#allocation2 + $0x150] sm:$0xff] %v3472_v42  ;;  %v3563_v42 = vld [vmem:[#allocation2 + $0x8] sm:$0xff] (!%p3981_p13)  ;;  %3628 = vst [vmem:[%s5673_s8 + $0x10] sm:$0xff] (!%p3981_p13), %v3564_v58 }
 0x439   : > { %3537 = vst [vmem:[#allocation2 + $0x158] sm:$0xff] %v3473_v12  ;;  %v3371_v24 = vpop.f32.mrb[108].mxu0  ;;  %3627 = vst [vmem:[%s5673_s8 + $0x8] sm:$0xff] (!%p3981_p13), %v3563_v42  ;;  %v3565_v12 = vld [vmem:[#allocation2 + $0x18] sm:$0xff] (!%p3981_p13) }
 0x43a   : > { %v3474_v54 = vadd.f32 %v3371_v24, %v2896_v50  ;;  %v3373_v27 = vpop.f32.mrb[109].mxu0  ;;  %v3566_v50 = vld [vmem:[#allocation2 + $0x20] sm:$0xff] (!%p3981_p13)  ;;  %3629 = vst [vmem:[%s5673_s8 + $0x18] sm:$0xff] (!%p3981_p13), %v3565_v12  ;;  %v3568_v24 = vld [vmem:[#allocation2 + $0x30] sm:$0xff] (!%p3981_p13) }
 0x43b   : > { %v3475_v61 = vadd.f32 %v3373_v27, %v2897_v35  ;;  %v3567_v35 = vld [vmem:[#allocation2 + $0x28] sm:$0xff] (!%p3981_p13)  ;;  %3630 = vst [vmem:[%s5673_s8 + $0x20] sm:$0xff] (!%p3981_p13), %v3566_v50  ;;  %v3570_v27 = vld [vmem:[#allocation2 + $0x40] sm:$0xff] (!%p3981_p13)  ;;  %3632 = vst [vmem:[%s5673_s8 + $0x30] sm:$0xff] (!%p3981_p13), %v3568_v24 }
 0x43c   : > { %3538 = vst [vmem:[#allocation2 + $0x160] sm:$0xff] %v3474_v54  ;;  %3631 = vst [vmem:[%s5673_s8 + $0x28] sm:$0xff] (!%p3981_p13), %v3567_v35  ;;  %v3569_v54 = vld [vmem:[#allocation2 + $0x38] sm:$0xff] (!%p3981_p13) }
 0x43d   : > { %3539 = vst [vmem:[#allocation2 + $0x168] sm:$0xff] %v3475_v61  ;;  %v3377_v8 = vpop.f32.mrb[110].mxu0  ;;  %3633 = vst [vmem:[%s5673_s8 + $0x38] sm:$0xff] (!%p3981_p13), %v3569_v54  ;;  %v3571_v61 = vld [vmem:[#allocation2 + $0x48] sm:$0xff] (!%p3981_p13) }
 0x43e   : > { %v3476_v1 = vadd.f32 %v3377_v8, %v2898_v9  ;;  %v3379_v14 = vpop.f32.mrb[111].mxu0  ;;  %3634 = vst [vmem:[%s5673_s8 + $0x40] sm:$0xff] (!%p3981_p13), %v3570_v27  ;;  %v3572_v9 = vld [vmem:[#allocation2 + $0x50] sm:$0xff] (!%p3981_p13)  ;;  %3635 = vst [vmem:[%s5673_s8 + $0x48] sm:$0xff] (!%p3981_p13), %v3571_v61  ;;  %v3574_v8 = vld [vmem:[#allocation2 + $0x60] sm:$0xff] (!%p3981_p13) }
 0x43f   : > { %v3477_v6 = vadd.f32 %v3379_v14, %v2899_v20  ;;  %v3573_v20 = vld [vmem:[#allocation2 + $0x58] sm:$0xff] (!%p3981_p13)  ;;  %3636 = vst [vmem:[%s5673_s8 + $0x50] sm:$0xff] (!%p3981_p13), %v3572_v9  ;;  %v3576_v14 = vld [vmem:[#allocation2 + $0x70] sm:$0xff] (!%p3981_p13)  ;;  %3638 = vst [vmem:[%s5673_s8 + $0x60] sm:$0xff] (!%p3981_p13), %v3574_v8 }
 0x440   : > { %3540 = vst [vmem:[#allocation2 + $0x170] sm:$0xff] %v3476_v1  ;;  %3637 = vst [vmem:[%s5673_s8 + $0x58] sm:$0xff] (!%p3981_p13), %v3573_v20  ;;  %v3575_v1 = vld [vmem:[#allocation2 + $0x68] sm:$0xff] (!%p3981_p13) }
 0x441   : > { %3541 = vst [vmem:[#allocation2 + $0x178] sm:$0xff] %v3477_v6  ;;  %v3383_v60 = vpop.f32.mrb[112].mxu0  ;;  %3639 = vst [vmem:[%s5673_s8 + $0x68] sm:$0xff] (!%p3981_p13), %v3575_v1  ;;  %v3577_v6 = vld [vmem:[#allocation2 + $0x78] sm:$0xff] (!%p3981_p13) }
 0x442   : > { %v3478_v44 = vadd.f32 %v3383_v60, %v2900_v48  ;;  %v3385_v39 = vpop.f32.mrb[113].mxu0  ;;  %3640 = vst [vmem:[%s5673_s8 + $0x70] sm:$0xff] (!%p3981_p13), %v3576_v14  ;;  %v3578_v48 = vld [vmem:[#allocation2 + $0x80] sm:$0xff] (!%p3981_p13)  ;;  %3641 = vst [vmem:[%s5673_s8 + $0x78] sm:$0xff] (!%p3981_p13), %v3577_v6  ;;  %v3580_v60 = vld [vmem:[#allocation2 + $0x90] sm:$0xff] (!%p3981_p13) }
 0x443   : > { %v3479_v28 = vadd.f32 %v3385_v39, %v2901_v2  ;;  %v3579_v2 = vld [vmem:[#allocation2 + $0x88] sm:$0xff] (!%p3981_p13)  ;;  %3642 = vst [vmem:[%s5673_s8 + $0x80] sm:$0xff] (!%p3981_p13), %v3578_v48  ;;  %v3582_v39 = vld [vmem:[#allocation2 + $0xa0] sm:$0xff] (!%p3981_p13)  ;;  %3644 = vst [vmem:[%s5673_s8 + $0x90] sm:$0xff] (!%p3981_p13), %v3580_v60 }
 0x444   : > { %3542 = vst [vmem:[#allocation2 + $0x180] sm:$0xff] %v3478_v44  ;;  %3643 = vst [vmem:[%s5673_s8 + $0x88] sm:$0xff] (!%p3981_p13), %v3579_v2  ;;  %v3581_v44 = vld [vmem:[#allocation2 + $0x98] sm:$0xff] (!%p3981_p13) }
 0x445   : > { %3543 = vst [vmem:[#allocation2 + $0x188] sm:$0xff] %v3479_v28  ;;  %v3389_v53 = vpop.f32.mrb[114].mxu0  ;;  %3645 = vst [vmem:[%s5673_s8 + $0x98] sm:$0xff] (!%p3981_p13), %v3581_v44  ;;  %v3583_v28 = vld [vmem:[#allocation2 + $0xa8] sm:$0xff] (!%p3981_p13) }
 0x446   : > { %v3480_v32 = vadd.f32 %v3389_v53, %v2902_v62  ;;  %v3391_v19 = vpop.f32.mrb[115].mxu0  ;;  %3646 = vst [vmem:[%s5673_s8 + $0xa0] sm:$0xff] (!%p3981_p13), %v3582_v39  ;;  %v3584_v62 = vld [vmem:[#allocation2 + $0xb0] sm:$0xff] (!%p3981_p13)  ;;  %3647 = vst [vmem:[%s5673_s8 + $0xa8] sm:$0xff] (!%p3981_p13), %v3583_v28  ;;  %v3586_v53 = vld [vmem:[#allocation2 + $0xc0] sm:$0xff] (!%p3981_p13) }
 0x447   : > { %v3481_v30 = vadd.f32 %v3391_v19, %v2903_v37  ;;  %v3585_v37 = vld [vmem:[#allocation2 + $0xb8] sm:$0xff] (!%p3981_p13)  ;;  %3648 = vst [vmem:[%s5673_s8 + $0xb0] sm:$0xff] (!%p3981_p13), %v3584_v62  ;;  %v3588_v19 = vld [vmem:[#allocation2 + $0xd0] sm:$0xff] (!%p3981_p13)  ;;  %3650 = vst [vmem:[%s5673_s8 + $0xc0] sm:$0xff] (!%p3981_p13), %v3586_v53 }
 0x448   : > { %3544 = vst [vmem:[#allocation2 + $0x190] sm:$0xff] %v3480_v32  ;;  %3649 = vst [vmem:[%s5673_s8 + $0xb8] sm:$0xff] (!%p3981_p13), %v3585_v37  ;;  %v3587_v32 = vld [vmem:[#allocation2 + $0xc8] sm:$0xff] (!%p3981_p13) }
 0x449   : > { %3545 = vst [vmem:[#allocation2 + $0x198] sm:$0xff] %v3481_v30  ;;  %v3395_v34 = vpop.f32.mrb[116].mxu0  ;;  %3651 = vst [vmem:[%s5673_s8 + $0xc8] sm:$0xff] (!%p3981_p13), %v3587_v32  ;;  %v3589_v30 = vld [vmem:[#allocation2 + $0xd8] sm:$0xff] (!%p3981_p13) }
 0x44a   : > { %v3482_v57 = vadd.f32 %v3395_v34, %v2904_v21  ;;  %v3397_v55 = vpop.f32.mrb[117].mxu0  ;;  %3652 = vst [vmem:[%s5673_s8 + $0xd0] sm:$0xff] (!%p3981_p13), %v3588_v19  ;;  %v3590_v21 = vld [vmem:[#allocation2 + $0xe0] sm:$0xff] (!%p3981_p13)  ;;  %3653 = vst [vmem:[%s5673_s8 + $0xd8] sm:$0xff] (!%p3981_p13), %v3589_v30  ;;  %v3592_v34 = vld [vmem:[#allocation2 + $0xf0] sm:$0xff] (!%p3981_p13) }
 0x44b   : > { %v3483_v7 = vadd.f32 %v3397_v55, %v2905_v31  ;;  %v3591_v31 = vld [vmem:[#allocation2 + $0xe8] sm:$0xff] (!%p3981_p13)  ;;  %3654 = vst [vmem:[%s5673_s8 + $0xe0] sm:$0xff] (!%p3981_p13), %v3590_v21  ;;  %v3594_v55 = vld [vmem:[#allocation2 + $0x100] sm:$0xff] (!%p3981_p13)  ;;  %3656 = vst [vmem:[%s5673_s8 + $0xf0] sm:$0xff] (!%p3981_p13), %v3592_v34 }
 0x44c   : > { %3546 = vst [vmem:[#allocation2 + $0x1a0] sm:$0xff] %v3482_v57  ;;  %3655 = vst [vmem:[%s5673_s8 + $0xe8] sm:$0xff] (!%p3981_p13), %v3591_v31  ;;  %v3593_v57 = vld [vmem:[#allocation2 + $0xf8] sm:$0xff] (!%p3981_p13) }
 0x44d   : > { %3547 = vst [vmem:[#allocation2 + $0x1a8] sm:$0xff] %v3483_v7  ;;  %v3401_v29 = vpop.f32.mrb[118].mxu0  ;;  %3657 = vst [vmem:[%s5673_s8 + $0xf8] sm:$0xff] (!%p3981_p13), %v3593_v57  ;;  %v3595_v7 = vld [vmem:[#allocation2 + $0x108] sm:$0xff] (!%p3981_p13) }
 0x44e   : > { %v3484_v46 = vadd.f32 %v3401_v29, %v2906_v38  ;;  %v3403_v23 = vpop.f32.mrb[119].mxu0  ;;  %3658 = vst [vmem:[%s5673_s8 + $0x100] sm:$0xff] (!%p3981_p13), %v3594_v55  ;;  %v3596_v38 = vld [vmem:[#allocation2 + $0x110] sm:$0xff] (!%p3981_p13)  ;;  %3659 = vst [vmem:[%s5673_s8 + $0x108] sm:$0xff] (!%p3981_p13), %v3595_v7  ;;  %v3598_v29 = vld [vmem:[#allocation2 + $0x120] sm:$0xff] (!%p3981_p13) }
 0x44f   : > { %v3485_v59 = vadd.f32 %v3403_v23, %v2907_v17  ;;  %v3597_v17 = vld [vmem:[#allocation2 + $0x118] sm:$0xff] (!%p3981_p13)  ;;  %3660 = vst [vmem:[%s5673_s8 + $0x110] sm:$0xff] (!%p3981_p13), %v3596_v38  ;;  %v3600_v23 = vld [vmem:[#allocation2 + $0x130] sm:$0xff] (!%p3981_p13)  ;;  %3662 = vst [vmem:[%s5673_s8 + $0x120] sm:$0xff] (!%p3981_p13), %v3598_v29 }
 0x450   : > { %3548 = vst [vmem:[#allocation2 + $0x1b0] sm:$0xff] %v3484_v46  ;;  %3661 = vst [vmem:[%s5673_s8 + $0x118] sm:$0xff] (!%p3981_p13), %v3597_v17  ;;  %v3599_v46 = vld [vmem:[#allocation2 + $0x128] sm:$0xff] (!%p3981_p13) }
 0x451   : > { %3549 = vst [vmem:[#allocation2 + $0x1b8] sm:$0xff] %v3485_v59  ;;  %v3407_v13 = vpop.f32.mrb[120].mxu0  ;;  %3663 = vst [vmem:[%s5673_s8 + $0x128] sm:$0xff] (!%p3981_p13), %v3599_v46  ;;  %v3601_v59 = vld [vmem:[#allocation2 + $0x138] sm:$0xff] (!%p3981_p13) }
 0x452   : > { %v3486_v47 = vadd.f32 %v3407_v13, %v2908_v33  ;;  %v3409_v22 = vpop.f32.mrb[121].mxu0  ;;  %3664 = vst [vmem:[%s5673_s8 + $0x130] sm:$0xff] (!%p3981_p13), %v3600_v23  ;;  %v3602_v33 = vld [vmem:[#allocation2 + $0x140] sm:$0xff] (!%p3981_p13)  ;;  %3665 = vst [vmem:[%s5673_s8 + $0x138] sm:$0xff] (!%p3981_p13), %v3601_v59  ;;  %v3604_v13 = vld [vmem:[#allocation2 + $0x150] sm:$0xff] (!%p3981_p13) }
 0x453   : > { %v3487_v10 = vadd.f32 %v3409_v22, %v2909_v36  ;;  %v3603_v36 = vld [vmem:[#allocation2 + $0x148] sm:$0xff] (!%p3981_p13)  ;;  %3666 = vst [vmem:[%s5673_s8 + $0x140] sm:$0xff] (!%p3981_p13), %v3602_v33  ;;  %v3606_v22 = vld [vmem:[#allocation2 + $0x160] sm:$0xff] (!%p3981_p13)  ;;  %3668 = vst [vmem:[%s5673_s8 + $0x150] sm:$0xff] (!%p3981_p13), %v3604_v13 }
 0x454   : > { %3550 = vst [vmem:[#allocation2 + $0x1c0] sm:$0xff] %v3486_v47  ;;  %3667 = vst [vmem:[%s5673_s8 + $0x148] sm:$0xff] (!%p3981_p13), %v3603_v36  ;;  %v3605_v47 = vld [vmem:[#allocation2 + $0x158] sm:$0xff] (!%p3981_p13) }
 0x455   : > { %3551 = vst [vmem:[#allocation2 + $0x1c8] sm:$0xff] %v3487_v10  ;;  %v3413_v56 = vpop.f32.mrb[122].mxu0  ;;  %3669 = vst [vmem:[%s5673_s8 + $0x158] sm:$0xff] (!%p3981_p13), %v3605_v47  ;;  %v3607_v10 = vld [vmem:[#allocation2 + $0x168] sm:$0xff] (!%p3981_p13) }
 0x456   : > { %v3488_v3 = vadd.f32 %v3413_v56, %v2910_v45  ;;  %v3415_v40 = vpop.f32.mrb[123].mxu0  ;;  %3670 = vst [vmem:[%s5673_s8 + $0x160] sm:$0xff] (!%p3981_p13), %v3606_v22  ;;  %v3608_v45 = vld [vmem:[#allocation2 + $0x170] sm:$0xff] (!%p3981_p13)  ;;  %3671 = vst [vmem:[%s5673_s8 + $0x168] sm:$0xff] (!%p3981_p13), %v3607_v10  ;;  %v3610_v56 = vld [vmem:[#allocation2 + $0x180] sm:$0xff] (!%p3981_p13) }
 0x457   : > { %v3489_v5 = vadd.f32 %v3415_v40, %v2911_v51  ;;  %v3609_v51 = vld [vmem:[#allocation2 + $0x178] sm:$0xff] (!%p3981_p13)  ;;  %3672 = vst [vmem:[%s5673_s8 + $0x170] sm:$0xff] (!%p3981_p13), %v3608_v45  ;;  %v3612_v40 = vld [vmem:[#allocation2 + $0x190] sm:$0xff] (!%p3981_p13)  ;;  %3674 = vst [vmem:[%s5673_s8 + $0x180] sm:$0xff] (!%p3981_p13), %v3610_v56 }
 0x458   : > { %3552 = vst [vmem:[#allocation2 + $0x1d0] sm:$0xff] %v3488_v3  ;;  %3673 = vst [vmem:[%s5673_s8 + $0x178] sm:$0xff] (!%p3981_p13), %v3609_v51  ;;  %v3611_v3 = vld [vmem:[#allocation2 + $0x188] sm:$0xff] (!%p3981_p13) }
 0x459   : > { %3553 = vst [vmem:[#allocation2 + $0x1d8] sm:$0xff] %v3489_v5  ;;  %v3419_v15 = vpop.f32.mrb[124].mxu0  ;;  %3675 = vst [vmem:[%s5673_s8 + $0x188] sm:$0xff] (!%p3981_p13), %v3611_v3  ;;  %v3613_v5 = vld [vmem:[#allocation2 + $0x198] sm:$0xff] (!%p3981_p13) }
 0x45a   : > { %v3490_v0 = vadd.f32 %v3419_v15, %v2912_v11  ;;  %v3421_v49 = vpop.f32.mrb[125].mxu0  ;;  %3676 = vst [vmem:[%s5673_s8 + $0x190] sm:$0xff] (!%p3981_p13), %v3612_v40  ;;  %v3614_v11 = vld [vmem:[#allocation2 + $0x1a0] sm:$0xff] (!%p3981_p13)  ;;  %3677 = vst [vmem:[%s5673_s8 + $0x198] sm:$0xff] (!%p3981_p13), %v3613_v5  ;;  %v3616_v15 = vld [vmem:[#allocation2 + $0x1b0] sm:$0xff] (!%p3981_p13) }
 0x45b   : > { %v3491_v41 = vadd.f32 %v3421_v49, %v2913_v25  ;;  %3561 = sbr.rel (%p3981_p13) target bundleno = 1130 (0x46a), region = 52  ;;  %v3615_v25 = vld [vmem:[#allocation2 + $0x1a8] sm:$0xff] (!%p3981_p13)  ;;  %3678 = vst [vmem:[%s5673_s8 + $0x1a0] sm:$0xff] (!%p3981_p13), %v3614_v11  ;;  %v3618_v49 = vld [vmem:[#allocation2 + $0x1c0] sm:$0xff] (!%p3981_p13)  ;;  %3680 = vst [vmem:[%s5673_s8 + $0x1b0] sm:$0xff] (!%p3981_p13), %v3616_v15 }
 0x45c   : > { %3554 = vst [vmem:[#allocation2 + $0x1e0] sm:$0xff] %v3490_v0  ;;  %3679 = vst [vmem:[%s5673_s8 + $0x1a8] sm:$0xff] (!%p3981_p13), %v3615_v25  ;;  %v3617_v0 = vld [vmem:[#allocation2 + $0x1b8] sm:$0xff] (!%p3981_p13) }
 0x45d   : > { %3555 = vst [vmem:[#allocation2 + $0x1e8] sm:$0xff] %v3491_v41  ;;  %v3425_v43 = vpop.f32.mrb[126].mxu0  ;;  %3681 = vst [vmem:[%s5673_s8 + $0x1b8] sm:$0xff] (!%p3981_p13), %v3617_v0  ;;  %v3619_v41 = vld [vmem:[#allocation2 + $0x1c8] sm:$0xff] (!%p3981_p13) }
 0x45e   : > { %v3492_v26 = vadd.f32 %v3425_v43, %v2914_v18  ;;  %v3427_v52 = vpop.f32.mrb[127].mxu0  ;;  %3682 = vst [vmem:[%s5673_s8 + $0x1c0] sm:$0xff] (!%p3981_p13), %v3618_v49  ;;  %3683 = vst [vmem:[%s5673_s8 + $0x1c8] sm:$0xff] (!%p3981_p13), %v3619_v41 }
 0x45f   : > { %v3493_v4 = vadd.f32 %v3427_v52, %v2915_v63  ;;  %v3620_v18 = vld [vmem:[#allocation2 + $0x1d0] sm:$0xff] (!%p3981_p13) }
 0x460   : > { %3556 = vst [vmem:[#allocation2 + $0x1f0] sm:$0xff] %v3492_v26  ;;  %v3621_v63 = vld [vmem:[#allocation2 + $0x1d8] sm:$0xff] (!%p3981_p13)  ;;  %3684 = vst [vmem:[%s5673_s8 + $0x1d0] sm:$0xff] (!%p3981_p13), %v3620_v18 }
 0x461   : > { %3557 = vst [vmem:[#allocation2 + $0x1f8] sm:$0xff] %v3493_v4  ;;  %3685 = vst [vmem:[%s5673_s8 + $0x1d8] sm:$0xff] (!%p3981_p13), %v3621_v63 }
 0x463   : > { %v3622_v43 = vld [vmem:[#allocation2 + $0x1e0] sm:$0xff] }
 0x464   : > { %v3623_v26 = vld [vmem:[#allocation2 + $0x1e8] sm:$0xff]  ;;  %3686 = vst [vmem:[%s5673_s8 + $0x1e0] sm:$0xff] %v3622_v43 }
 0x465   : > { %3687 = vst [vmem:[%s5673_s8 + $0x1e8] sm:$0xff] %v3623_v26 }
 0x467   : > { %v3624_v52 = vld [vmem:[#allocation2 + $0x1f0] sm:$0xff] }
 0x468   : > { %3688 = vst [vmem:[%s5673_s8 + $0x1f0] sm:$0xff] %v3624_v52  ;;  %v3625_v4 = vld [vmem:[#allocation2 + $0x1f8] sm:$0xff] }
 0x469   : > { %3689 = vst [vmem:[%s5673_s8 + $0x1f8] sm:$0xff] %v3625_v4 }
 0x46a PF: > { %s3994_s18 = sshll.u32 %s5343_s19, 13  ;;  %s7565_s25 = sld [smem:[#allocation45_spill]] }
 0x46b   : > { %s3705_s21 = sshll.u32 %s5673_s8, 4  ;;  %s3691_s4 = scalar_lea.sflag [#allocation5], %s5653_s7  ;;  %s7353_s21 = int_to_ptr.vmem [resolvable:$true] %s3705_s21 }
 0x46c   : > { %s5229_s24 = scalar_lea.vmem %s7353_s21, 8192  ;;  %p7566_p3 = scmp.ne.s32.totalorder %s7489_s11, 0 }
 0x46d   : > { %p5230_p1 = scmp.ne.s32.totalorder %s7353_s21, %s5229_s24  ;;  %s5366_s14 = smov [#allocation9]  }
 0x46e   : > { %s5233_s17 = sshll.u32 %s5366_s14, 4  ;;  %s5234_s17 = int_to_ptr.vmem [resolvable:$false] %s5233_s17 }
 0x46f   : > { %p5231_p2 = pnand %p5230_p1, %p7566_p3  ;;  %s5235_s19 = scalar_lea.vmem %s5234_s17, 16384 }
 0x470   : > { %s7350_s3 = scalar_lea.hbm %s7565_s25, %s3994_s18  ;;  %p5236_p0 = scmp.lt.s32.totalorder %s7353_s21, %s5234_s17 }
 0x471   : > { %p5232_p12 = pneg %p5231_p2  ;;  %p5237_p7 = scmp.lt.s32.totalorder %s5235_s19, %s5229_s24 }
 0x473   : > { %p5238_p8 = por %p5237_p7, %p5236_p0 }
 0x475   : > { %p5239_p4 = pnand %p5238_p8, %p5232_p12 }
 0x477   : > { %5242 = shalt.err (!%p5239_p4)
}
 0x478   : > { %s5243_s20 = scalar_lea.hbm %s7350_s3, 8192  ;;  %s5247_s26 = scalar_lea.hbm %s7565_s25, 16384 }
 0x479   : > { %p5244_p5 = scmp.ne.s32.totalorder %s7350_s3, %s5243_s20  ;;  %p5248_p9 = scmp.lt.u32.totalorder %s7350_s3, %s7565_s25 }
 0x47a   : > { %p5249_p6 = scmp.lt.u32.totalorder %s5247_s26, %s5243_s20  ;;  %p5251_p1 = scmp.lt.u32.totalorder %s5243_s20, %s7350_s3 }
 0x47b   : > { %p5245_p11 = pnand %p5244_p5, %p7566_p3 }
 0x47c   : > { %p5250_p13 = por %p5249_p6, %p5248_p9 }
 0x47d   : > { %p5246_p10 = pneg %p5245_p11 }
 0x47e   : > { %p5252_p2 = por %p5251_p1, %p5250_p13 }
 0x480   : > { %p5253_p12 = pnand %p5252_p2, %p5246_p10 }
 0x482   : > { %5256 = shalt.err (!%p5253_p12)
}
 0x483   : > { %s5367_s10 = smov 256   ;;  %s5368_s30 = smov 16  }
 0x484   : > { %4449 = dma.vmem_to_hbm [thread:$0]  (%p7566_p3), %s7353_s21, 8192, %s7350_s3, %s3691_s4, %s5367_s10, %s5367_s10, %s5368_s30  }
 0x485 PF: > { %s7567_s29 = sld [smem:[#allocation14_spill]]  ;;  %p4466_p0 = scmp.ge.s32.totalorder %s5355_s22, 2 }
 0x486   : > { %p7568_p7 = scmp.ne.s32.totalorder %s7490_s6, 0 }
 0x488   : > { %p4462_p8 = pnand %p4466_p0, %p7568_p7 }
 0x48b   : > { %s3720_s5 = sand.u32 1, %s7567_s29  }
 0x48c   : > { %s3721_s9 = scalar_lea.sflag [#allocation5], %s3720_s5 }
 0x48d   : > { %5310 = dma.done.wait (!%p4462_p8), %s3721_s9, 8192  }
 0x48e   : > { %5312 = vsyncadd (!%p4462_p8), %s3721_s9, 4294959104  ;;  %s22_s22 = sadd.s32 1, %s5355_s22   ;;  %s7569_s8 = sld [smem:[#allocation13_spill]] }
 0x48f   : > { %p19_p4 = scmp.ge.s32.totalorder %s22_s22, 6   ;;  %s7570_s14 = sld [smem:[#allocation19_spill]] }
 0x490   : > { %s7571_s11 = sld [smem:[#allocation15_spill]]  ;;  %s7572_s17 = sld [smem:[#allocation21_spill]] }
 0x491   : > { %s7573_s18 = sld [smem:[#allocation16_spill]]  ;;  %s7574_s19 = sld [smem:[#allocation17_spill]] }
 0x492   : > { %s7575_s20 = sld [smem:[#allocation18_spill]]  ;;  %s7576_s21 = sld [smem:[#allocation20_spill]] }
 0x493   : > { %s7577_s12 = smov %s5319_s13  ;;  %s7579_s15 = smov %s5331_s16 }
 0x494   : > { %s7578_s13 = smov %s7569_s8  ;;  %21 = sbr.rel (!%p19_p4) target bundleno = 14 (0xe), region = 109 }
 0x496   : > { %s7580_s16 = smov %s7571_s11 }
 0x49b   :  { %3726 = vsyncpa [#allocation4], 1 }
 0x49c   :  { %3728 = vsyncpa [#allocation4 + $0x1], 1 }
 0x49d   :  { %3729 = vsyncpa [#allocation7], 1 }
 0x49e   :  { %3731 = vsyncpa [#allocation7 + $0x1], 1 }
 0x49f   :  { %3732 = vsyncpa [#allocation5], 1 }
 0x4a0   :  { %3734 = vsyncpa [#allocation5 + $0x1], 1 }

</bundles_post_ra>
